<compile_context>
chip_gen: v6e
topology: v6e:2x2x1
jax: 0.10.0
libtpu: 0.0.40
codegen_flags: <defaults>
</compile_context>

<pallas_src>
from functools import partial

import jax
import jax.numpy as jnp
from jax.experimental import pallas as pl
from jax.experimental.pallas import tpu as pltpu

# ----------------------------- model hyper-params -----------------------------
HIDDEN = 32        # hidden_dim
DEPTH = 2          # number of PointTransformerLayers
POS_HIDDEN = 16    # pos_mlp hidden dim
ATTN_MULT = 4      # attn_mlp hidden multiplier  -> A = 128 (lane-aligned)
N_POINTS = 8       # points per event (small demo size)
N_EVENTS = 3       # len(data)


# --------------------------------- the kernel ---------------------------------
def _single_step_kernel(dn_ref,                      # (E*N, 4)  pre-normalized data
                        we_ref, be_ref,              # encode Linear(4 -> H)
                        wxc_ref,                     # (D, H, 2A+H) = [Wq@Wa1 | Wk@Wa1 | Wv]
                        wp1_ref, bp1_ref,            # pos_mlp layer 1 (folded form)
                        whc_ref,                     # (D, P, A+H)  = [Wp2@Wa1 | Wp2]
                        bp2_ref, ba1f_ref,           # pos_mlp bias 2, folded attn bias 1
                        wa2_ref, ba2_ref,            # attn_mlp layer 2
                        wo_ref, bo_ref,              # to_logits Linear(H -> 2)
                        out_ref,                     # (E, 2)
                        *, n_events, n_points):
    E, N = n_events, n_points
    H = we_ref.shape[1]
    P = wp1_ref.shape[2]
    A = wa2_ref.shape[1]
    depth = wxc_ref.shape[0]

    dn = dn_ref[...]                                           # (E*N, 4), already normalized

    # --- encode: Linear(4 -> H), K=4 as VPU broadcast-FMAs (no padded MXU pass) ---
    x = be_ref[...]                                            # (1, H)
    for c in range(4):
        x = x + dn[:, c:c + 1] * we_ref[c:c + 1, :]            # -> (E*N, H)

    for l in range(depth):                                     # static unroll (depth = 2)
        # ---- one lane-dense matmul for everything that multiplies x ----
        #   xc = x @ [Wq Wa1 | Wk Wa1 | Wv]        (E*N, 2A+H), slices are 128-aligned
        xc = jnp.dot(x, wxc_ref[l], preferred_element_type=jnp.float32)
        qa = xc[:, :A]                                         # x_i @ (Wq Wa1)
        ka = xc[:, A:2 * A]                                    # x_j @ (Wk Wa1)
        v = xc[:, 2 * A:]                                      # values (E*N, H)

        # ---- pos_mlp layer 1 folded through linearity, K=3 on the VPU ----
        #   relu((pos_i - pos_j) @ Wp1 + bp1) == relu(p1_i - p1_j + bp1)
        wp1_l = wp1_ref[l]                                     # (3, P)
        p1 = dn[:, 0:1] * wp1_l[0:1, :]
        p1 = p1 + dn[:, 1:2] * wp1_l[1:2, :]
        p1 = p1 + dn[:, 2:3] * wp1_l[2:3, :]                   # (E*N, P)
        p1e = p1.reshape(E, N, P)
        h1 = jnp.maximum(p1e[:, :, None, :] - p1e[:, None, :, :] + bp1_ref[l], 0.0)
        h1f = h1.reshape(E * N * N, P)                         # flattened N^2-row slab

        # ---- one lane-dense matmul for everything that multiplies h1f ----
        #   hc = h1f @ [Wp2 Wa1 | Wp2]             (E*N*N, A+H), slices 128-aligned
        hc = jnp.dot(h1f, whc_ref[l], preferred_element_type=jnp.float32)
        pa = hc[:, :A]                                         # h1 @ (Wp2 Wa1)
        pe = hc[:, A:] + bp2_ref[l]                            # pos_emb, flattened (E*N*N, H)

        # ---- attn_mlp layer 1 with Wa1 distributed over the broadcasted sum ----
        #   (q_i - k_j + pe_ij) @ Wa1 + ba1 == qa_i - ka_j + pa_ij + ba1f   (exact fold)
        qk = (qa.reshape(E, N, 1, A) - ka.reshape(E, 1, N, A)).reshape(E * N * N, A)
        a1 = jnp.maximum(qk + pa + ba1f_ref[l], 0.0)           # (E*N*N, A)

        sim = (jnp.dot(a1, wa2_ref[l], preferred_element_type=jnp.float32)
               + ba2_ref[l]).reshape(E, N, N, H)               # restructure ONCE for softmax

        # ---- softmax over the key axis (== torch softmax(dim=-2)) ----
        sim_max = jnp.max(sim, axis=2, keepdims=True)
        e = jnp.exp(sim - sim_max)
        inv = pl.reciprocal(jnp.sum(e, axis=2, keepdims=True), approx=True)  # sum >= 1
        attn = e * inv

        vpe = v.reshape(E, 1, N, H) + pe.reshape(E, N, N, H)
        agg = jnp.sum(attn * vpe, axis=2).reshape(E * N, H)    # (E*N, H)
        x = agg + x                                            # residual

    # ---- max over points (per event), then to_logits: one (E,H)@(H,2) ----
    x_max = jnp.max(x.reshape(E, N, H), axis=1)                # (E, H)
    out_ref[...] = (jnp.dot(x_max, wo_ref[...], preferred_element_type=jnp.float32)
                    + bo_ref[...])                             # single contiguous (E, 2) store
    # TODO(synk): for much larger N/E, cast the two N^2-row matmul operands to bf16
    # (native MXU rate on v6e/v7x) and re-tile the event block against v7x's 64 MiB VMEM.


@partial(jax.jit, static_argnames=("n_events", "n_points"))
def _run(dn, fused, n_events, n_points):
    kern = partial(_single_step_kernel, n_events=n_events, n_points=n_points)
    vmem = pl.BlockSpec(memory_space=pltpu.MemorySpace.VMEM)   # whole array, VMEM-resident
    return pl.pallas_call(
        kern,
        out_shape=jax.ShapeDtypeStruct((n_events, 2), jnp.float32),
        in_specs=[vmem] * (1 + len(fused)),
        out_specs=vmem,
        # single grid step: no grid, no pipelining needed -- everything fits in VMEM
    )(dn, *fused)


# ------------------------- one-time parameter folding ---------------------------
def fuse_params(params):
    """Offline fold + concat of the original-form parameters into the kernel form."""
    (we, be, wqkv, wp1, bp1, wp2, bp2, wa1, ba1, wa2, ba2, wo, bo) = params
    H = we.shape[1]
    wq = wqkv[:, :, :H]
    wk = wqkv[:, :, H:2 * H]
    wv = wqkv[:, :, 2 * H:]
    wqa1 = jnp.einsum("dij,djk->dik", wq, wa1)                 # (D, H, A)
    wka1 = jnp.einsum("dij,djk->dik", wk, wa1)                 # (D, H, A)
    wpa1 = jnp.einsum("dij,djk->dik", wp2, wa1)                # (D, P, A)
    ba1f = jnp.einsum("dij,djk->dik", bp2, wa1) + ba1          # (D, 1, A)
    # shared-LHS concatenations -> lane-dense single matmuls, 128-aligned slices
    wxc = jnp.concatenate([wqa1, wka1, wv], axis=-1)           # (D, H, 2A+H)
    whc = jnp.concatenate([wpa1, wp2], axis=-1)                # (D, P, A+H)
    return (we, be, wxc, wp1, bp1, whc, bp2, ba1f, wa2, ba2, wo, bo)


# ------------------------------ python wrapper ---------------------------------
def point_transformer_forward(data, query, res, dt, fused_params):
    """Mirrors PointTransformer.forward; returns stacked (E, 2) logits (row i == event i)."""
    del query  # unused in the reference forward pass
    n_events = len(data)
    n_points = int(data[0].shape[0])
    d_stack = jnp.stack([jnp.asarray(d, jnp.float32) for d in data])           # (E, N, 4)
    # per-event normalization folded into the input ONCE (removes the per-step scale
    # input stream and the in-kernel constant offset):
    #   col0: x*2/rx - 1, col1: y*2/ry - 1, col2: t*2/dt - 1, col3: raw unchanged
    scale = jnp.asarray(
        [[2.0 / float(res[i][0]), 2.0 / float(res[i][1]), 2.0 / float(dt[i]), 1.0]
         for i in range(n_events)], dtype=jnp.float32)[:, None, :]             # (E, 1, 4)
    offset = jnp.asarray([-1.0, -1.0, -1.0, 0.0], dtype=jnp.float32)
    dn = (d_stack * scale + offset).reshape(n_events * n_points, 4)            # (E*N, 4)
    return _run(dn, fused_params, n_events=n_events, n_points=n_points)        # (E, 2)


# ------------------------- deterministic parameter init -------------------------
def init_params(key):
    H, P, A = HIDDEN, POS_HIDDEN, ATTN_MULT * HIDDEN
    ks = jax.random.split(key, 20)

    def w(k, shape, scale=0.1):
        return (scale * jax.random.normal(k, shape)).astype(jnp.float32)

    we = w(ks[0], (4, H));            be = w(ks[1], (1, H))
    wqkv = w(ks[2], (DEPTH, H, 3 * H))
    wp1 = w(ks[3], (DEPTH, 3, P));    bp1 = w(ks[4], (DEPTH, 1, P))
    wp2 = w(ks[5], (DEPTH, P, H));    bp2 = w(ks[6], (DEPTH, 1, H))
    wa1 = w(ks[7], (DEPTH, H, A));    ba1 = w(ks[8], (DEPTH, 1, A))
    wa2 = w(ks[9], (DEPTH, A, H));    ba2 = w(ks[10], (DEPTH, 1, H))
    wo = w(ks[11], (H, 2));           bo = w(ks[12], (1, 2))
    return (we, be, wqkv, wp1, bp1, wp2, bp2, wa1, ba1, wa2, ba2, wo, bo)


# ------------------------------- pure-JAX reference -----------------------------
def _ref_event(d, scale_mult, offset, params):
    """Straightforward (unfolded) math on the original-form parameters."""
    (we, be, wqkv, wp1, bp1, wp2, bp2, wa1, ba1, wa2, ba2, wo, bo) = params
    H = HIDDEN
    dn = d * scale_mult + offset
    pos = dn[:, :3]
    x = dn @ we + be
    rel = pos[:, None, :] - pos[None, :, :]
    for l in range(DEPTH):
        qkv = x @ wqkv[l]
        q, k, v = qkv[:, :H], qkv[:, H:2 * H], qkv[:, 2 * H:]
        pe = jnp.maximum(rel @ wp1[l] + bp1[l][None], 0.0) @ wp2[l] + bp2[l][None]
        qk_rel = q[:, None, :] - k[None, :, :]
        v_comb = v[None, :, :] + pe
        sim = jnp.maximum((qk_rel + pe) @ wa1[l] + ba1[l][None], 0.0) @ wa2[l] + ba2[l][None]
        attn = jax.nn.softmax(sim, axis=1)
        x = jnp.sum(attn * v_comb, axis=1) + x
    return jnp.max(x, axis=0, keepdims=True) @ wo + bo


# ------------------------------------ main --------------------------------------
if __name__ == "__main__":
    key = jax.random.PRNGKey(0)
    pkey, dkey = jax.random.split(key)
    params = init_params(pkey)
    fused = fuse_params(params)   # one-time offline fold + concat

    # Build N_EVENTS synthetic events: (N_POINTS, 4) with x,y in [0,res), t in [0,dt)
    data, res, dt = [], [], []
    dkeys = jax.random.split(dkey, N_EVENTS)
    for i in range(N_EVENTS):
        u = jax.random.uniform(dkeys[i], (N_POINTS, 4))
        ev = jnp.stack([u[:, 0] * 16.0, u[:, 1] * 16.0, u[:, 2] * 10.0, u[:, 3]], axis=-1)
        data.append(ev.astype(jnp.float32))
        res.append((16.0, 16.0))
        dt.append(10.0)
    query = None  # unused by the reference forward

    out = point_transformer_forward(data, query, res, dt, fused)   # (E, 2)
    out = jax.block_until_ready(out)

    # correctness check against a pure-JAX reference using the ORIGINAL parameters
    # (tolerance 1e-3: covers the approximate EUP reciprocal in the softmax; the
    #  f32 weight folds themselves agree to ~1e-6)
    ok = True
    for i in range(N_EVENTS):
        rx, ry = res[i]
        sm = jnp.array([[2.0 / rx, 2.0 / ry, 2.0 / dt[i], 1.0]], jnp.float32)
        off = jnp.array([[-1.0, -1.0, -1.0, 0.0]], jnp.float32)
        ref = _ref_event(data[i], sm, off, params)                  # (1, 2)
        ok &= bool(jnp.allclose(out[i], ref[0], atol=1e-3, rtol=1e-3))

    if ok:
        print("KERNEL_OK")
    else:
        print("MISMATCH")
</pallas_src>

<mosaic_0001>
module attributes {stable_mosaic.version = 11 : i64} {
  func.func @_single_step_kernel(%arg0: memref<24x4xf32, #tpu.memory_space<vmem>>, %arg1: memref<4x32xf32, #tpu.memory_space<vmem>>, %arg2: memref<1x32xf32, #tpu.memory_space<vmem>>, %arg3: memref<2x32x288xf32, #tpu.memory_space<vmem>>, %arg4: memref<2x3x16xf32, #tpu.memory_space<vmem>>, %arg5: memref<2x1x16xf32, #tpu.memory_space<vmem>>, %arg6: memref<2x16x160xf32, #tpu.memory_space<vmem>>, %arg7: memref<2x1x32xf32, #tpu.memory_space<vmem>>, %arg8: memref<2x1x128xf32, #tpu.memory_space<vmem>>, %arg9: memref<2x128x32xf32, #tpu.memory_space<vmem>>, %arg10: memref<2x1x32xf32, #tpu.memory_space<vmem>>, %arg11: memref<32x2xf32, #tpu.memory_space<vmem>>, %arg12: memref<1x2xf32, #tpu.memory_space<vmem>>, %arg13: memref<3x2xf32, #tpu.memory_space<vmem>>) attributes {dimension_semantics = [], scalar_prefetch = 0 : i64, scratch_operands = 0 : i64, tpu.core_type = #tpu.core_type<tc>} {
    %c0 = arith.constant 0 : index
    %c0_0 = arith.constant 0 : index
    %0 = vector.load %arg0[%c0, %c0_0] : memref<24x4xf32, #tpu.memory_space<vmem>>, vector<24x4xf32>
    %c0_1 = arith.constant 0 : index
    %c0_2 = arith.constant 0 : index
    %1 = vector.load %arg2[%c0_1, %c0_2] : memref<1x32xf32, #tpu.memory_space<vmem>>, vector<1x32xf32>
    %2 = vector.extract_strided_slice %0 {offsets = [0, 0], sizes = [24, 1], strides = [1, 1]} : vector<24x4xf32> to vector<24x1xf32>
    %c0_3 = arith.constant 0 : index
    %c0_4 = arith.constant 0 : index
    %3 = vector.load %arg1[%c0_3, %c0_4] : memref<4x32xf32, #tpu.memory_space<vmem>>, vector<1x32xf32>
    %4 = vector.broadcast %2 : vector<24x1xf32> to vector<24x32xf32>
    %5 = vector.broadcast %3 : vector<1x32xf32> to vector<24x32xf32>
    %6 = arith.mulf %4, %5 : vector<24x32xf32>
    %7 = vector.broadcast %1 : vector<1x32xf32> to vector<24x32xf32>
    %8 = arith.addf %7, %6 : vector<24x32xf32>
    %9 = vector.extract_strided_slice %0 {offsets = [0, 1], sizes = [24, 1], strides = [1, 1]} : vector<24x4xf32> to vector<24x1xf32>
    %c1 = arith.constant 1 : index
    %c0_5 = arith.constant 0 : index
    %10 = vector.load %arg1[%c1, %c0_5] : memref<4x32xf32, #tpu.memory_space<vmem>>, vector<1x32xf32>
    %11 = vector.broadcast %9 : vector<24x1xf32> to vector<24x32xf32>
    %12 = vector.broadcast %10 : vector<1x32xf32> to vector<24x32xf32>
    %13 = arith.mulf %11, %12 : vector<24x32xf32>
    %14 = arith.addf %8, %13 : vector<24x32xf32>
    %15 = vector.extract_strided_slice %0 {offsets = [0, 2], sizes = [24, 1], strides = [1, 1]} : vector<24x4xf32> to vector<24x1xf32>
    %c2 = arith.constant 2 : index
    %c0_6 = arith.constant 0 : index
    %16 = vector.load %arg1[%c2, %c0_6] : memref<4x32xf32, #tpu.memory_space<vmem>>, vector<1x32xf32>
    %17 = vector.broadcast %15 : vector<24x1xf32> to vector<24x32xf32>
    %18 = vector.broadcast %16 : vector<1x32xf32> to vector<24x32xf32>
    %19 = arith.mulf %17, %18 : vector<24x32xf32>
    %20 = arith.addf %14, %19 : vector<24x32xf32>
    %21 = vector.extract_strided_slice %0 {offsets = [0, 3], sizes = [24, 1], strides = [1, 1]} : vector<24x4xf32> to vector<24x1xf32>
    %c3 = arith.constant 3 : index
    %c0_7 = arith.constant 0 : index
    %22 = vector.load %arg1[%c3, %c0_7] : memref<4x32xf32, #tpu.memory_space<vmem>>, vector<1x32xf32>
    %23 = vector.broadcast %21 : vector<24x1xf32> to vector<24x32xf32>
    %24 = vector.broadcast %22 : vector<1x32xf32> to vector<24x32xf32>
    %25 = arith.mulf %23, %24 : vector<24x32xf32>
    %26 = arith.addf %20, %25 : vector<24x32xf32>
    %c0_8 = arith.constant 0 : index
    %c0_9 = arith.constant 0 : index
    %c0_10 = arith.constant 0 : index
    %27 = vector.load %arg3[%c0_8, %c0_9, %c0_10] : memref<2x32x288xf32, #tpu.memory_space<vmem>>, vector<1x32x288xf32>
    %28 = vector.shape_cast %27 : vector<1x32x288xf32> to vector<32x288xf32>
    %cst = arith.constant dense<0.000000e+00> : vector<24x288xf32>
    %29 = tpu.matmul %26, %28, %cst {dimension_numbers = #tpu.dot_dimension_numbers<[1], [0], [0], [1], [0, 0, 1, 1], [], []>} : vector<24x32xf32>, vector<32x288xf32>, vector<24x288xf32> -> vector<24x288xf32>
    %30 = vector.extract_strided_slice %29 {offsets = [0, 0], sizes = [24, 128], strides = [1, 1]} : vector<24x288xf32> to vector<24x128xf32>
    %31 = vector.extract_strided_slice %29 {offsets = [0, 128], sizes = [24, 128], strides = [1, 1]} : vector<24x288xf32> to vector<24x128xf32>
    %32 = vector.extract_strided_slice %29 {offsets = [0, 256], sizes = [24, 32], strides = [1, 1]} : vector<24x288xf32> to vector<24x32xf32>
    %c0_11 = arith.constant 0 : index
    %c0_12 = arith.constant 0 : index
    %c0_13 = arith.constant 0 : index
    %33 = vector.load %arg4[%c0_11, %c0_12, %c0_13] : memref<2x3x16xf32, #tpu.memory_space<vmem>>, vector<1x3x16xf32>
    %34 = vector.shape_cast %33 : vector<1x3x16xf32> to vector<3x16xf32>
    %35 = vector.extract_strided_slice %0 {offsets = [0, 0], sizes = [24, 1], strides = [1, 1]} : vector<24x4xf32> to vector<24x1xf32>
    %36 = vector.extract_strided_slice %34 {offsets = [0, 0], sizes = [1, 16], strides = [1, 1]} : vector<3x16xf32> to vector<1x16xf32>
    %37 = vector.broadcast %35 : vector<24x1xf32> to vector<24x16xf32>
    %38 = vector.broadcast %36 : vector<1x16xf32> to vector<24x16xf32>
    %39 = arith.mulf %37, %38 : vector<24x16xf32>
    %40 = vector.extract_strided_slice %0 {offsets = [0, 1], sizes = [24, 1], strides = [1, 1]} : vector<24x4xf32> to vector<24x1xf32>
    %41 = vector.extract_strided_slice %34 {offsets = [1, 0], sizes = [1, 16], strides = [1, 1]} : vector<3x16xf32> to vector<1x16xf32>
    %42 = vector.broadcast %40 : vector<24x1xf32> to vector<24x16xf32>
    %43 = vector.broadcast %41 : vector<1x16xf32> to vector<24x16xf32>
    %44 = arith.mulf %42, %43 : vector<24x16xf32>
    %45 = arith.addf %39, %44 : vector<24x16xf32>
    %46 = vector.extract_strided_slice %0 {offsets = [0, 2], sizes = [24, 1], strides = [1, 1]} : vector<24x4xf32> to vector<24x1xf32>
    %47 = vector.extract_strided_slice %34 {offsets = [2, 0], sizes = [1, 16], strides = [1, 1]} : vector<3x16xf32> to vector<1x16xf32>
    %48 = vector.broadcast %46 : vector<24x1xf32> to vector<24x16xf32>
    %49 = vector.broadcast %47 : vector<1x16xf32> to vector<24x16xf32>
    %50 = arith.mulf %48, %49 : vector<24x16xf32>
    %51 = arith.addf %45, %50 : vector<24x16xf32>
    %52 = vector.shape_cast %51 : vector<24x16xf32> to vector<3x8x16xf32>
    %53 = vector.shape_cast %52 : vector<3x8x16xf32> to vector<3x8x1x16xf32>
    %54 = vector.shape_cast %52 : vector<3x8x16xf32> to vector<3x1x8x16xf32>
    %55 = vector.broadcast %53 : vector<3x8x1x16xf32> to vector<3x8x8x16xf32>
    %56 = vector.broadcast %54 : vector<3x1x8x16xf32> to vector<3x8x8x16xf32>
    %57 = arith.subf %55, %56 : vector<3x8x8x16xf32>
    %c0_14 = arith.constant 0 : index
    %c0_15 = arith.constant 0 : index
    %c0_16 = arith.constant 0 : index
    %58 = vector.load %arg5[%c0_14, %c0_15, %c0_16] : memref<2x1x16xf32, #tpu.memory_space<vmem>>, vector<1x1x16xf32>
    %59 = vector.shape_cast %58 : vector<1x1x16xf32> to vector<1x16xf32>
    %60 = vector.shape_cast %59 : vector<1x16xf32> to vector<1x1x1x16xf32>
    %61 = vector.broadcast %60 : vector<1x1x1x16xf32> to vector<3x8x8x16xf32>
    %62 = arith.addf %57, %61 : vector<3x8x8x16xf32>
    %cst_17 = arith.constant 0.000000e+00 : f32
    %63 = vector.broadcast %cst_17 : f32 to vector<3x8x8x16xf32>
    %64 = arith.maximumf %62, %63 : vector<3x8x8x16xf32>
    %65 = vector.shape_cast %64 : vector<3x8x8x16xf32> to vector<192x16xf32>
    %c0_18 = arith.constant 0 : index
    %c0_19 = arith.constant 0 : index
    %c0_20 = arith.constant 0 : index
    %66 = vector.load %arg6[%c0_18, %c0_19, %c0_20] : memref<2x16x160xf32, #tpu.memory_space<vmem>>, vector<1x16x160xf32>
    %67 = vector.shape_cast %66 : vector<1x16x160xf32> to vector<16x160xf32>
    %cst_21 = arith.constant dense<0.000000e+00> : vector<192x160xf32>
    %68 = tpu.matmul %65, %67, %cst_21 {dimension_numbers = #tpu.dot_dimension_numbers<[1], [0], [0], [1], [0, 0, 1, 1], [], []>} : vector<192x16xf32>, vector<16x160xf32>, vector<192x160xf32> -> vector<192x160xf32>
    %69 = vector.extract_strided_slice %68 {offsets = [0, 0], sizes = [192, 128], strides = [1, 1]} : vector<192x160xf32> to vector<192x128xf32>
    %70 = vector.extract_strided_slice %68 {offsets = [0, 128], sizes = [192, 32], strides = [1, 1]} : vector<192x160xf32> to vector<192x32xf32>
    %c0_22 = arith.constant 0 : index
    %c0_23 = arith.constant 0 : index
    %c0_24 = arith.constant 0 : index
    %71 = vector.load %arg7[%c0_22, %c0_23, %c0_24] : memref<2x1x32xf32, #tpu.memory_space<vmem>>, vector<1x1x32xf32>
    %72 = vector.shape_cast %71 : vector<1x1x32xf32> to vector<1x32xf32>
    %73 = vector.broadcast %72 : vector<1x32xf32> to vector<192x32xf32>
    %74 = arith.addf %70, %73 : vector<192x32xf32>
    %75 = vector.shape_cast %30 : vector<24x128xf32> to vector<3x8x1x128xf32>
    %76 = vector.shape_cast %31 : vector<24x128xf32> to vector<3x1x8x128xf32>
    %77 = vector.broadcast %75 : vector<3x8x1x128xf32> to vector<3x8x8x128xf32>
    %78 = vector.broadcast %76 : vector<3x1x8x128xf32> to vector<3x8x8x128xf32>
    %79 = arith.subf %77, %78 : vector<3x8x8x128xf32>
    %80 = vector.shape_cast %79 : vector<3x8x8x128xf32> to vector<192x128xf32>
    %81 = arith.addf %80, %69 : vector<192x128xf32>
    %c0_25 = arith.constant 0 : index
    %c0_26 = arith.constant 0 : index
    %c0_27 = arith.constant 0 : index
    %82 = vector.load %arg8[%c0_25, %c0_26, %c0_27] : memref<2x1x128xf32, #tpu.memory_space<vmem>>, vector<1x1x128xf32>
    %83 = vector.shape_cast %82 : vector<1x1x128xf32> to vector<1x128xf32>
    %84 = vector.broadcast %83 : vector<1x128xf32> to vector<192x128xf32>
    %85 = arith.addf %81, %84 : vector<192x128xf32>
    %cst_28 = arith.constant 0.000000e+00 : f32
    %86 = vector.broadcast %cst_28 : f32 to vector<192x128xf32>
    %87 = arith.maximumf %85, %86 : vector<192x128xf32>
    %c0_29 = arith.constant 0 : index
    %c0_30 = arith.constant 0 : index
    %c0_31 = arith.constant 0 : index
    %88 = vector.load %arg9[%c0_29, %c0_30, %c0_31] : memref<2x128x32xf32, #tpu.memory_space<vmem>>, vector<1x128x32xf32>
    %89 = vector.shape_cast %88 : vector<1x128x32xf32> to vector<128x32xf32>
    %cst_32 = arith.constant dense<0.000000e+00> : vector<192x32xf32>
    %90 = tpu.matmul %87, %89, %cst_32 {dimension_numbers = #tpu.dot_dimension_numbers<[1], [0], [0], [1], [0, 0, 1, 1], [], []>} : vector<192x128xf32>, vector<128x32xf32>, vector<192x32xf32> -> vector<192x32xf32>
    %c0_33 = arith.constant 0 : index
    %c0_34 = arith.constant 0 : index
    %c0_35 = arith.constant 0 : index
    %91 = vector.load %arg10[%c0_33, %c0_34, %c0_35] : memref<2x1x32xf32, #tpu.memory_space<vmem>>, vector<1x1x32xf32>
    %92 = vector.shape_cast %91 : vector<1x1x32xf32> to vector<1x32xf32>
    %93 = vector.broadcast %92 : vector<1x32xf32> to vector<192x32xf32>
    %94 = arith.addf %90, %93 : vector<192x32xf32>
    %95 = vector.shape_cast %94 : vector<192x32xf32> to vector<3x8x8x32xf32>
    %cst_36 = arith.constant dense<0xFF800000> : vector<3x8x32xf32>
    %96 = vector.multi_reduction <maximumf>, %95, %cst_36 [2] : vector<3x8x8x32xf32> to vector<3x8x32xf32>
    %97 = vector.shape_cast %96 : vector<3x8x32xf32> to vector<3x8x1x32xf32>
    %98 = vector.broadcast %97 : vector<3x8x1x32xf32> to vector<3x8x8x32xf32>
    %99 = arith.subf %95, %98 : vector<3x8x8x32xf32>
    %100 = math.exp %99 : vector<3x8x8x32xf32>
    %cst_37 = arith.constant dense<0.000000e+00> : vector<3x8x32xf32>
    %101 = vector.multi_reduction <add>, %100, %cst_37 [2] : vector<3x8x8x32xf32> to vector<3x8x32xf32>
    %102 = vector.shape_cast %101 : vector<3x8x32xf32> to vector<3x8x1x32xf32>
    %103 = tpu.reciprocal %102 {approx = true} : vector<3x8x1x32xf32> -> vector<3x8x1x32xf32>
    %104 = vector.broadcast %103 : vector<3x8x1x32xf32> to vector<3x8x8x32xf32>
    %105 = arith.mulf %100, %104 : vector<3x8x8x32xf32>
    %106 = vector.shape_cast %32 : vector<24x32xf32> to vector<3x1x8x32xf32>
    %107 = vector.shape_cast %74 : vector<192x32xf32> to vector<3x8x8x32xf32>
    %108 = vector.broadcast %106 : vector<3x1x8x32xf32> to vector<3x8x8x32xf32>
    %109 = arith.addf %108, %107 : vector<3x8x8x32xf32>
    %110 = arith.mulf %105, %109 : vector<3x8x8x32xf32>
    %cst_38 = arith.constant dense<0.000000e+00> : vector<3x8x32xf32>
    %111 = vector.multi_reduction <add>, %110, %cst_38 [2] : vector<3x8x8x32xf32> to vector<3x8x32xf32>
    %112 = vector.shape_cast %111 : vector<3x8x32xf32> to vector<24x32xf32>
    %113 = arith.addf %112, %26 : vector<24x32xf32>
    %c1_39 = arith.constant 1 : index
    %c0_40 = arith.constant 0 : index
    %c0_41 = arith.constant 0 : index
    %114 = vector.load %arg3[%c1_39, %c0_40, %c0_41] : memref<2x32x288xf32, #tpu.memory_space<vmem>>, vector<1x32x288xf32>
    %115 = vector.shape_cast %114 : vector<1x32x288xf32> to vector<32x288xf32>
    %cst_42 = arith.constant dense<0.000000e+00> : vector<24x288xf32>
    %116 = tpu.matmul %113, %115, %cst_42 {dimension_numbers = #tpu.dot_dimension_numbers<[1], [0], [0], [1], [0, 0, 1, 1], [], []>} : vector<24x32xf32>, vector<32x288xf32>, vector<24x288xf32> -> vector<24x288xf32>
    %117 = vector.extract_strided_slice %116 {offsets = [0, 0], sizes = [24, 128], strides = [1, 1]} : vector<24x288xf32> to vector<24x128xf32>
    %118 = vector.extract_strided_slice %116 {offsets = [0, 128], sizes = [24, 128], strides = [1, 1]} : vector<24x288xf32> to vector<24x128xf32>
    %119 = vector.extract_strided_slice %116 {offsets = [0, 256], sizes = [24, 32], strides = [1, 1]} : vector<24x288xf32> to vector<24x32xf32>
    %c1_43 = arith.constant 1 : index
    %c0_44 = arith.constant 0 : index
    %c0_45 = arith.constant 0 : index
    %120 = vector.load %arg4[%c1_43, %c0_44, %c0_45] : memref<2x3x16xf32, #tpu.memory_space<vmem>>, vector<1x3x16xf32>
    %121 = vector.shape_cast %120 : vector<1x3x16xf32> to vector<3x16xf32>
    %122 = vector.extract_strided_slice %0 {offsets = [0, 0], sizes = [24, 1], strides = [1, 1]} : vector<24x4xf32> to vector<24x1xf32>
    %123 = vector.extract_strided_slice %121 {offsets = [0, 0], sizes = [1, 16], strides = [1, 1]} : vector<3x16xf32> to vector<1x16xf32>
    %124 = vector.broadcast %122 : vector<24x1xf32> to vector<24x16xf32>
    %125 = vector.broadcast %123 : vector<1x16xf32> to vector<24x16xf32>
    %126 = arith.mulf %124, %125 : vector<24x16xf32>
    %127 = vector.extract_strided_slice %0 {offsets = [0, 1], sizes = [24, 1], strides = [1, 1]} : vector<24x4xf32> to vector<24x1xf32>
    %128 = vector.extract_strided_slice %121 {offsets = [1, 0], sizes = [1, 16], strides = [1, 1]} : vector<3x16xf32> to vector<1x16xf32>
    %129 = vector.broadcast %127 : vector<24x1xf32> to vector<24x16xf32>
    %130 = vector.broadcast %128 : vector<1x16xf32> to vector<24x16xf32>
    %131 = arith.mulf %129, %130 : vector<24x16xf32>
    %132 = arith.addf %126, %131 : vector<24x16xf32>
    %133 = vector.extract_strided_slice %0 {offsets = [0, 2], sizes = [24, 1], strides = [1, 1]} : vector<24x4xf32> to vector<24x1xf32>
    %134 = vector.extract_strided_slice %121 {offsets = [2, 0], sizes = [1, 16], strides = [1, 1]} : vector<3x16xf32> to vector<1x16xf32>
    %135 = vector.broadcast %133 : vector<24x1xf32> to vector<24x16xf32>
    %136 = vector.broadcast %134 : vector<1x16xf32> to vector<24x16xf32>
    %137 = arith.mulf %135, %136 : vector<24x16xf32>
    %138 = arith.addf %132, %137 : vector<24x16xf32>
    %139 = vector.shape_cast %138 : vector<24x16xf32> to vector<3x8x16xf32>
    %140 = vector.shape_cast %139 : vector<3x8x16xf32> to vector<3x8x1x16xf32>
    %141 = vector.shape_cast %139 : vector<3x8x16xf32> to vector<3x1x8x16xf32>
    %142 = vector.broadcast %140 : vector<3x8x1x16xf32> to vector<3x8x8x16xf32>
    %143 = vector.broadcast %141 : vector<3x1x8x16xf32> to vector<3x8x8x16xf32>
    %144 = arith.subf %142, %143 : vector<3x8x8x16xf32>
    %c1_46 = arith.constant 1 : index
    %c0_47 = arith.constant 0 : index
    %c0_48 = arith.constant 0 : index
    %145 = vector.load %arg5[%c1_46, %c0_47, %c0_48] : memref<2x1x16xf32, #tpu.memory_space<vmem>>, vector<1x1x16xf32>
    %146 = vector.shape_cast %145 : vector<1x1x16xf32> to vector<1x16xf32>
    %147 = vector.shape_cast %146 : vector<1x16xf32> to vector<1x1x1x16xf32>
    %148 = vector.broadcast %147 : vector<1x1x1x16xf32> to vector<3x8x8x16xf32>
    %149 = arith.addf %144, %148 : vector<3x8x8x16xf32>
    %cst_49 = arith.constant 0.000000e+00 : f32
    %150 = vector.broadcast %cst_49 : f32 to vector<3x8x8x16xf32>
    %151 = arith.maximumf %149, %150 : vector<3x8x8x16xf32>
    %152 = vector.shape_cast %151 : vector<3x8x8x16xf32> to vector<192x16xf32>
    %c1_50 = arith.constant 1 : index
    %c0_51 = arith.constant 0 : index
    %c0_52 = arith.constant 0 : index
    %153 = vector.load %arg6[%c1_50, %c0_51, %c0_52] : memref<2x16x160xf32, #tpu.memory_space<vmem>>, vector<1x16x160xf32>
    %154 = vector.shape_cast %153 : vector<1x16x160xf32> to vector<16x160xf32>
    %cst_53 = arith.constant dense<0.000000e+00> : vector<192x160xf32>
    %155 = tpu.matmul %152, %154, %cst_53 {dimension_numbers = #tpu.dot_dimension_numbers<[1], [0], [0], [1], [0, 0, 1, 1], [], []>} : vector<192x16xf32>, vector<16x160xf32>, vector<192x160xf32> -> vector<192x160xf32>
    %156 = vector.extract_strided_slice %155 {offsets = [0, 0], sizes = [192, 128], strides = [1, 1]} : vector<192x160xf32> to vector<192x128xf32>
    %157 = vector.extract_strided_slice %155 {offsets = [0, 128], sizes = [192, 32], strides = [1, 1]} : vector<192x160xf32> to vector<192x32xf32>
    %c1_54 = arith.constant 1 : index
    %c0_55 = arith.constant 0 : index
    %c0_56 = arith.constant 0 : index
    %158 = vector.load %arg7[%c1_54, %c0_55, %c0_56] : memref<2x1x32xf32, #tpu.memory_space<vmem>>, vector<1x1x32xf32>
    %159 = vector.shape_cast %158 : vector<1x1x32xf32> to vector<1x32xf32>
    %160 = vector.broadcast %159 : vector<1x32xf32> to vector<192x32xf32>
    %161 = arith.addf %157, %160 : vector<192x32xf32>
    %162 = vector.shape_cast %117 : vector<24x128xf32> to vector<3x8x1x128xf32>
    %163 = vector.shape_cast %118 : vector<24x128xf32> to vector<3x1x8x128xf32>
    %164 = vector.broadcast %162 : vector<3x8x1x128xf32> to vector<3x8x8x128xf32>
    %165 = vector.broadcast %163 : vector<3x1x8x128xf32> to vector<3x8x8x128xf32>
    %166 = arith.subf %164, %165 : vector<3x8x8x128xf32>
    %167 = vector.shape_cast %166 : vector<3x8x8x128xf32> to vector<192x128xf32>
    %168 = arith.addf %167, %156 : vector<192x128xf32>
    %c1_57 = arith.constant 1 : index
    %c0_58 = arith.constant 0 : index
    %c0_59 = arith.constant 0 : index
    %169 = vector.load %arg8[%c1_57, %c0_58, %c0_59] : memref<2x1x128xf32, #tpu.memory_space<vmem>>, vector<1x1x128xf32>
    %170 = vector.shape_cast %169 : vector<1x1x128xf32> to vector<1x128xf32>
    %171 = vector.broadcast %170 : vector<1x128xf32> to vector<192x128xf32>
    %172 = arith.addf %168, %171 : vector<192x128xf32>
    %cst_60 = arith.constant 0.000000e+00 : f32
    %173 = vector.broadcast %cst_60 : f32 to vector<192x128xf32>
    %174 = arith.maximumf %172, %173 : vector<192x128xf32>
    %c1_61 = arith.constant 1 : index
    %c0_62 = arith.constant 0 : index
    %c0_63 = arith.constant 0 : index
    %175 = vector.load %arg9[%c1_61, %c0_62, %c0_63] : memref<2x128x32xf32, #tpu.memory_space<vmem>>, vector<1x128x32xf32>
    %176 = vector.shape_cast %175 : vector<1x128x32xf32> to vector<128x32xf32>
    %cst_64 = arith.constant dense<0.000000e+00> : vector<192x32xf32>
    %177 = tpu.matmul %174, %176, %cst_64 {dimension_numbers = #tpu.dot_dimension_numbers<[1], [0], [0], [1], [0, 0, 1, 1], [], []>} : vector<192x128xf32>, vector<128x32xf32>, vector<192x32xf32> -> vector<192x32xf32>
    %c1_65 = arith.constant 1 : index
    %c0_66 = arith.constant 0 : index
    %c0_67 = arith.constant 0 : index
    %178 = vector.load %arg10[%c1_65, %c0_66, %c0_67] : memref<2x1x32xf32, #tpu.memory_space<vmem>>, vector<1x1x32xf32>
    %179 = vector.shape_cast %178 : vector<1x1x32xf32> to vector<1x32xf32>
    %180 = vector.broadcast %179 : vector<1x32xf32> to vector<192x32xf32>
    %181 = arith.addf %177, %180 : vector<192x32xf32>
    %182 = vector.shape_cast %181 : vector<192x32xf32> to vector<3x8x8x32xf32>
    %cst_68 = arith.constant dense<0xFF800000> : vector<3x8x32xf32>
    %183 = vector.multi_reduction <maximumf>, %182, %cst_68 [2] : vector<3x8x8x32xf32> to vector<3x8x32xf32>
    %184 = vector.shape_cast %183 : vector<3x8x32xf32> to vector<3x8x1x32xf32>
    %185 = vector.broadcast %184 : vector<3x8x1x32xf32> to vector<3x8x8x32xf32>
    %186 = arith.subf %182, %185 : vector<3x8x8x32xf32>
    %187 = math.exp %186 : vector<3x8x8x32xf32>
    %cst_69 = arith.constant dense<0.000000e+00> : vector<3x8x32xf32>
    %188 = vector.multi_reduction <add>, %187, %cst_69 [2] : vector<3x8x8x32xf32> to vector<3x8x32xf32>
    %189 = vector.shape_cast %188 : vector<3x8x32xf32> to vector<3x8x1x32xf32>
    %190 = tpu.reciprocal %189 {approx = true} : vector<3x8x1x32xf32> -> vector<3x8x1x32xf32>
    %191 = vector.broadcast %190 : vector<3x8x1x32xf32> to vector<3x8x8x32xf32>
    %192 = arith.mulf %187, %191 : vector<3x8x8x32xf32>
    %193 = vector.shape_cast %119 : vector<24x32xf32> to vector<3x1x8x32xf32>
    %194 = vector.shape_cast %161 : vector<192x32xf32> to vector<3x8x8x32xf32>
    %195 = vector.broadcast %193 : vector<3x1x8x32xf32> to vector<3x8x8x32xf32>
    %196 = arith.addf %195, %194 : vector<3x8x8x32xf32>
    %197 = arith.mulf %192, %196 : vector<3x8x8x32xf32>
    %cst_70 = arith.constant dense<0.000000e+00> : vector<3x8x32xf32>
    %198 = vector.multi_reduction <add>, %197, %cst_70 [2] : vector<3x8x8x32xf32> to vector<3x8x32xf32>
    %199 = vector.shape_cast %198 : vector<3x8x32xf32> to vector<24x32xf32>
    %200 = arith.addf %199, %113 : vector<24x32xf32>
    %201 = vector.shape_cast %200 : vector<24x32xf32> to vector<3x8x32xf32>
    %cst_71 = arith.constant dense<0xFF800000> : vector<3x32xf32>
    %202 = vector.multi_reduction <maximumf>, %201, %cst_71 [1] : vector<3x8x32xf32> to vector<3x32xf32>
    %c0_72 = arith.constant 0 : index
    %c0_73 = arith.constant 0 : index
    %203 = vector.load %arg11[%c0_72, %c0_73] : memref<32x2xf32, #tpu.memory_space<vmem>>, vector<32x2xf32>
    %cst_74 = arith.constant dense<0.000000e+00> : vector<3x2xf32>
    %204 = tpu.matmul %202, %203, %cst_74 {dimension_numbers = #tpu.dot_dimension_numbers<[1], [0], [0], [1], [0, 0, 1, 1], [], []>} : vector<3x32xf32>, vector<32x2xf32>, vector<3x2xf32> -> vector<3x2xf32>
    %c0_75 = arith.constant 0 : index
    %c0_76 = arith.constant 0 : index
    %205 = vector.load %arg12[%c0_75, %c0_76] : memref<1x2xf32, #tpu.memory_space<vmem>>, vector<1x2xf32>
    %206 = vector.broadcast %205 : vector<1x2xf32> to vector<3x2xf32>
    %207 = arith.addf %204, %206 : vector<3x2xf32>
    %c0_77 = arith.constant 0 : index
    %c0_78 = arith.constant 0 : index
    %208 = vector.load %arg13[%c0_77, %c0_78] : memref<3x2xf32, #tpu.memory_space<vmem>>, vector<3x2xf32>
    tpu.vector_store %arg13[%c0_77, %c0_78], %207 {strides = array<i32>} : memref<3x2xf32, #tpu.memory_space<vmem>>, vector<3x2xf32>,
    return
  }
}

</mosaic_0001>

<bundles_post_ra>
// kernel: _run.1
= control target key start
LH: loop header
LB: loop body
LE: loop exit
PB: predicated region body
PF: predicated region fallthrough
CT: control target
= control target key end

     0   :  { %v5330_v0 = vmov 0   ;;  %v335_v3 = vlaneseq  ;;  %v5331_v7 = vmov 2   ;;  %v5332_v8 = vmov 3   ;;  %s7771_s0 = inlined_call_operand.vmem [shape: f32[24,4], index: 0, kind: input, shape index: {}]   ;;  %s7772_s4 = inlined_call_operand.vmem [shape: f32[2,3,16], index: 4, kind: input, shape index: {}]   ;;  %s7773_s3 = inlined_call_operand.vmem [shape: f32[2,32,288], index: 3, kind: input, shape index: {}]   ;;  %s7774_s1 = inlined_call_operand.vmem [shape: f32[4,32], index: 1, kind: input, shape index: {}]   ;;  %s7775_s2 = inlined_call_operand.vmem [shape: f32[1,32], index: 2, kind: input, shape index: {}]   ;;  %s7776_s6 = inlined_call_operand.vmem [shape: f32[2,16,160], index: 6, kind: input, shape index: {}]   ;;  %s7777_s5 = inlined_call_operand.vmem [shape: f32[2,1,16], index: 5, kind: input, shape index: {}]   ;;  %s7778_s9 = inlined_call_operand.vmem [shape: f32[2,128,32], index: 9, kind: input, shape index: {}]   ;;  %s7779_s7 = inlined_call_operand.vmem [shape: f32[2,1,32], index: 7, kind: input, shape index: {}]   ;;  %s7780_s8 = inlined_call_operand.vmem [shape: f32[2,1,128], index: 8, kind: input, shape index: {}]   ;;  %s7781_s10 = inlined_call_operand.vmem [shape: f32[2,1,32], index: 10, kind: input, shape index: {}]   ;;  %s7782_s11 = inlined_call_operand.vmem [shape: f32[32,2], index: 11, kind: input, shape index: {}]   ;;  %s7783_s12 = inlined_call_operand.vmem [shape: f32[1,2], index: 12, kind: input, shape index: {}]   ;;  %s7784_s13 = inlined_call_operand.vmem [shape: f32[3,2], index: 13, kind: output, shape index: {}]  }
   0x1   :  { %5124 = vset.pattern.permute.xlu1 %v5330_v0  ;;  %5123 = vset.pattern.permute.xlu0 %v5330_v0  ;;  %v45_v1 = vld [vmem:[%s7771_s0 + $0x8] sm:$0xff]  ;;  %v44_v2 = vld [vmem:[%s7771_s0] sm:$0xff]  ;;  %v159_v12 = vld [vmem:[%s7773_s3 + $0x50] sm:$0xff]  ;;  %v5333_v15 = vmov 1   ;;  %v7785_v22 = vmov 0.0   ;;  %vm161_vm0 = vcmask 261120  }
   0x2   :  { %56 = vperm.xlu1 %5124, %v45_v1   ;;  %51 = vperm.xlu0 %5123, %v44_v2   ;;  %v5413_v4 = vshrl.u32 %v335_v3, 7  ;;  %v4781_v9 = vld [vmem:[%s7772_s4 + $0x4] sm:$0x7]  ;;  %v158_v13 = vld [vmem:[%s7773_s3 + $0x48] sm:$0xff]  ;;  %v156_v14 = vld [vmem:[%s7773_s3 + $0x38] sm:$0xff]  ;;  %vm5336_vm1 = vmmov 0  }
   0x3   :  { %195 = vmatprep.subr.mxu0 %v159_v12  ;;  %v155_v16 = vld [vmem:[%s7773_s3 + $0x30] sm:$0xff]  ;;  %v153_v17 = vld [vmem:[%s7773_s3 + $0x20] sm:$0xff]  ;;  %v152_v19 = vld [vmem:[%s7773_s3 + $0x18] sm:$0xff]  ;;  %235 = vmatprep.mubr.f32.mxu0 %v7785_v22  ;;  %v5335_v59 = vmov 1966171168   ;;  %vm715_vm2 = vcmask 130048  }
   0x4   :  { %v354_v5 = vsub.s32 2, %v5413_v4  ;;  %v344_v6 = vsub.s32 1, %v5413_v4  ;;  %196 = vmatpush1.msra.mxu0 %v158_v13  ;;  %v46_v18 = vld [vmem:[%s7771_s0 + $0x10] sm:$0xff]  ;;  %v150_v20 = vld [vmem:[%s7773_s3 + $0x8] sm:$0xff]  ;;  %v149_v21 = vld [vmem:[%s7773_s3] sm:$0xff]  ;;  %v5458_v23 = vsub.s32 0, %v5413_v4  ;;  %v367_v60 = vunpack.c.l.s4 %v5335_v59 }
   0x5   :  { %197 = vmatprep.subr.mxu0 %v156_v14  ;;  %v4724_v29 = vld [vmem:[%s7774_s1] ss:$0 sm:$0xff]  ;;  %v4726_v35 = vld [vmem:[%s7774_s1 + $0x1] ss:$0 sm:$0xff]  ;;  %v5480_v37 = vld [vmem:[%s7774_s1 + $0x2] ss:$0 sm:$0xff] }
   0x6   :  { %5125 = vset.pattern.permute.xlu1 %v5331_v7  ;;  %5127 = vset.pattern.permute.xlu0 %v5332_v8  ;;  %v5422_v10 = vrot.slane %v4781_v9, %v354_v5  ;;  %v5426_v11 = vrot.slane %v4781_v9, %v344_v6  ;;  %7818 = vst [vmem:[#allocation2_spill] sm:$0xff] %v5458_v23  ;;  %v5471_v34 = vld [vmem:[%s7775_s2] ss:$0 sm:$0xff]  ;;  %v5485_v38 = vld [vmem:[%s7774_s1 + $0x3] ss:$0 sm:$0xff]  ;;  %v160_v63 = vld [vmem:[%s7773_s3 + $0x58] sm:$0xff]  ;;  %v368_v12 = vunpack.c.0.s8 %v367_v60 }
   0x7   :  { %105 = vperm.xlu1 %5125, %v44_v2   ;;  %128 = vperm.xlu0 %5127, %v44_v2   ;;  %v2610_v24 = vrot.slane %v4781_v9, %v5458_v23  ;;  %v334_v41 = vld [vmem:[%s7772_s4] sm:$0x7]  ;;  %v154_v14 = vld [vmem:[%s7773_s3 + $0x28] sm:$0xff]  ;;  %vm2388_vm3 = vcmask 1041409   ;;  %vm2391_vm4 = vcmask 1042434   ;;  %vm2394_vm5 = vcmask 1043459  }
   0x8   :  { %198 = vmatpush1.msra.mxu0 %v155_v16  ;;  %v5496_v44 = vrot.slane %v334_v41, %v344_v6  ;;  %v5502_v50 = vrot.slane %v334_v41, %v5458_v23  ;;  %vm2397_vm6 = vcmask 1044484   ;;  %vm2400_vm7 = vcmask 1045509  }
   0x9   :  { %199 = vmatprep.subr.mxu0 %v153_v17  ;;  %vm2403_vm8 = vcmask 1046534   ;;  %vm2406_vm9 = vcmask 1047559   ;;  %vm4582_vm10 = vcmask 253952   ;;  %vm4718_vm11 = vcmask 10240  }
   0xa   :  { %200 = vmatpush1.msra.mxu0 %v152_v19  ;;  %v151_v19 = vld [vmem:[%s7773_s3 + $0x10] sm:$0xff] }
   0xb   :  { %5126 = vset.pattern.permute.xlu1 %v5333_v15  ;;  %5128 = vset.pattern.permute.xlu0 %v5333_v15 }
   0xc   :  { %86 = vperm.xlu1 %5126, %v45_v1   ;;  %82 = vperm.xlu0 %5128, %v44_v2  }
   0xd   :  { %201 = vmatprep.subr.mxu0 %v150_v20 }
   0xe   :  { %202 = vmatpush1.msra.mxu0 %v149_v21 }
   0xf   :  { %4935 = vmatprep.subr.mxu0 %v7785_v22 }
  0x10   :  { %5129 = vset.pattern.permute.xlu1 %v5330_v0  ;;  %90 = vperm.xlu0 %5128, %v46_v18  }
  0x11   :  { %61 = vperm.xlu1 %5129, %v46_v18  }
  0x14   :  { %5133 = vset.pattern.permute.xlu0 %v5332_v8 }
  0x15   :  { %5130 = vset.pattern.permute.xlu1 %v5331_v7  ;;  %136 = vperm.xlu0 %5133, %v46_v18  }
  0x16   :  { %109 = vperm.xlu1 %5130, %v45_v1  }
  0x1a   :  { %5131 = vset.pattern.permute.xlu1 %v5332_v8  ;;  %v5524_v8 = vrot.slane %v334_v41, %v354_v5 }
  0x1b   :  { %132 = vperm.xlu1 %5131, %v45_v1  }
  0x1f   :  { %5132 = vset.pattern.permute.xlu1 %v5331_v7  ;;  %v157_v7 = vld [vmem:[%s7773_s3 + $0x40] sm:$0xff] }
  0x20   :  { %113 = vperm.xlu1 %5132, %v46_v18  }
  0x7d   :  { %v5461_v25 = vpop.permute.xlu1 %56  ;;  %v52_v26 = vpop.permute.xlu0 %51 }
  0x7e   :  { %v2612_v27 = vmul.f32 %v2610_v24, %v5461_v25  ;;  %v2611_v28 = vmul.f32 %v2610_v24, %v52_v26  ;;  %v68_v30 = vmul.f32 %v4724_v29, %v52_v26  ;;  %v69_v0 = vmul.f32 %v4724_v29, %v5461_v25 }
  0x7f   :  { %v339_v1 = vmul.f32 %v5502_v50, %v52_v26  ;;  %v5550_v26 = vsub.s32 %v368_v12, %v5413_v4 }
  0x80   :  { %v77_v36 = vadd.f32 %v5471_v34, %v68_v30  ;;  %v78_v5 = vadd.f32 %v5471_v34, %v69_v0  ;;  %v340_v0 = vmul.f32 %v5502_v50, %v5461_v25 }
  0x81   :  { %7821 = vst [vmem:[#allocation5_spill] sm:$0xff] %v5550_v26 }
  0x82   :  { %v106_v31 = vpop.permute.xlu1 %105  ;;  %v129_v32 = vpop.permute.xlu0 %128 }
  0x83   :  { %v2628_v33 = vmul.f32 %v5422_v10, %v106_v31  ;;  %v120_v46 = vmul.f32 %v5480_v37, %v106_v31  ;;  %v143_v47 = vmul.f32 %v5485_v38, %v129_v32  ;;  %v356_v20 = vmul.f32 %v5524_v8, %v106_v31 }
  0x87   :  { %v5487_v39 = vpop.permute.xlu1 %86  ;;  %v83_v40 = vpop.permute.xlu0 %82 }
  0x88   :  { %v2619_v42 = vmul.f32 %v5426_v11, %v5487_v39  ;;  %v97_v43 = vmul.f32 %v4726_v35, %v83_v40  ;;  %v2618_v45 = vmul.f32 %v5426_v11, %v83_v40  ;;  %v346_v2 = vmul.f32 %v5496_v44, %v83_v40 }
  0x89   :  { %v98_v9 = vmul.f32 %v4726_v35, %v5487_v39  ;;  %v347_v59 = vmul.f32 %v5496_v44, %v5487_v39 }
  0x8a   :  { %v2622_v48 = vadd.f32 %v2619_v42, %v2612_v27  ;;  %v100_v49 = vadd.f32 %v97_v43, %v77_v36  ;;  %v2621_v51 = vadd.f32 %v2618_v45, %v2611_v28  ;;  %v349_v15 = vadd.f32 %v346_v2, %v339_v1 }
  0x8b   :  { %v91_v52 = vpop.permute.xlu0 %90  ;;  %v101_v21 = vadd.f32 %v98_v9, %v78_v5 }
  0x8c   :  { %v123_v53 = vadd.f32 %v120_v46, %v100_v49  ;;  %v62_v54 = vpop.permute.xlu1 %61  ;;  %v348_v55 = vmul.f32 %v5496_v44, %v91_v52  ;;  %v2620_v56 = vmul.f32 %v5426_v11, %v91_v52  ;;  %v5506_v57 = vadd.f32 %v2628_v33, %v2621_v51 }
  0x8d   :  { %v341_v58 = vmul.f32 %v5502_v50, %v62_v54  ;;  %v2613_v62 = vmul.f32 %v2610_v24, %v62_v54  ;;  %v70_v16 = vmul.f32 %v4724_v29, %v62_v54  ;;  %v714_v24 = vld [vmem:[%s7776_s6 + $0x18] sm:$0xff]  ;;  %v99_v27 = vmul.f32 %v4726_v35, %v91_v52 }
  0x8e   :  { %7819 = vst [vmem:[#allocation3_spill] sm:$0xff] %v5506_v57  ;;  %v5509_v61 = vadd.f32 %v143_v47, %v123_v53  ;;  %v5553_v29 = vadd.f32 %v356_v20, %v349_v15  ;;  %v712_v53 = vld [vmem:[%s7776_s6 + $0x8] sm:$0xff] }
  0x8f   :  { %v351_v3 = vadd.f32 %v348_v55, %v341_v58  ;;  %v2623_v6 = vadd.f32 %v2620_v56, %v2613_v62  ;;  %v79_v30 = vadd.f32 %v5471_v34, %v70_v16  ;;  %v711_v55 = vld [vmem:[%s7776_s6] sm:$0xff] }
  0x90   :  { %4729 = vmatmul.mubr.msk.f32.vlgmr.msra.gmra.mxu0 %vm161_vm0, %v5509_v61  ;;  %v137_v36 = vpop.permute.xlu0 %136  ;;  %v372_v4 = vrot.slane %v5553_v29, %v5550_v26  ;;  %v365_v54 = vcombine.high %v5553_v29, %v5553_v29  ;;  %v5605_v62 = vld [vmem:[%s7777_s5] ss:$0 sm:$0xff] }
  0x91   :  { %v5527_v11 = vpop.permute.xlu1 %109  ;;  %241 = vmatprep.mubr.f32.mxu0 %v7785_v22  ;;  %4936 = vmatpush3.msra.mxu0 %v160_v63  ;;  %v102_v40 = vadd.f32 %v99_v27, %v79_v30  ;;  %v145_v43 = vmul.f32 %v5485_v38, %v137_v36 }
  0x92   :  { %v2629_v13 = vmul.f32 %v5422_v10, %v5527_v11  ;;  %4937 = vmatprep.subr.mxu0 %v7785_v22  ;;  %v121_v17 = vmul.f32 %v5480_v37, %v5527_v11  ;;  %v380_v51 = vcombine.high %v372_v4, %v372_v4  ;;  %v379_v39 = vrot.slane %v365_v54, %v5550_v26 }
  0x93   :  { %4938 = vmatpush3.msra.mxu0 %v157_v7  ;;  %v357_v9 = vmul.f32 %v5524_v8, %v5527_v11 }
  0x94   :  { %v5539_v18 = vadd.f32 %v2629_v13, %v2622_v48  ;;  %4939 = vmatprep.subr.mxu0 %v7785_v22  ;;  %v124_v32 = vadd.f32 %v121_v17, %v101_v21  ;;  %v388_v48 = vrot.slane %v372_v4, %v5550_v26  ;;  %v402_v52 = vrot.slane %v380_v51, %v5550_v26 }
  0x95   :  { %4940 = vmatpush3.msra.mxu0 %v154_v14  ;;  %v395_v5 = vrot.slane %v379_v39, %v5550_v26  ;;  %v381_v15 = vcombine.high %v379_v39, %v379_v39 }
  0x96   :  { %7820 = vst [vmem:[#allocation4_spill] sm:$0xff] %v5539_v18  ;;  %v133_v28 = vpop.permute.xlu1 %132  ;;  %4941 = vmatprep.subr.mxu0 %v7785_v22  ;;  %v410_v56 = vcombine.high %v388_v48, %v388_v48  ;;  %v519_v63 = vrot.slane %v402_v52, %v5458_v23  ;;  %v412_v50 = vcombine.high %v402_v52, %v402_v52 }
  0x97   :  { %v144_v31 = vmul.f32 %v5485_v38, %v133_v28  ;;  %4942 = vmatpush3.msra.mxu0 %v151_v19  ;;  %v713_v38 = vld [vmem:[%s7776_s6 + $0x10] sm:$0xff] }
  0x98   :  { %816 = vmatprep.subr.mxu0 %v714_v24  ;;  %v523_v2 = vrot.slane %v410_v56, %v5458_v23  ;;  %v633_v12 = vsub.f32 %v519_v63, %v5553_v29  ;;  %v527_v24 = vrot.slane %v412_v50, %v5458_v23  ;;  %v411_v63 = vcombine.high %v395_v5, %v395_v5 }
  0x99   :  { %v5557_v33 = vadd.f32 %v144_v31, %v124_v32 }
  0x9a   :  { %v634_v19 = vsub.f32 %v523_v2, %v5553_v29  ;;  %v664_v30 = vadd.f32 %v5605_v62, %v633_v12  ;;  %v539_v50 = vrot.slane %v411_v63, %v5458_v23 }
  0x9b   :  { %7822 = vst [vmem:[#allocation6_spill] sm:$0xff] %v5557_v33  ;;  %v114_v41 = vpop.permute.xlu1 %113  ;;  %4730 = vmatmul.mubr.msk.f32.gmra.mxu0 %vm161_vm0, %v5557_v33 }
  0x9c   :  { %v122_v35 = vmul.f32 %v5480_v37, %v114_v41  ;;  %v358_v34 = vmul.f32 %v5524_v8, %v114_v41  ;;  %v2630_v42 = vmul.f32 %v5422_v10, %v114_v41  ;;  %247 = vmatprep.mubr.f32.mxu0 %v7785_v22  ;;  %v515_v37 = vrot.slane %v388_v48, %v5458_v23 }
  0x9d   :  { %v665_v52 = vadd.f32 %v5605_v62, %v634_v19 }
  0x9e   :  { %v125_v45 = vadd.f32 %v122_v35, %v102_v40  ;;  %v5568_v46 = vadd.f32 %v358_v34, %v351_v3  ;;  %v5570_v47 = vadd.f32 %v2630_v42, %v2623_v6  ;;  %v632_v60 = vsub.f32 %v515_v37, %v5553_v29 }
  0x9f   :  { %v350_v6 = vadd.f32 %v347_v59, %v340_v0  ;;  %v531_v40 = vrot.slane %v395_v5, %v5458_v23  ;;  %v409_v34 = vrot.slane %v381_v15, %v5550_v26 }
  0xa0   :  { %v5573_v49 = vadd.f32 %v145_v43, %v125_v45  ;;  %v470_v10 = vrot.slane %v5568_v46, %v5550_v26  ;;  %v463_v1 = vcombine.high %v5568_v46, %v5568_v46  ;;  %v663_v25 = vadd.f32 %v5605_v62, %v632_v60 }
  0xa1   :  { %v5669_v60 = vadd.f32 %v357_v9, %v350_v6  ;;  %v535_v6 = vrot.slane %v409_v34, %v5458_v23 }
  0xa2   :  { %7823 = vst [vmem:[#allocation7_spill] sm:$0xff] %v5573_v49  ;;  %4731 = vmatmul.mubr.msk.f32.gmra.mxu0 %vm161_vm0, %v5573_v49  ;;  %v486_v58 = vrot.slane %v470_v10, %v5550_v26  ;;  %v478_v3 = vcombine.high %v470_v10, %v470_v10  ;;  %v477_v17 = vrot.slane %v463_v1, %v5550_v26  ;;  %v687_v21 = vmax.f32 %v663_v25, 0.0 }
  0xa3   :  { %4943 = vmatprep.mubr.msk.f32.mxu0 %vm5336_vm1, %v7785_v22  ;;  %v689_v1 = vmax.f32 %v665_v52, 0.0  ;;  %v637_v12 = vsub.f32 %v535_v6, %v5553_v29 }
  0xa4   :  { %v579_v44 = vrot.slane %v486_v58, %v5458_v23  ;;  %v500_v13 = vrot.slane %v478_v3, %v5550_v26  ;;  %v508_v14 = vcombine.high %v486_v58, %v486_v58  ;;  %v493_v27 = vrot.slane %v477_v17, %v5550_v26 }
  0xa5   :  { %v479_v28 = vcombine.high %v477_v17, %v477_v17  ;;  %v636_v3 = vsub.f32 %v531_v40, %v5553_v29  ;;  %v668_v17 = vadd.f32 %v5605_v62, %v637_v12 }
  0xa6   :  { %4944 = vmatmul.mubr.msk.f32.vlgmr.msra.gmra.mxu0 %vm161_vm0, %v5509_v61  ;;  %v648_v7 = vsub.f32 %v579_v44, %v5568_v46  ;;  %v583_v8 = vrot.slane %v500_v13, %v5458_v23  ;;  %v587_v11 = vrot.slane %v508_v14, %v5458_v23  ;;  %v510_v20 = vcombine.high %v500_v13, %v500_v13 }
  0xa7   :  { %817 = vmatpush1.msra.mxu0 %v713_v38  ;;  %4946 = vmatprep.mubr.msk.f32.mxu0 %vm5336_vm1, %v7785_v22  ;;  %v595_v41 = vrot.slane %v493_v27, %v5458_v23  ;;  %v507_v4 = vrot.slane %v479_v28, %v5550_v26  ;;  %v509_v35 = vcombine.high %v493_v27, %v493_v27  ;;  %v688_v38 = vmax.f32 %v664_v30, 0.0 }
  0xa8   :  { %818 = vmatprep.subr.mxu0 %v712_v53  ;;  %v5627_v16 = vadd.f32 %v5605_v62, %v648_v7  ;;  %v649_v32 = vsub.f32 %v583_v8, %v5568_v46  ;;  %v650_v31 = vsub.f32 %v587_v11, %v5568_v46  ;;  %v591_v36 = vrot.slane %v510_v20, %v5458_v23 }
  0xa9   :  { %819 = vmatpush1.msra.mxu0 %v711_v55  ;;  %v652_v48 = vsub.f32 %v595_v41, %v5568_v46  ;;  %v599_v51 = vrot.slane %v507_v4, %v5458_v23  ;;  %v603_v10 = vrot.slane %v509_v35, %v5458_v23  ;;  %v511_v37 = vcombine.high %v507_v4, %v507_v4 }
  0xaa   :  { %4947 = vmatmul.mubr.msk.f32.gmra.mxu0 %vm161_vm0, %v5557_v33  ;;  %v5648_v42 = vadd.f32 %v5605_v62, %v649_v32  ;;  %v5651_v43 = vadd.f32 %v5605_v62, %v650_v31  ;;  %v651_v45 = vsub.f32 %v591_v36, %v5568_v46  ;;  %v635_v53 = vsub.f32 %v527_v24, %v5553_v29 }
  0xab   :  { %4949 = vmatprep.mubr.msk.f32.mxu0 %vm5336_vm1, %v7785_v22  ;;  %v5664_v55 = vadd.f32 %v5605_v62, %v652_v48  ;;  %v653_v56 = vsub.f32 %v599_v51, %v5568_v46  ;;  %v654_v58 = vsub.f32 %v603_v10, %v5568_v46  ;;  %v607_v59 = vrot.slane %v511_v37, %v5458_v23 }
  0xac   :  { %v5661_v54 = vadd.f32 %v5605_v62, %v651_v45  ;;  %v666_v2 = vadd.f32 %v5605_v62, %v635_v53  ;;  %v421_v7 = vrot.slane %v5669_v60, %v5550_v26  ;;  %v667_v9 = vadd.f32 %v5605_v62, %v636_v3 }
  0xad   :  { %v5674_v0 = vadd.f32 %v5605_v62, %v653_v56  ;;  %v5677_v39 = vadd.f32 %v5605_v62, %v654_v58  ;;  %v655_v44 = vsub.f32 %v607_v59, %v5568_v46  ;;  %v413_v13 = vcombine.high %v409_v34, %v409_v34  ;;  %v5729_v56 = vld [vmem:[%s7777_s5 + $0x1] ss:$0 sm:$0xff] }
  0xae   :  { %4950 = vmatmul.mubr.msk.f32.gmra.mxu0 %vm161_vm0, %v5573_v49  ;;  %v690_v46 = vmax.f32 %v666_v2, 0.0  ;;  %v638_v14 = vsub.f32 %v539_v50, %v5553_v29  ;;  %v437_v5 = vrot.slane %v421_v7, %v5550_v26  ;;  %v691_v15 = vmax.f32 %v667_v9, 0.0 }
  0xaf   :  { %852 = vmatprep.mubr.f32.mxu0 %v7785_v22  ;;  %v5684_v25 = vadd.f32 %v5605_v62, %v655_v44  ;;  %v543_v19 = vrot.slane %v413_v13, %v5458_v23  ;;  %v429_v8 = vcombine.high %v421_v7, %v421_v7  ;;  %v2742_v20 = vrot.slane %v5570_v47, %v5550_v26 }
  0xb0   :  { %v669_v11 = vadd.f32 %v5605_v62, %v638_v14  ;;  %v547_v27 = vrot.slane %v437_v5, %v5458_v23  ;;  %v414_v30 = vcombine.high %v5669_v60, %v5669_v60  ;;  %v459_v32 = vcombine.high %v437_v5, %v437_v5 }
  0xb1   :  { %v639_v24 = vsub.f32 %v543_v19, %v5553_v29  ;;  %v451_v28 = vrot.slane %v429_v8, %v5550_v26  ;;  %v2758_v31 = vrot.slane %v2742_v20, %v5550_v26  ;;  %v2750_v45 = vcombine.high %v2742_v20, %v2742_v20 }
  0xb2   :  { %4736 = vmatmul.mubr.msk.f32.vlgmr.msra.gmra.mxu0 %vm715_vm2, %v687_v21  ;;  %v692_v21 = vmax.f32 %v668_v17, 0.0  ;;  %v693_v36 = vmax.f32 %v669_v11, 0.0  ;;  %v640_v41 = vsub.f32 %v547_v27, %v5669_v60  ;;  %v428_v4 = vrot.slane %v414_v30, %v5550_v26 }
  0xb3   :  { %858 = vmatprep.mubr.f32.mxu0 %v7785_v22  ;;  %v670_v40 = vadd.f32 %v5605_v62, %v639_v24  ;;  %v551_v29 = vrot.slane %v451_v28, %v5458_v23  ;;  %v555_v35 = vrot.slane %v459_v32, %v5458_v23  ;;  %v2851_v34 = vrot.slane %v2758_v31, %v5458_v23 }
  0xb4   :  { %v671_v51 = vadd.f32 %v5605_v62, %v640_v41  ;;  %v461_v37 = vcombine.high %v451_v28, %v451_v28  ;;  %v2772_v52 = vrot.slane %v2750_v45, %v5550_v26  ;;  %v444_v53 = vrot.slane %v428_v4, %v5550_v26 }
  0xb5   :  { %v694_v48 = vmax.f32 %v670_v40, 0.0  ;;  %v641_v10 = vsub.f32 %v551_v29, %v5669_v60  ;;  %v642_v58 = vsub.f32 %v555_v35, %v5669_v60  ;;  %v430_v59 = vcombine.high %v428_v4, %v428_v4 }
  0xb6   :  { %4737 = vmatmul.mubr.msk.f32.gmra.mxu0 %vm715_vm2, %v688_v38  ;;  %v2920_v38 = vsub.f32 %v2851_v34, %v5570_v47  ;;  %v2735_v44 = vcombine.high %v5570_v47, %v5570_v47  ;;  %v559_v3 = vrot.slane %v461_v37, %v5458_v23  ;;  %v2855_v6 = vrot.slane %v2772_v52, %v5458_v23 }
  0xb7   :  { %864 = vmatprep.mubr.f32.mxu0 %v7785_v22  ;;  %v672_v2 = vadd.f32 %v5605_v62, %v641_v10  ;;  %v563_v50 = vrot.slane %v444_v53, %v5458_v23  ;;  %v673_v9 = vadd.f32 %v5605_v62, %v642_v58  ;;  %v458_v12 = vrot.slane %v430_v59, %v5550_v26 }
  0xb8   :  { %v5734_v63 = vadd.f32 %v5729_v56, %v2920_v38  ;;  %v2921_v7 = vsub.f32 %v2855_v6, %v5570_v47  ;;  %v2782_v13 = vcombine.high %v2772_v52, %v2772_v52  ;;  %v2749_v14 = vrot.slane %v2735_v44, %v5550_v26 }
  0xb9   :  { %v696_v5 = vmax.f32 %v672_v2, 0.0  ;;  %v644_v20 = vsub.f32 %v563_v50, %v5669_v60  ;;  %v567_v28 = vrot.slane %v458_v12, %v5458_v23  ;;  %v462_v37 = vcombine.high %v458_v12, %v458_v12  ;;  %v1416_v12 = vld [vmem:[%s7778_s9 + $0x78] sm:$0xff] }
  0xba   :  { %4738 = vmatmul.mubr.msk.f32.gmra.mxu0 %vm715_vm2, %v689_v1  ;;  %7824 = vst [vmem:[#allocation8_spill] sm:$0xff] %v5734_v63  ;;  %v695_v1 = vmax.f32 %v671_v51, 0.0  ;;  %v5750_v17 = vadd.f32 %v5729_v56, %v2921_v7  ;;  %v2863_v8 = vrot.slane %v2782_v13, %v5458_v23  ;;  %v2765_v11 = vrot.slane %v2749_v14, %v5550_v26  ;;  %v1414_v13 = vld [vmem:[%s7778_s9 + $0x68] sm:$0xff] }
  0xbb   :  { %870 = vmatprep.mubr.f32.mxu0 %v7785_v22  ;;  %v2751_v27 = vcombine.high %v2749_v14, %v2749_v14  ;;  %v675_v10 = vadd.f32 %v5605_v62, %v644_v20  ;;  %v645_v58 = vsub.f32 %v567_v28, %v5669_v60  ;;  %4952 = vmatprep.subr.mxu1 %v1416_v12  ;;  %v1410_v20 = vld [vmem:[%s7778_s9 + $0x48] sm:$0xff]  ;;  %v1407_v28 = vld [vmem:[%s7778_s9 + $0x30] sm:$0xff] }
  0xbc   :  { %7825 = vst [vmem:[#allocation9_spill] sm:$0xff] %v5750_v17  ;;  %v2923_v30 = vsub.f32 %v2863_v8, %v5570_v47  ;;  %v2867_v32 = vrot.slane %v2765_v11, %v5458_v23  ;;  %4953 = vmatpush3.msra.mxu1 %v1416_v12 }
  0xbd   :  { %v2779_v29 = vrot.slane %v2751_v27, %v5550_v26  ;;  %v699_v50 = vmax.f32 %v675_v10, 0.0  ;;  %v676_v7 = vadd.f32 %v5605_v62, %v645_v58  ;;  %v703_v27 = vmax.f32 %v5627_v16, 0.0  ;;  %v1405_v16 = vld [vmem:[%s7778_s9 + $0x20] sm:$0xff] }
  0xbe   :  { %4739 = vmatmul.mubr.msk.f32.gmra.mxu0 %vm715_vm2, %v690_v46  ;;  %v2780_v46 = vcombine.high %v2758_v31, %v2758_v31  ;;  %v2781_v31 = vcombine.high %v2765_v11, %v2765_v11  ;;  %v5768_v4 = vadd.f32 %v5729_v56, %v2923_v30  ;;  %v2924_v35 = vsub.f32 %v2867_v32, %v5570_v47  ;;  %v1406_v30 = vld [vmem:[%s7778_s9 + $0x28] sm:$0xff] }
  0xbf   :  { %876 = vmatprep.mubr.f32.mxu0 %v7785_v22  ;;  %v2783_v51 = vcombine.high %v2779_v29, %v2779_v29  ;;  %v704_v32 = vmax.f32 %v5648_v42, 0.0  ;;  %v1403_v42 = vld [vmem:[%s7778_s9 + $0x10] sm:$0xff] }
  0xc0   :  { %v2859_v19 = vrot.slane %v2780_v46, %v5458_v23  ;;  %7827 = vst [vmem:[#allocation11_spill] sm:$0xff] %v5768_v4  ;;  %v2875_v34 = vrot.slane %v2781_v31, %v5458_v23  ;;  %v5778_v38 = vadd.f32 %v5729_v56, %v2924_v35  ;;  %v575_v46 = vrot.slane %v462_v37, %v5458_v23  ;;  %v1404_v31 = vld [vmem:[%s7778_s9 + $0x18] sm:$0xff] }
  0xc1   :  { %v2879_v44 = vrot.slane %v2783_v51, %v5458_v23  ;;  %v707_v35 = vmax.f32 %v5664_v55, 0.0  ;;  %v710_v55 = vmax.f32 %v5684_v25, 0.0 }
  0xc2   :  { %4740 = vmatmul.mubr.msk.f32.gmra.mxu0 %vm715_vm2, %v691_v15  ;;  %v643_v15 = vsub.f32 %v559_v3, %v5669_v60  ;;  %v2922_v24 = vsub.f32 %v2859_v19, %v5570_v47  ;;  %7828 = vst [vmem:[#allocation12_spill] sm:$0xff] %v5778_v38  ;;  %v2926_v52 = vsub.f32 %v2875_v34, %v5570_v47  ;;  %v1412_v19 = vld [vmem:[%s7778_s9 + $0x58] sm:$0xff]  ;;  %v709_v34 = vmax.f32 %v5677_v39, 0.0 }
  0xc3   :  { %882 = vmatprep.mubr.f32.mxu0 %v7785_v22  ;;  %v2927_v3 = vsub.f32 %v2879_v44, %v5570_v47 }
  0xc4   :  { %v674_v40 = vadd.f32 %v5605_v62, %v643_v15  ;;  %v5764_v41 = vadd.f32 %v5729_v56, %v2922_v24  ;;  %v1413_v15 = vld [vmem:[%s7778_s9 + $0x60] sm:$0xff]  ;;  %v1408_v24 = vld [vmem:[%s7778_s9 + $0x38] sm:$0xff] }
  0xc6   :  { %4741 = vmatmul.mubr.msk.f32.gmra.mxu0 %vm715_vm2, %v692_v21  ;;  %v460_v21 = vcombine.high %v444_v53, %v444_v53  ;;  %7826 = vst [vmem:[#allocation10_spill] sm:$0xff] %v5764_v41  ;;  %v698_v53 = vmax.f32 %v674_v40, 0.0  ;;  %v1402_v40 = vld [vmem:[%s7778_s9 + $0x8] sm:$0xff] }
  0xc7   :  { %888 = vmatprep.mubr.f32.mxu0 %v7785_v22 }
  0xc8   :  { %v571_v45 = vrot.slane %v460_v21, %v5458_v23 }
  0xca   :  { %4742 = vmatmul.mubr.msk.f32.gmra.mxu0 %vm715_vm2, %v693_v36  ;;  %v697_v36 = vmax.f32 %v673_v9, 0.0  ;;  %v646_v6 = vsub.f32 %v571_v45, %v5669_v60  ;;  %v5797_v9 = vadd.f32 %v5729_v56, %v2927_v3 }
  0xcb   :  { %894 = vmatprep.mubr.f32.mxu0 %v7785_v22 }
  0xcc   :  { %7831 = vst [vmem:[#allocation15_spill] sm:$0xff] %v5797_v9  ;;  %v677_v14 = vadd.f32 %v5605_v62, %v646_v6 }
  0xce   :  { %4743 = vmatmul.mubr.msk.f32.gmra.mxu0 %vm715_vm2, %v694_v48  ;;  %v2871_v48 = vrot.slane %v2779_v29, %v5458_v23  ;;  %v701_v8 = vmax.f32 %v677_v14, 0.0  ;;  %v706_v29 = vmax.f32 %v5661_v54, 0.0  ;;  %v708_v54 = vmax.f32 %v5674_v0, 0.0 }
  0xcf   :  { %900 = vmatprep.mubr.f32.mxu0 %v7785_v22 }
  0xd0   :  { %v2925_v59 = vsub.f32 %v2871_v48, %v5570_v47  ;;  %v1415_v47 = vld [vmem:[%s7778_s9 + $0x70] sm:$0xff] }
  0xd1   :  { %4954 = vmatprep.subr.mxu1 %v1415_v47 }
  0xd2   :  { %4744 = vmatmul.mubr.msk.f32.gmra.mxu0 %vm715_vm2, %v695_v1  ;;  %v5785_v1 = vadd.f32 %v5729_v56, %v2926_v52  ;;  %v5789_v2 = vadd.f32 %v5729_v56, %v2925_v59  ;;  %v700_v56 = vmax.f32 %v676_v7, 0.0  ;;  %4955 = vmatpush3.msra.mxu1 %v1415_v47 }
  0xd3   :  { %906 = vmatprep.mubr.f32.mxu0 %v7785_v22  ;;  %4956 = vmatprep.subr.mxu1 %v1414_v13 }
  0xd4   :  { %7829 = vst [vmem:[#allocation13_spill] sm:$0xff] %v5785_v1  ;;  %7830 = vst [vmem:[#allocation14_spill] sm:$0xff] %v5789_v2  ;;  %4957 = vmatpush3.msra.mxu1 %v1414_v13 }
  0xd5   :  { %4958 = vmatprep.subr.mxu1 %v1413_v15 }
  0xd6   :  { %4745 = vmatmul.mubr.msk.f32.gmra.mxu0 %vm715_vm2, %v696_v5  ;;  %v647_v5 = vsub.f32 %v575_v46, %v5669_v60  ;;  %4959 = vmatpush3.msra.mxu1 %v1413_v15  ;;  %v1411_v60 = vld [vmem:[%s7778_s9 + $0x50] sm:$0xff] }
  0xd7   :  { %912 = vmatprep.mubr.f32.mxu0 %v7785_v22  ;;  %4960 = vmatprep.subr.mxu1 %v1412_v19 }
  0xd8   :  { %v678_v11 = vadd.f32 %v5605_v62, %v647_v5  ;;  %4961 = vmatpush3.msra.mxu1 %v1412_v19  ;;  %v1409_v62 = vld [vmem:[%s7778_s9 + $0x40] sm:$0xff] }
  0xd9   :  { %4962 = vmatprep.subr.mxu1 %v1411_v60 }
  0xda   :  { %4746 = vmatmul.mubr.msk.f32.gmra.mxu0 %vm715_vm2, %v697_v36  ;;  %v702_v21 = vmax.f32 %v678_v11, 0.0  ;;  %4963 = vmatpush3.msra.mxu1 %v1411_v60  ;;  %v705_v36 = vmax.f32 %v5651_v43, 0.0  ;;  %v1401_v43 = vld [vmem:[%s7778_s9] sm:$0xff] }
  0xdb   :  { %918 = vmatprep.mubr.f32.mxu0 %v7785_v22  ;;  %4964 = vmatprep.subr.mxu1 %v1410_v20 }
  0xdc   :  { %4965 = vmatpush3.msra.mxu1 %v1410_v20 }
  0xdd   :  { %4966 = vmatprep.subr.mxu1 %v1409_v62 }
  0xde   :  { %4747 = vmatmul.mubr.msk.f32.gmra.mxu0 %vm715_vm2, %v698_v53  ;;  %4967 = vmatpush3.msra.mxu1 %v1409_v62 }
  0xdf   :  { %924 = vmatprep.mubr.f32.mxu0 %v7785_v22  ;;  %4968 = vmatprep.subr.mxu1 %v1408_v24 }
  0xe0   :  { %4969 = vmatpush3.msra.mxu1 %v1408_v24 }
  0xe1   :  { %4970 = vmatprep.subr.mxu1 %v1407_v28 }
  0xe2   :  { %4748 = vmatmul.mubr.msk.f32.gmra.mxu0 %vm715_vm2, %v699_v50  ;;  %4971 = vmatpush3.msra.mxu1 %v1407_v28 }
  0xe3   :  { %930 = vmatprep.mubr.f32.mxu0 %v7785_v22  ;;  %4972 = vmatprep.subr.mxu1 %v1406_v30 }
  0xe4   :  { %4973 = vmatpush3.msra.mxu1 %v1406_v30 }
  0xe5   :  { %4974 = vmatprep.subr.mxu1 %v1405_v16 }
  0xe6   :  { %4749 = vmatmul.mubr.msk.f32.gmra.mxu0 %vm715_vm2, %v700_v56  ;;  %4975 = vmatpush3.msra.mxu1 %v1405_v16 }
  0xe7   :  { %936 = vmatprep.mubr.f32.mxu0 %v7785_v22  ;;  %4976 = vmatprep.subr.mxu1 %v1404_v31 }
  0xe8   :  { %4977 = vmatpush3.msra.mxu1 %v1404_v31 }
  0xe9   :  { %4978 = vmatprep.subr.mxu1 %v1403_v42 }
  0xea   :  { %4750 = vmatmul.mubr.msk.f32.gmra.mxu0 %vm715_vm2, %v701_v8  ;;  %4979 = vmatpush3.msra.mxu1 %v1403_v42 }
  0xeb   :  { %942 = vmatprep.mubr.f32.mxu0 %v7785_v22  ;;  %4980 = vmatprep.subr.mxu1 %v1402_v40 }
  0xec   :  { %4981 = vmatpush3.msra.mxu1 %v1402_v40 }
  0xed   :  { %4982 = vmatprep.subr.mxu1 %v1401_v43 }
  0xee   :  { %4751 = vmatmul.mubr.msk.f32.gmra.mxu0 %vm715_vm2, %v702_v21  ;;  %4983 = vmatpush3.msra.mxu1 %v1401_v43 }
  0xef   :  { %948 = vmatprep.mubr.f32.mxu0 %v7785_v22 }
  0xf2   :  { %4752 = vmatmul.mubr.msk.f32.gmra.mxu0 %vm715_vm2, %v703_v27 }
  0xf3   :  { %954 = vmatprep.mubr.f32.mxu0 %v7785_v22 }
  0xf6   :  { %4753 = vmatmul.mubr.msk.f32.gmra.mxu0 %vm715_vm2, %v704_v32 }
  0xf7   :  { %960 = vmatprep.mubr.f32.mxu0 %v7785_v22 }
  0xfa   :  { %4754 = vmatmul.mubr.msk.f32.gmra.mxu0 %vm715_vm2, %v705_v36 }
  0xfb   :  { %966 = vmatprep.mubr.f32.mxu0 %v7785_v22 }
  0xfe   :  { %4755 = vmatmul.mubr.msk.f32.gmra.mxu0 %vm715_vm2, %v706_v29 }
  0xff   :  { %972 = vmatprep.mubr.f32.mxu0 %v7785_v22 }
 0x102   :  { %4756 = vmatmul.mubr.msk.f32.gmra.mxu0 %vm715_vm2, %v707_v35 }
 0x103   :  { %978 = vmatprep.mubr.f32.mxu0 %v7785_v22 }
 0x106   :  { %4757 = vmatmul.mubr.msk.f32.gmra.mxu0 %vm715_vm2, %v708_v54 }
 0x107   :  { %984 = vmatprep.mubr.f32.mxu0 %v7785_v22 }
 0x10a   :  { %4758 = vmatmul.mubr.msk.f32.gmra.mxu0 %vm715_vm2, %v709_v34 }
 0x10b   :  { %990 = vmatprep.mubr.f32.mxu0 %v7785_v22 }
 0x10e   :  { %4759 = vmatmul.mubr.msk.f32.gmra.mxu0 %vm715_vm2, %v710_v55 }
 0x150   :  { %v237_v45 = vpop.f32.mrf.mxu0 }
 0x151   :  { %v1038_v39 = vrot.slane %v237_v45, %v5550_v26  ;;  %v1031_v43 = vcombine.high %v237_v45, %v237_v45  ;;  %v5951_v45 = vld [vmem:[%s7780_s8] ss:$0 sm:$0xff] }
 0x152   :  { %v5881_v48 = vpop.f32.mrf.mxu0 }
 0x153   :  { %v1046_v46 = vcombine.high %v1038_v39, %v1038_v39  ;;  %v1054_v12 = vrot.slane %v1038_v39, %v5550_v26  ;;  %v5946_v39 = vld [vmem:[%s7779_s7] ss:$0 sm:$0xff] }
 0x155   :  { %v1068_v32 = vrot.slane %v1046_v46, %v5550_v26  ;;  %v1181_v16 = vrot.slane %v1054_v12, %v5458_v23  ;;  %v1076_v35 = vcombine.high %v1054_v12, %v1054_v12 }
 0x157   :  { %v1078_v46 = vcombine.high %v1068_v32, %v1068_v32 }
 0x15b   :  { %v5883_v51 = vpop.f32.mrf.mxu0 }
 0x15d   :  { %v5885_v0 = vpop.f32.mrf.mxu0 }
 0x162   :  { %v249_v10 = vpop.f32.mrf.mxu0 }
 0x163   :  { %v1129_v37 = vcombine.high %v249_v10, %v249_v10  ;;  %v1136_v52 = vrot.slane %v249_v10, %v5550_v26  ;;  %v1298_v10 = vsub.f32 %v1181_v16, %v5881_v48 }
 0x164   :  { %v5889_v53 = vpop.f32.mrf.mxu0 }
 0x165   :  { %v1143_v58 = vrot.slane %v1129_v37, %v5550_v26  ;;  %v1144_v25 = vcombine.high %v1136_v52, %v1136_v52  ;;  %v1152_v59 = vrot.slane %v1136_v52, %v5550_v26  ;;  %v1185_v37 = vrot.slane %v1068_v32, %v5458_v23 }
 0x166   :  { %v5893_v44 = vpop.f32.mrf.mxu0 }
 0x167   :  { %v1145_v3 = vcombine.high %v1143_v58, %v1143_v58  ;;  %v1159_v6 = vrot.slane %v1143_v58, %v5550_v26  ;;  %v1166_v50 = vrot.slane %v1144_v25, %v5550_v26  ;;  %v1174_v7 = vcombine.high %v1152_v59, %v1152_v59 }
 0x168   :  { %v4945_v47 = vpop.f32.mrf.mxu0  ;;  %v1245_v13 = vrot.slane %v1152_v59, %v5458_v23  ;;  %v1045_v25 = vrot.slane %v1031_v43, %v5550_v26 }
 0x169   :  { %v1249_v56 = vrot.slane %v1166_v50, %v5458_v23  ;;  %v5901_v14 = vrot.slane %v1174_v7, %v5458_v23  ;;  %v1176_v5 = vcombine.high %v1166_v50, %v1166_v50  ;;  %v1261_v15 = vrot.slane %v1159_v6, %v5458_v23 }
 0x16a   :  { %v5904_v19 = vpop.f32.mrf.mxu0  ;;  %v5907_v8 = vsub.f32 %v1245_v13, %v5889_v53  ;;  %v1173_v11 = vrot.slane %v1145_v3, %v5550_v26  ;;  %v1175_v28 = vcombine.high %v1159_v6, %v1159_v6  ;;  %v1189_v3 = vrot.slane %v1076_v35, %v5458_v23 }
 0x16b   :  { %v5911_v60 = vsub.f32 %v1249_v56, %v5889_v53  ;;  %v1316_v20 = vsub.f32 %v5901_v14, %v5889_v53  ;;  %v5916_v21 = vrot.slane %v1176_v5, %v5458_v23  ;;  %v5919_v62 = vsub.f32 %v1261_v15, %v5889_v53 }
 0x16c   :  { %v4948_v24 = vpop.f32.mrf.mxu0  ;;  %v1265_v27 = vrot.slane %v1173_v11, %v5458_v23  ;;  %v1177_v30 = vcombine.high %v1173_v11, %v1173_v11  ;;  %v5932_v40 = vrot.slane %v1175_v28, %v5458_v23  ;;  %v1299_v50 = vsub.f32 %v1185_v37, %v5881_v48 }
 0x16d   :  { %v1317_v31 = vsub.f32 %v5916_v21, %v5889_v53  ;;  %v1047_v5 = vcombine.high %v1045_v25, %v1045_v25  ;;  %v1061_v15 = vrot.slane %v1045_v25, %v5550_v26  ;;  %v1300_v28 = vsub.f32 %v1189_v3, %v5881_v48 }
 0x16e   :  { %v5926_v36 = vpop.f32.mrf.mxu0  ;;  %v5929_v42 = vsub.f32 %v1265_v27, %v5889_v53  ;;  %v5935_v29 = vrot.slane %v1177_v30, %v5458_v23  ;;  %v1320_v34 = vsub.f32 %v5932_v40, %v5889_v53  ;;  %v1193_v30 = vrot.slane %v1078_v46, %v5458_v23  ;;  %v6100_v40 = vld [vmem:[%s7781_s10] ss:$0 sm:$0xff] }
 0x16f   :  { %v1075_v25 = vrot.slane %v1047_v5, %v5550_v26  ;;  %v1077_v46 = vcombine.high %v1061_v15, %v1061_v15 }
 0x170   :  { %v4951_v54 = vpop.f32.mrf.mxu0  ;;  %v1321_v55 = vsub.f32 %v5935_v29, %v5889_v53 }
 0x172   :  { %v854_v52 = vpop.f32.mrf.mxu0 }
 0x173   :  { %v1322_v58 = vadd.f32 %v1298_v10, %v854_v52  ;;  %v1197_v10 = vrot.slane %v1061_v15, %v5458_v23  ;;  %v1087_v15 = vrot.slane %v5883_v51, %v5550_v26 }
 0x174   :  { %v856_v59 = vpop.f32.mrf.mxu0 }
 0x175   :  { %v1004_v6 = vadd.f32 %v5946_v39, %v856_v59  ;;  %v1353_v7 = vadd.f32 %v5951_v45, %v1322_v58  ;;  %v1301_v58 = vsub.f32 %v1193_v30, %v5881_v48 }
 0x176   :  { %v860_v12 = vpop.f32.mrf.mxu0 }
 0x177   :  { %v5959_v47 = vadd.f32 %v1004_v6, %v5893_v44  ;;  %v1323_v13 = vadd.f32 %v1299_v50, %v860_v12  ;;  %v1377_v56 = vmax.f32 %v1353_v7, 0.0 }
 0x178   :  { %v862_v11 = vpop.f32.mrf.mxu0 }
 0x179   :  { %v1354_v24 = vadd.f32 %v5951_v45, %v1323_v13  ;;  %v1005_v27 = vadd.f32 %v5946_v39, %v862_v11  ;;  %4984 = vmatprep.mubr.f32.mxu1 %v1377_v56  ;;  %v1302_v56 = vsub.f32 %v1197_v10, %v5881_v48  ;;  %v1201_v11 = vrot.slane %v1075_v25, %v5458_v23 }
 0x17a   :  { %v866_v32 = vpop.f32.mrf.mxu0 }
 0x17b   :  { %v1378_v16 = vmax.f32 %v1354_v24, 0.0  ;;  %v5967_v43 = vadd.f32 %v1005_v27, %v5893_v44  ;;  %v1324_v35 = vadd.f32 %v1300_v28, %v866_v32  ;;  %v1205_v32 = vrot.slane %v1077_v46, %v5458_v23 }
 0x17c   :  { %v868_v54 = vpop.f32.mrf.mxu0  ;;  %v1303_v10 = vsub.f32 %v1201_v11, %v5881_v48  ;;  %v1103_v46 = vrot.slane %v1087_v15, %v5550_v26 }
 0x17d   :  { %v1355_v37 = vadd.f32 %v5951_v45, %v1324_v35  ;;  %v1006_v52 = vadd.f32 %v5946_v39, %v868_v54  ;;  %4985 = vmatmul.mubr.f32.vlgmr.msra.gmra.mxu1 %v1378_v16  ;;  %v1079_v16 = vcombine.high %v1075_v25, %v1075_v25 }
 0x17e   :  { %v872_v59 = vpop.f32.mrf.mxu0 }
 0x17f   :  { %v1379_v3 = vmax.f32 %v1355_v37, 0.0  ;;  %v5975_v6 = vadd.f32 %v1006_v52, %v5893_v44  ;;  %v1325_v50 = vadd.f32 %v1301_v58, %v872_v59  ;;  %v1209_v25 = vrot.slane %v1079_v16, %v5458_v23 }
 0x180   :  { %v874_v7 = vpop.f32.mrf.mxu0 }
 0x181   :  { %v1356_v12 = vadd.f32 %v5951_v45, %v1325_v50  ;;  %v1007_v13 = vadd.f32 %v5946_v39, %v874_v7  ;;  %4987 = vmatprep.mubr.f32.mxu1 %v1379_v3  ;;  %v1304_v50 = vsub.f32 %v1205_v32, %v5881_v48  ;;  %v1095_v7 = vcombine.high %v1087_v15, %v1087_v15 }
 0x182   :  { %v878_v24 = vpop.f32.mrf.mxu0 }
 0x183   :  { %v1380_v27 = vmax.f32 %v1356_v12, 0.0  ;;  %v5982_v5 = vadd.f32 %v1007_v13, %v5893_v44  ;;  %v1326_v28 = vadd.f32 %v1302_v56, %v878_v24  ;;  %v1117_v32 = vrot.slane %v1095_v7, %v5550_v26 }
 0x184   :  { %v880_v30 = vpop.f32.mrf.mxu0 }
 0x185   :  { %v1357_v35 = vadd.f32 %v5951_v45, %v1326_v28  ;;  %v1008_v54 = vadd.f32 %v5946_v39, %v880_v30  ;;  %4988 = vmatmul.mubr.f32.gmra.mxu1 %v1380_v27  ;;  %v1305_v30 = vsub.f32 %v1209_v25, %v5881_v48 }
 0x186   :  { %v884_v37 = vpop.f32.mrf.mxu0 }
 0x187   :  { %v1381_v52 = vmax.f32 %v1357_v35, 0.0  ;;  %v5991_v58 = vadd.f32 %v1008_v54, %v5893_v44  ;;  %v1327_v59 = vadd.f32 %v1303_v10, %v884_v37  ;;  %v1213_v35 = vrot.slane %v1103_v46, %v5458_v23 }
 0x188   :  { %v886_v3 = vpop.f32.mrf.mxu0 }
 0x189   :  { %v1358_v12 = vadd.f32 %v5951_v45, %v1327_v59  ;;  %v1009_v13 = vadd.f32 %v5946_v39, %v886_v3  ;;  %4990 = vmatprep.mubr.f32.mxu1 %v1381_v52  ;;  %v1080_v59 = vcombine.high %v5883_v51, %v5883_v51  ;;  %v1125_v3 = vcombine.high %v1103_v46, %v1103_v46 }
 0x18a   :  { %v890_v56 = vpop.f32.mrf.mxu0  ;;  %v1306_v7 = vsub.f32 %v1213_v35, %v5885_v0 }
 0x18b   :  { %v1382_v11 = vmax.f32 %v1358_v12, 0.0  ;;  %v5999_v24 = vadd.f32 %v1009_v13, %v5893_v44  ;;  %v1328_v27 = vadd.f32 %v1304_v50, %v890_v56  ;;  %v1217_v12 = vrot.slane %v1117_v32, %v5458_v23 }
 0x18c   :  { %v892_v28 = vpop.f32.mrf.mxu0 }
 0x18d   :  { %v1359_v16 = vadd.f32 %v5951_v45, %v1328_v27  ;;  %v1010_v15 = vadd.f32 %v5946_v39, %v892_v28  ;;  %4991 = vmatmul.mubr.f32.gmra.mxu1 %v1382_v11  ;;  %v1094_v28 = vrot.slane %v1080_v59, %v5550_v26 }
 0x18e   :  { %v896_v54 = vpop.f32.mrf.mxu0 }
 0x18f   :  { %v1383_v10 = vmax.f32 %v1359_v16, 0.0  ;;  %v6007_v37 = vadd.f32 %v1010_v15, %v5893_v44  ;;  %v1329_v52 = vadd.f32 %v1305_v30, %v896_v54  ;;  %v1307_v30 = vsub.f32 %v1217_v12, %v5885_v0 }
 0x190   :  { %v898_v48 = vpop.f32.mrf.mxu0  ;;  %v1221_v16 = vrot.slane %v1125_v3, %v5458_v23  ;;  %v1127_v15 = vcombine.high %v1117_v32, %v1117_v32 }
 0x191   :  { %v1360_v50 = vadd.f32 %v5951_v45, %v1329_v52  ;;  %v1011_v25 = vadd.f32 %v5946_v39, %v898_v48  ;;  %4993 = vmatprep.mubr.f32.mxu1 %v1383_v10  ;;  %v1096_v52 = vcombine.high %v1094_v28, %v1094_v28 }
 0x192   :  { %v902_v13 = vpop.f32.mrf.mxu0 }
 0x193   :  { %v1384_v56 = vmax.f32 %v1360_v50, 0.0  ;;  %v6016_v11 = vadd.f32 %v1011_v25, %v5893_v44  ;;  %v1330_v27 = vadd.f32 %v1306_v7, %v902_v13  ;;  %v1110_v44 = vrot.slane %v1094_v28, %v5550_v26 }
 0x194   :  { %v6019_v51 = vpop.f32.mrf.mxu0  ;;  %v1308_v50 = vsub.f32 %v1221_v16, %v5885_v0  ;;  %v1225_v25 = vrot.slane %v1127_v15, %v5458_v23  ;;  %v1124_v28 = vrot.slane %v1096_v52, %v5550_v26 }
 0x195   :  { %v1361_v46 = vadd.f32 %v5951_v45, %v1330_v27  ;;  %4994 = vmatmul.mubr.f32.gmra.mxu1 %v1384_v56  ;;  %v1229_v27 = vrot.slane %v1110_v44, %v5458_v23 }
 0x196   :  { %v908_v35 = vpop.f32.mrf.mxu0  ;;  %v1309_v56 = vsub.f32 %v1225_v25, %v5885_v0 }
 0x197   :  { %v1385_v54 = vmax.f32 %v1361_v46, 0.0  ;;  %v1331_v10 = vadd.f32 %v1307_v30, %v908_v35 }
 0x198   :  { %v6024_v48 = vpop.f32.mrf.mxu0 }
 0x199   :  { %v1362_v59 = vadd.f32 %v5951_v45, %v1331_v10  ;;  %4996 = vmatprep.mubr.f32.mxu1 %v1385_v54  ;;  %v1310_v54 = vsub.f32 %v1229_v27, %v5885_v0  ;;  %v1233_v10 = vrot.slane %v1124_v28, %v5458_v23 }
 0x19a   :  { %v914_v7 = vpop.f32.mrf.mxu0 }
 0x19b   :  { %v1386_v12 = vmax.f32 %v1362_v59, 0.0  ;;  %v1332_v13 = vadd.f32 %v1308_v50, %v914_v7  ;;  %v1126_v59 = vcombine.high %v1110_v44, %v1110_v44 }
 0x19c   :  { %v6030_v3 = vpop.f32.mrf.mxu0 }
 0x19d   :  { %v1363_v32 = vadd.f32 %v5951_v45, %v1332_v13  ;;  %4997 = vmatmul.mubr.f32.gmra.mxu1 %v1386_v12  ;;  %v1311_v13 = vsub.f32 %v1233_v10, %v5885_v0 }
 0x19e   :  { %v920_v46 = vpop.f32.mrf.mxu0 }
 0x19f   :  { %v1387_v30 = vmax.f32 %v1363_v32, 0.0  ;;  %v1333_v35 = vadd.f32 %v1309_v56, %v920_v46  ;;  %v1237_v32 = vrot.slane %v1126_v59, %v5458_v23  ;;  %v1128_v56 = vcombine.high %v1124_v28, %v1124_v28 }
 0x1a0   :  { %v6036_v16 = vpop.f32.mrf.mxu0 }
 0x1a1   :  { %v1364_v15 = vadd.f32 %v5951_v45, %v1333_v35  ;;  %4999 = vmatprep.mubr.f32.mxu1 %v1387_v30 }
 0x1a2   :  { %v926_v50 = vpop.f32.mrf.mxu0 }
 0x1a3   :  { %v1388_v7 = vmax.f32 %v1364_v15, 0.0  ;;  %v1334_v25 = vadd.f32 %v1310_v54, %v926_v50  ;;  %v1312_v15 = vsub.f32 %v1237_v32, %v5885_v0  ;;  %v1241_v54 = vrot.slane %v1128_v56, %v5458_v23 }
 0x1a4   :  { %v6041_v12 = vpop.f32.mrf.mxu0 }
 0x1a5   :  { %v1365_v52 = vadd.f32 %v5951_v45, %v1334_v25  ;;  %5000 = vmatmul.mubr.f32.gmra.mxu1 %v1388_v7  ;;  %v1313_v28 = vsub.f32 %v1241_v54, %v5885_v0 }
 0x1a6   :  { %v932_v46 = vpop.f32.mrf.mxu0 }
 0x1a7   :  { %v1389_v30 = vmax.f32 %v1365_v52, 0.0  ;;  %v1335_v35 = vadd.f32 %v1311_v13, %v932_v46 }
 0x1a8   :  { %v6046_v27 = vpop.f32.mrf.mxu0 }
 0x1a9   :  { %v1366_v44 = vadd.f32 %v5951_v45, %v1335_v35  ;;  %5002 = vmatprep.mubr.f32.mxu1 %v1389_v30 }
 0x1aa   :  { %v938_v50 = vpop.f32.mrf.mxu0 }
 0x1ab   :  { %v1390_v25 = vmax.f32 %v1366_v44, 0.0  ;;  %v1336_v7 = vadd.f32 %v1312_v15, %v938_v50 }
 0x1ac   :  { %v6051_v22 = vpop.f32.mrf.mxu0 }
 0x1ad   :  { %v1367_v10 = vadd.f32 %v5951_v45, %v1336_v7  ;;  %5003 = vmatmul.mubr.f32.gmra.mxu1 %v1390_v25 }
 0x1ae   :  { %v944_v59 = vpop.f32.mrf.mxu0 }
 0x1af   :  { %v1391_v52 = vmax.f32 %v1367_v10, 0.0  ;;  %v1337_v13 = vadd.f32 %v1313_v28, %v944_v59 }
 0x1b0   :  { %v6055_v46 = vpop.f32.mrf.mxu0 }
 0x1b1   :  { %v1368_v30 = vadd.f32 %v5951_v45, %v1337_v13  ;;  %5005 = vmatprep.mubr.f32.mxu1 %v1391_v52 }
 0x1b2   :  { %v950_v32 = vpop.f32.mrf.mxu0 }
 0x1b3   :  { %v1392_v56 = vmax.f32 %v1368_v30, 0.0  ;;  %v1338_v35 = vadd.f32 %v5907_v8, %v950_v32 }
 0x1b4   :  { %v6059_v44 = vpop.f32.mrf.mxu0 }
 0x1b5   :  { %v1369_v15 = vadd.f32 %v5951_v45, %v1338_v35  ;;  %5006 = vmatmul.mubr.f32.gmra.mxu1 %v1392_v56 }
 0x1b6   :  { %v956_v50 = vpop.f32.mrf.mxu0 }
 0x1b7   :  { %v1393_v25 = vmax.f32 %v1369_v15, 0.0  ;;  %v1339_v0 = vadd.f32 %v5911_v60, %v956_v50 }
 0x1b8   :  { %v6063_v54 = vpop.f32.mrf.mxu0 }
 0x1b9   :  { %v1370_v7 = vadd.f32 %v5951_v45, %v1339_v0  ;;  %5008 = vmatprep.mubr.f32.mxu1 %v1393_v25 }
 0x1ba   :  { %v962_v10 = vpop.f32.mrf.mxu0 }
 0x1bb   :  { %v1394_v28 = vmax.f32 %v1370_v7, 0.0  ;;  %v1340_v8 = vadd.f32 %v1316_v20, %v962_v10 }
 0x1bc   :  { %v6069_v59 = vpop.f32.mrf.mxu0 }
 0x1bd   :  { %v1371_v52 = vadd.f32 %v5951_v45, %v1340_v8  ;;  %5009 = vmatmul.mubr.f32.gmra.mxu1 %v1394_v28 }
 0x1be   :  { %v968_v13 = vpop.f32.mrf.mxu0 }
 0x1bf   :  { %v1395_v30 = vmax.f32 %v1371_v52, 0.0  ;;  %v1341_v60 = vadd.f32 %v1317_v31, %v968_v13 }
 0x1c0   :  { %v6075_v32 = vpop.f32.mrf.mxu0 }
 0x1c1   :  { %v1372_v56 = vadd.f32 %v5951_v45, %v1341_v60  ;;  %5011 = vmatprep.mubr.f32.mxu1 %v1395_v30 }
 0x1c2   :  { %v974_v35 = vpop.f32.mrf.mxu0 }
 0x1c3   :  { %v1396_v15 = vmax.f32 %v1372_v56, 0.0  ;;  %v1342_v14 = vadd.f32 %v5919_v62, %v974_v35  ;;  %v7832_v35 = vmov 0.0  }
 0x1c4   :  { %v6079_v20 = vpop.f32.mrf.mxu0 }
 0x1c5   :  { %v1373_v50 = vadd.f32 %v5951_v45, %v1342_v14  ;;  %5012 = vmatmul.mubr.f32.gmra.mxu1 %v1396_v15 }
 0x1c6   :  { %v980_v25 = vpop.f32.mrf.mxu0 }
 0x1c7   :  { %v1397_v0 = vmax.f32 %v1373_v50, 0.0  ;;  %v1343_v7 = vadd.f32 %v5929_v42, %v980_v25 }
 0x1c8   :  { %v6083_v21 = vpop.f32.mrf.mxu0 }
 0x1c9   :  { %v1374_v31 = vadd.f32 %v5951_v45, %v1343_v7  ;;  %5014 = vmatprep.mubr.f32.mxu1 %v1397_v0 }
 0x1ca   :  { %v986_v10 = vpop.f32.mrf.mxu0 }
 0x1cb   :  { %v1398_v28 = vmax.f32 %v1374_v31, 0.0  ;;  %v1344_v62 = vadd.f32 %v1320_v34, %v986_v10 }
 0x1cc   :  { %v6089_v8 = vpop.f32.mrf.mxu0 }
 0x1cd   :  { %v1375_v52 = vadd.f32 %v5951_v45, %v1344_v62  ;;  %5015 = vmatmul.mubr.f32.gmra.mxu1 %v1398_v28 }
 0x1ce   :  { %v992_v13 = vpop.f32.mrf.mxu0 }
 0x1cf   :  { %v1399_v30 = vmax.f32 %v1375_v52, 0.0  ;;  %v1345_v42 = vadd.f32 %v1321_v55, %v992_v13 }
 0x1d1   :  { %v1376_v60 = vadd.f32 %v5951_v45, %v1345_v42  ;;  %5017 = vmatprep.mubr.f32.mxu1 %v1399_v30  ;;  %v1013_v30 = vadd.f32 %v5946_v39, %v6024_v48  ;;  %v4772_v48 = vld [vmem:[%s7773_s3 + $0xa8] sm:$0xff] }
 0x1d3   :  { %v1400_v56 = vmax.f32 %v1376_v60, 0.0  ;;  %v6158_v0 = vadd.f32 %v1013_v30, %v5904_v19  ;;  %v4766_v30 = vld [vmem:[%s7773_s3 + $0x78] sm:$0xff] }
 0x1d5   :  { %5018 = vmatmul.mubr.f32.gmra.mxu1 %v1400_v56 }
 0x1d6   :  { %2506 = vmatprep.mubr.f32.mxu1 %v7832_v35 }
 0x23d   :  { %v4986_v34 = vpop.f32.mrf.mxu1 }
 0x23e   :  { %v6103_v15 = vadd.f32 %v4986_v34, %v6100_v40 }
 0x23f   :  { %v1490_v14 = vpop.f32.mrf.mxu1 }
 0x240   :  { %v1616_v53 = vsel %vm161_vm0, %v6103_v15, -inf  ;;  %v6108_v29 = vadd.f32 %v6100_v40, %v1490_v14  ;;  %v1012_v14 = vadd.f32 %v5946_v39, %v6019_v51  ;;  %v4773_v51 = vld [vmem:[%s7773_s3 + $0xb0] sm:$0xff] }
 0x241   :  { %v1617_v55 = vrot.slane %v1616_v53, 4  ;;  %2466 = vmatprep.subr.mxu1 %v4773_v51 }
 0x242   :  { %v1609_v45 = vsel %vm161_vm0, %v6108_v29, -inf  ;;  %2467 = vmatpush1.msra.mxu1 %v4772_v48  ;;  %v6155_v48 = vadd.f32 %v1012_v14, %v5904_v19 }
 0x243   :  { %v1618_v50 = vmax.f32 %v1616_v53, %v1617_v55  ;;  %v1610_v25 = vrot.slane %v1609_v45, 4 }
 0x245   :  { %v1619_v28 = vrot.slane %v1618_v50, 2  ;;  %v1611_v62 = vmax.f32 %v1609_v45, %v1610_v25  ;;  %v4989_v52 = vpop.f32.mrf.mxu1 }
 0x246   :  { %v6119_v42 = vadd.f32 %v4989_v52, %v6100_v40  ;;  %v1014_v52 = vadd.f32 %v5946_v39, %v6030_v3  ;;  %v4769_v3 = vld [vmem:[%s7773_s3 + $0x90] sm:$0xff] }
 0x247   :  { %v1620_v53 = vmax.f32 %v1618_v50, %v1619_v28  ;;  %v1612_v55 = vrot.slane %v1611_v62, 2  ;;  %v1500_v45 = vpop.f32.mrf.mxu1 }
 0x248   :  { %v1630_v60 = vsel %vm161_vm0, %v6119_v42, -inf  ;;  %v6134_v56 = vadd.f32 %v6100_v40, %v1500_v45  ;;  %v4770_v45 = vld [vmem:[%s7773_s3 + $0x98] sm:$0xff]  ;;  %v6161_v13 = vadd.f32 %v1014_v52, %v5904_v19  ;;  %v1015_v52 = vadd.f32 %v5946_v39, %v6036_v16 }
 0x249   :  { %v1621_v50 = vrot.slane %v1620_v53, 1  ;;  %v1613_v28 = vmax.f32 %v1611_v62, %v1612_v55  ;;  %v1631_v34 = vrot.slane %v1630_v60, 4  ;;  %2468 = vmatprep.subr.mxu1 %v4770_v45 }
 0x24a   :  { %v1623_v25 = vsel %vm161_vm0, %v6134_v56, -inf  ;;  %2469 = vmatpush1.msra.mxu1 %v4769_v3  ;;  %v1016_v3 = vadd.f32 %v5946_v39, %v6041_v12  ;;  %v4763_v12 = vld [vmem:[%s7773_s3 + $0x60] sm:$0xff] }
 0x24b   :  { %v1622_v51 = vmax.f32 %v1620_v53, %v1621_v50  ;;  %v1614_v10 = vrot.slane %v1613_v28, 1  ;;  %v1632_v31 = vmax.f32 %v1630_v60, %v1631_v34  ;;  %v1624_v7 = vrot.slane %v1623_v25, 4  ;;  %v4767_v60 = vld [vmem:[%s7773_s3 + $0x80] sm:$0xff] }
 0x24c   :  { %2470 = vmatprep.subr.mxu1 %v4767_v60  ;;  %v1017_v34 = vadd.f32 %v5946_v39, %v6046_v27  ;;  %v1018_v27 = vadd.f32 %v5946_v39, %v6051_v22  ;;  %v1019_v60 = vadd.f32 %v5946_v39, %v6055_v46  ;;  %v6201_v22 = vadd.f32 %v1016_v3, %v5904_v19 }
 0x24d   :  { %v1778_v53 = vsub.f32 %v6103_v15, %v1622_v51  ;;  %v1615_v50 = vmax.f32 %v1613_v28, %v1614_v10  ;;  %v1633_v45 = vrot.slane %v1632_v31, 2  ;;  %v1625_v55 = vmax.f32 %v1623_v25, %v1624_v7  ;;  %v4992_v14 = vpop.f32.mrf.mxu1  ;;  %2471 = vmatpush1.msra.mxu1 %v4766_v30  ;;  %v4764_v7 = vld [vmem:[%s7773_s3 + $0x68] sm:$0xff] }
 0x24e   :  { %v6178_v15 = vadd.f32 %v4992_v14, %v6100_v40  ;;  %2472 = vmatprep.subr.mxu1 %v4764_v7  ;;  %v1020_v3 = vadd.f32 %v5946_v39, %v6059_v44 }
 0x24f   :  { %v1803_v10 = vmul.f32 1.442695, %v1778_v53  ;;  %v1777_v25 = vsub.f32 %v6108_v29, %v1615_v50  ;;  %v1634_v28 = vmax.f32 %v1632_v31, %v1633_v45  ;;  %v1626_v51 = vrot.slane %v1625_v55, 2  ;;  %v1510_v16 = vpop.f32.mrf.mxu1  ;;  %2473 = vmatpush1.msra.mxu1 %v4763_v12 }
 0x250   :  { %v1644_v14 = vsel %vm161_vm0, %v6178_v15, -inf  ;;  %v6194_v53 = vadd.f32 %v6100_v40, %v1510_v16  ;;  %5020 = vmatprep.subr.mxu1 %v7832_v35  ;;  %v6198_v45 = vadd.f32 %v1015_v52, %v5904_v19  ;;  %v6212_v52 = vadd.f32 %v1019_v60, %v5904_v19 }
 0x251   :  { %5134 = vpow2.f32 %v1803_v10  ;;  %v1801_v29 = vmul.f32 1.442695, %v1777_v25  ;;  %v1635_v31 = vrot.slane %v1634_v28, 1  ;;  %v1627_v50 = vmax.f32 %v1625_v55, %v1626_v51 }
 0x252   :  { %v1645_v46 = vrot.slane %v1644_v14, 4  ;;  %v1637_v30 = vsel %vm161_vm0, %v6194_v53, -inf  ;;  %v6206_v10 = vadd.f32 %v1017_v34, %v5904_v19  ;;  %v6209_v55 = vadd.f32 %v1018_v27, %v5904_v19 }
 0x253   :  { %5136 = vpow2.f32 %v1801_v29  ;;  %v1636_v7 = vmax.f32 %v1634_v28, %v1635_v31  ;;  %v1628_v16 = vrot.slane %v1627_v50, 1  ;;  %v1638_v12 = vrot.slane %v1637_v30, 4 }
 0x254   :  { %v1646_v25 = vmax.f32 %v1644_v14, %v1645_v46  ;;  %v1021_v31 = vadd.f32 %v5946_v39, %v6063_v54  ;;  %v1022_v34 = vadd.f32 %v5946_v39, %v6069_v59  ;;  %v1023_v19 = vadd.f32 %v5946_v39, %v6075_v32 }
 0x255   :  { %v1780_v51 = vsub.f32 %v6119_v42, %v1636_v7  ;;  %v1629_v62 = vmax.f32 %v1627_v50, %v1628_v16  ;;  %v1639_v29 = vmax.f32 %v1637_v30, %v1638_v12  ;;  %v4995_v28 = vpop.f32.mrf.mxu1  ;;  %v1024_v50 = vadd.f32 %v5946_v39, %v6079_v20 }
 0x256   :  { %v1647_v27 = vrot.slane %v1646_v25, 2  ;;  %v6222_v9 = vadd.f32 %v4995_v28, %v6100_v40  ;;  %v6235_v32 = vadd.f32 %v1020_v3, %v5926_v36  ;;  %v6242_v28 = vadd.f32 %v1021_v31, %v5926_v36 }
 0x257   :  { %v1807_v60 = vmul.f32 1.442695, %v1780_v51  ;;  %v1779_v44 = vsub.f32 %v6134_v56, %v1629_v62  ;;  %v1640_v42 = vrot.slane %v1639_v29, 2  ;;  %v1520_v14 = vpop.f32.mrf.mxu1  ;;  %v1025_v56 = vadd.f32 %v5946_v39, %v6083_v21 }
 0x258   :  { %v1648_v46 = vmax.f32 %v1646_v25, %v1647_v27  ;;  %v1658_v54 = vsel %vm161_vm0, %v6222_v9, -inf  ;;  %v6232_v59 = vadd.f32 %v6100_v40, %v1520_v14  ;;  %v6248_v3 = vadd.f32 %v1023_v19, %v5926_v36 }
 0x259   :  { %5138 = vpow2.f32 %v1807_v60  ;;  %v1805_v30 = vmul.f32 1.442695, %v1779_v44  ;;  %v1641_v7 = vmax.f32 %v1639_v29, %v1640_v42  ;;  %v1659_v16 = vrot.slane %v1658_v54, 4 }
 0x25a   :  { %v1649_v62 = vrot.slane %v1648_v46, 1  ;;  %v1651_v20 = vsel %vm161_vm0, %v6232_v59, -inf  ;;  %v6245_v29 = vadd.f32 %v1022_v34, %v5926_v36  ;;  %v6251_v21 = vadd.f32 %v1024_v50, %v5926_v36 }
 0x25b   :  { %5140 = vpow2.f32 %v1805_v30  ;;  %v1642_v12 = vrot.slane %v1641_v7, 1  ;;  %v1660_v25 = vmax.f32 %v1658_v54, %v1659_v16  ;;  %v1652_v51 = vrot.slane %v1651_v20, 4 }
 0x25c   :  { %v1650_v27 = vmax.f32 %v1648_v46, %v1649_v62  ;;  %7833 = vst [vmem:[#allocation16_spill] sm:$0xff] %v6251_v21  ;;  %v6256_v54 = vadd.f32 %v1025_v56, %v5926_v36  ;;  %v1026_v31 = vadd.f32 %v5946_v39, %v6089_v8 }
 0x25d   :  { %v1643_v60 = vmax.f32 %v1641_v7, %v1642_v12  ;;  %v1661_v44 = vrot.slane %v1660_v25, 2  ;;  %v1653_v42 = vmax.f32 %v1651_v20, %v1652_v51  ;;  %v4998_v14 = vpop.f32.mrf.mxu1 }
 0x25e   :  { %v6253_v30 = vpop.eup %5134  ;;  %7834 = vst [vmem:[#allocation17_spill] sm:$0xff] %v6256_v54  ;;  %v1782_v34 = vsub.f32 %v6178_v15, %v1650_v27  ;;  %v6262_v19 = vadd.f32 %v4998_v14, %v6100_v40  ;;  %v6279_v63 = vadd.f32 %v1026_v31, %v5926_v36 }
 0x25f   :  { %v1856_v50 = vsel %vm161_vm0, %v6253_v30, 0.0  ;;  %v1781_v46 = vsub.f32 %v6194_v53, %v1643_v60  ;;  %v1662_v7 = vmax.f32 %v1660_v25, %v1661_v44  ;;  %v1654_v16 = vrot.slane %v1653_v42, 2  ;;  %v1530_v62 = vpop.f32.mrf.mxu1  ;;  %v994_v53 = vpop.f32.mrf.mxu0 }
 0x260   :  { %v6267_v20 = vpop.eup %5136  ;;  %v1857_v56 = vrot.slane %v1856_v50, 4  ;;  %v1811_v12 = vmul.f32 1.442695, %v1782_v34  ;;  %v1672_v8 = vsel %vm161_vm0, %v6262_v19, -inf  ;;  %v6272_v15 = vadd.f32 %v6100_v40, %v1530_v62  ;;  %7835 = vst [vmem:[#allocation18_spill] sm:$0xff] %v6279_v63 }
 0x261   :  { %v1849_v51 = vsel %vm161_vm0, %v6267_v20, 0.0  ;;  %v1809_v27 = vmul.f32 1.442695, %v1781_v46  ;;  %v1663_v14 = vrot.slane %v1662_v7, 1  ;;  %v1655_v1 = vmax.f32 %v1653_v42, %v1654_v16 }
 0x262   :  { %v1858_v25 = vadd.f32 %v1857_v56, %v1856_v50  ;;  %v1850_v60 = vrot.slane %v1849_v51, 4  ;;  %5142 = vpow2.f32 %v1811_v12  ;;  %v1673_v44 = vrot.slane %v1672_v8, 4 }
 0x263   :  { %5144 = vpow2.f32 %v1809_v27  ;;  %v1664_v2 = vmax.f32 %v1662_v7, %v1663_v14  ;;  %v1656_v34 = vrot.slane %v1655_v1, 1  ;;  %v1665_v38 = vsel %vm161_vm0, %v6272_v15, -inf }
 0x264   :  { %v1859_v4 = vrot.slane %v1858_v25, 2  ;;  %v1851_v62 = vadd.f32 %v1850_v60, %v1849_v51  ;;  %v1674_v41 = vmax.f32 %v1672_v8, %v1673_v44  ;;  %v1666_v17 = vrot.slane %v1665_v38, 4 }
 0x265   :  { %v6282_v42 = vadd.f32 %v5946_v39, %v994_v53  ;;  %v1784_v50 = vsub.f32 %v6222_v9, %v1664_v2  ;;  %v1657_v46 = vmax.f32 %v1655_v1, %v1656_v34  ;;  %v5001_v16 = vpop.f32.mrf.mxu1 }
 0x266   :  { %v6285_v56 = vpop.eup %5138  ;;  %v1860_v7 = vadd.f32 %v1859_v4, %v1858_v25  ;;  %v1852_v12 = vrot.slane %v1851_v62, 2  ;;  %v1675_v27 = vrot.slane %v1674_v41, 2  ;;  %v1667_v14 = vmax.f32 %v1665_v38, %v1666_v17 }
 0x267   :  { %v1870_v8 = vsel %vm161_vm0, %v6285_v56, 0.0  ;;  %v1815_v51 = vmul.f32 1.442695, %v1784_v50  ;;  %v1783_v31 = vsub.f32 %v6232_v59, %v1657_v46  ;;  %v6291_v60 = vadd.f32 %v5001_v16, %v6100_v40  ;;  %v1540_v59 = vpop.f32.mrf.mxu1 }
 0x268   :  { %v6293_v39 = vpop.eup %5140  ;;  %v1861_v2 = vrot.slane %v1860_v7, 1  ;;  %v1853_v1 = vadd.f32 %v1852_v12, %v1851_v62  ;;  %v1871_v9 = vrot.slane %v1870_v8, 4  ;;  %v1676_v53 = vmax.f32 %v1674_v41, %v1675_v27 }
 0x269   :  { %v1863_v4 = vsel %vm161_vm0, %v6293_v39, 0.0  ;;  %5146 = vpow2.f32 %v1815_v51  ;;  %v1813_v17 = vmul.f32 1.442695, %v1783_v31  ;;  %v1668_v38 = vrot.slane %v1667_v14, 2 }
 0x26a   :  { %v1862_v25 = vadd.f32 %v1861_v2, %v1860_v7  ;;  %v1854_v44 = vrot.slane %v1853_v1, 1  ;;  %v1872_v34 = vadd.f32 %v1871_v9, %v1870_v8  ;;  %v1864_v50 = vrot.slane %v1863_v4, 4 }
 0x26b   :  { %5148 = vpow2.f32 %v1813_v17  ;;  %v1677_v46 = vrot.slane %v1676_v53, 1  ;;  %v1669_v16 = vmax.f32 %v1667_v14, %v1668_v38  ;;  %v1686_v18 = vsel %vm161_vm0, %v6291_v60, -inf }
 0x26c   :  { %5150 = vrcp.f32 %v1862_v25  ;;  %v1855_v62 = vadd.f32 %v1854_v44, %v1853_v1  ;;  %v1873_v41 = vrot.slane %v1872_v34, 2  ;;  %v1865_v12 = vadd.f32 %v1864_v50, %v1863_v4 }
 0x26d   :  { %v1678_v27 = vmax.f32 %v1676_v53, %v1677_v46  ;;  %v1670_v23 = vrot.slane %v1669_v16, 1  ;;  %v1687_v51 = vrot.slane %v1686_v18, 4  ;;  %v6300_v31 = vadd.f32 %v6100_v40, %v1540_v59  ;;  %v5004_v7 = vpop.f32.mrf.mxu1 }
 0x26e   :  { %5152 = vrcp.f32 %v1855_v62  ;;  %v1874_v8 = vadd.f32 %v1873_v41, %v1872_v34  ;;  %v1866_v2 = vrot.slane %v1865_v12, 2  ;;  %v6303_v9 = vadd.f32 %v5004_v7, %v6100_v40 }
 0x26f   :  { %v6305_v14 = vpop.eup %5142  ;;  %v1786_v17 = vsub.f32 %v6262_v19, %v1678_v27  ;;  %v1671_v1 = vmax.f32 %v1669_v16, %v1670_v23  ;;  %v1688_v38 = vmax.f32 %v1686_v18, %v1687_v51  ;;  %v1679_v53 = vsel %vm161_vm0, %v6300_v31, -inf  ;;  %v1550_v26 = vpop.f32.mrf.mxu1 }
 0x270   :  { %v6310_v4 = vpop.eup %5144  ;;  %v1875_v25 = vrot.slane %v1874_v8, 1  ;;  %v1867_v44 = vadd.f32 %v1866_v2, %v1865_v12  ;;  %v1884_v34 = vsel %vm161_vm0, %v6305_v14, 0.0  ;;  %v1680_v50 = vrot.slane %v1679_v53, 4 }
 0x271   :  { %v1885_v59 = vrot.slane %v1884_v34, 4  ;;  %v1877_v46 = vsel %vm161_vm0, %v6310_v4, 0.0  ;;  %v1819_v62 = vmul.f32 1.442695, %v1786_v17  ;;  %v1785_v19 = vsub.f32 %v6272_v15, %v1671_v1 }
 0x272   :  { %v1876_v23 = vadd.f32 %v1875_v25, %v1874_v8  ;;  %v1868_v18 = vrot.slane %v1867_v44, 1  ;;  %v1878_v16 = vrot.slane %v1877_v46, 4  ;;  %v1689_v41 = vrot.slane %v1688_v38, 2 }
 0x273   :  { %v1886_v27 = vadd.f32 %v1885_v59, %v1884_v34  ;;  %5154 = vpow2.f32 %v1819_v62  ;;  %v1817_v51 = vmul.f32 1.442695, %v1785_v19  ;;  %v1681_v7 = vmax.f32 %v1679_v53, %v1680_v50 }
 0x274   :  { %5156 = vrcp.f32 %v1876_v23  ;;  %v1869_v12 = vadd.f32 %v1868_v18, %v1867_v44  ;;  %v1879_v2 = vadd.f32 %v1878_v16, %v1877_v46  ;;  %v1690_v57 = vmax.f32 %v1688_v38, %v1689_v41 }
 0x275   :  { %v1887_v49 = vrot.slane %v1886_v27, 2  ;;  %5158 = vpow2.f32 %v1817_v51  ;;  %v1682_v63 = vrot.slane %v1681_v7, 2  ;;  %v1700_v17 = vsel %vm161_vm0, %v6303_v9, -inf }
 0x276   :  { %v6319_v15 = vpop.eup %5146  ;;  %5160 = vrcp.f32 %v1869_v12  ;;  %v1880_v8 = vrot.slane %v1879_v2, 2  ;;  %v1691_v1 = vrot.slane %v1690_v57, 1  ;;  %v1701_v25 = vrot.slane %v1700_v17, 4 }
 0x277   :  { %v1888_v34 = vadd.f32 %v1887_v49, %v1886_v27  ;;  %v1898_v53 = vsel %vm161_vm0, %v6319_v15, 0.0  ;;  %v1683_v44 = vmax.f32 %v1681_v7, %v1682_v63  ;;  %v6324_v38 = vadd.f32 %v6100_v40, %v1550_v26 }
 0x278   :  { %v6326_v50 = vpop.eup %5148  ;;  %v1881_v59 = vadd.f32 %v1880_v8, %v1879_v2  ;;  %v1899_v46 = vrot.slane %v1898_v53, 4  ;;  %v1692_v62 = vmax.f32 %v1690_v57, %v1691_v1  ;;  %v1702_v19 = vmax.f32 %v1700_v17, %v1701_v25 }
 0x279   :  { %v5151_v23 = vpop.eup %5150  ;;  %v1889_v18 = vrot.slane %v1888_v34, 1  ;;  %v1891_v16 = vsel %vm161_vm0, %v6326_v50, 0.0  ;;  %v1684_v41 = vrot.slane %v1683_v44, 1  ;;  %v6332_v49 = vsel %vm161_vm0, %v6324_v38, -inf }
 0x27a   :  { %v2042_v63 = vmul.f32 %v5151_v23, %v6253_v30  ;;  %v1882_v26 = vrot.slane %v1881_v59, 1  ;;  %v1900_v27 = vadd.f32 %v1899_v46, %v1898_v53  ;;  %v1892_v51 = vrot.slane %v1891_v16, 4 }
 0x27b   :  { %v5153_v7 = vpop.eup %5152  ;;  %v1890_v12 = vadd.f32 %v1889_v18, %v1888_v34  ;;  %v1788_v57 = vsub.f32 %v6291_v60, %v1692_v62  ;;  %v1685_v2 = vmax.f32 %v1683_v44, %v1684_v41  ;;  %v1703_v17 = vrot.slane %v1702_v19, 2 }
 0x27c   :  { %v2090_v8 = vmul.f32 %v5967_v43, %v2042_v63  ;;  %v2041_v1 = vmul.f32 %v5153_v7, %v6267_v20  ;;  %v1883_v25 = vadd.f32 %v1882_v26, %v1881_v59  ;;  %v1901_v21 = vrot.slane %v1900_v27, 2 }
 0x27d   :  { %5162 = vrcp.f32 %v1890_v12  ;;  %v1893_v54 = vadd.f32 %v1892_v51, %v1891_v16  ;;  %v1823_v33 = vmul.f32 1.442695, %v1788_v57  ;;  %v1787_v30 = vsub.f32 %v6300_v31, %v1685_v2 }
 0x27e   :  { %v2120_v53 = vsel %vm161_vm0, %v2090_v8, 0.0  ;;  %v2089_v46 = vmul.f32 %v5959_v47, %v2041_v1  ;;  %5164 = vrcp.f32 %v1883_v25  ;;  %v1902_v34 = vadd.f32 %v1901_v21, %v1900_v27 }
 0x27f   :  { %v2121_v60 = vrot.slane %v2120_v53, 4  ;;  %v1894_v44 = vrot.slane %v1893_v54, 2  ;;  %5166 = vpow2.f32 %v1823_v33  ;;  %v1821_v62 = vmul.f32 1.442695, %v1787_v30 }
 0x280   :  { %v6341_v43 = vpop.eup %5154  ;;  %v2113_v20 = vsel %vm161_vm0, %v2089_v46, 0.0  ;;  %v1903_v59 = vrot.slane %v1902_v34, 1  ;;  %v1704_v23 = vmax.f32 %v1702_v19, %v1703_v17  ;;  %v1694_v18 = vrot.slane %v6332_v49, 4 }
 0x281   :  { %v5157_v16 = vpop.eup %5156  ;;  %v2122_v31 = vadd.f32 %v2121_v60, %v2120_v53  ;;  %v2114_v41 = vrot.slane %v2113_v20, 4  ;;  %v1895_v63 = vadd.f32 %v1894_v44, %v1893_v54  ;;  %v1912_v47 = vsel %vm161_vm0, %v6341_v43, 0.0 }
 0x282   :  { %v6347_v21 = vpop.eup %5158  ;;  %v2044_v33 = vmul.f32 %v5157_v16, %v6285_v56  ;;  %v1904_v26 = vadd.f32 %v1903_v59, %v1902_v34  ;;  %v1913_v27 = vrot.slane %v1912_v47, 4  ;;  %5168 = vpow2.f32 %v1821_v62 }
 0x283   :  { %v5161_v51 = vpop.eup %5160  ;;  %v2123_v7 = vrot.slane %v2122_v31, 2  ;;  %v2115_v12 = vadd.f32 %v2114_v41, %v2113_v20  ;;  %v1896_v19 = vrot.slane %v1895_v63, 1  ;;  %v1905_v57 = vsel %vm161_vm0, %v6347_v21, 0.0 }
 0x284   :  { %v2092_v2 = vmul.f32 %v5982_v5, %v2044_v33  ;;  %v2043_v54 = vmul.f32 %v5161_v51, %v6293_v39  ;;  %5170 = vrcp.f32 %v1904_v26  ;;  %v1914_v17 = vadd.f32 %v1913_v27, %v1912_v47 }
 0x285   :  { %v2124_v8 = vadd.f32 %v2123_v7, %v2122_v31  ;;  %v2116_v1 = vrot.slane %v2115_v12, 2  ;;  %v1897_v25 = vadd.f32 %v1896_v19, %v1895_v63  ;;  %v1906_v56 = vrot.slane %v1905_v57, 4 }
 0x286   :  { %v2134_v30 = vsel %vm161_vm0, %v2092_v2, 0.0  ;;  %v2091_v53 = vmul.f32 %v5975_v6, %v2043_v54  ;;  %v1915_v46 = vrot.slane %v1914_v17, 2  ;;  %v1705_v34 = vrot.slane %v1704_v23, 1 }
 0x287   :  { %v2125_v60 = vrot.slane %v2124_v8, 1  ;;  %v2117_v44 = vadd.f32 %v2116_v1, %v2115_v12  ;;  %v2135_v62 = vrot.slane %v2134_v30, 4  ;;  %5172 = vrcp.f32 %v1897_v25 }
 0x288   :  { %v2127_v5 = vsel %vm161_vm0, %v2091_v53, 0.0  ;;  %v1916_v20 = vadd.f32 %v1915_v46, %v1914_v17  ;;  %v1907_v39 = vadd.f32 %v1906_v56, %v1905_v57  ;;  %v1706_v59 = vmax.f32 %v1704_v23, %v1705_v34 }
 0x289   :  { %v6359_v16 = vadd.f32 %v6282_v42, %v5926_v36  ;;  %v2118_v31 = vrot.slane %v2117_v44, 1  ;;  %v2136_v41 = vadd.f32 %v2135_v62, %v2134_v30  ;;  %v2128_v63 = vrot.slane %v2127_v5, 4 }
 0x28a   :  { %v5163_v47 = vpop.eup %5162  ;;  %v6361_v6 = vadd.f32 %v2125_v60, %v2124_v8  ;;  %v1917_v33 = vrot.slane %v1916_v20, 1  ;;  %v1908_v26 = vrot.slane %v1907_v39, 2  ;;  %v1790_v27 = vsub.f32 %v6303_v9, %v1706_v59 }
 0x28b   :  { %v5165_v51 = vpop.eup %5164  ;;  %v2137_v7 = vrot.slane %v2136_v41, 2  ;;  %v2129_v12 = vadd.f32 %v2128_v63, %v2127_v5  ;;  %v2046_v19 = vmul.f32 %v5163_v47, %v6305_v14  ;;  %v1695_v23 = vmax.f32 %v6332_v49, %v1694_v18  ;;  %v5007_v18 = vpop.f32.mrf.mxu1 }
 0x28c   :  { %v6366_v57 = vpop.eup %5166  ;;  %v2045_v36 = vmul.f32 %v5165_v51, %v6310_v4  ;;  %v1918_v42 = vadd.f32 %v1917_v33, %v1916_v20  ;;  %v1909_v2 = vadd.f32 %v1908_v26, %v1907_v39  ;;  %v1827_v54 = vmul.f32 1.442695, %v1790_v27 }
 0x28d   :  { %v6369_v17 = vadd.f32 %v2118_v31, %v2117_v44  ;;  %v2130_v8 = vrot.slane %v2129_v12, 2  ;;  %v2094_v1 = vmul.f32 %v5999_v24, %v2046_v19  ;;  %v1926_v9 = vsel %vm161_vm0, %v6366_v57, 0.0 }
 0x28e   :  { %v2093_v25 = vmul.f32 %v5991_v58, %v2045_v36  ;;  %5174 = vrcp.f32 %v1918_v42  ;;  %v1910_v14 = vrot.slane %v1909_v2, 1  ;;  %v1927_v49 = vrot.slane %v1926_v9, 4 }
 0x28f   :  { %v6375_v56 = vpop.eup %5168  ;;  %v6377_v4 = vadd.f32 %v2137_v7, %v2136_v41  ;;  %v2131_v30 = vadd.f32 %v2130_v8, %v2129_v12  ;;  %v2148_v53 = vsel %vm161_vm0, %v2094_v1, 0.0  ;;  %5176 = vpow2.f32 %v1827_v54  ;;  %v1560_v41 = vpop.f32.mrf.mxu1 }
 0x290   :  { %v2149_v46 = vrot.slane %v2148_v53, 4  ;;  %v2141_v24 = vsel %vm161_vm0, %v2093_v25, 0.0  ;;  %v1911_v34 = vadd.f32 %v1910_v14, %v1909_v2  ;;  %v1928_v60 = vadd.f32 %v1927_v49, %v1926_v9 }
 0x291   :  { %v5171_v44 = vpop.eup %5170  ;;  %v2132_v62 = vrot.slane %v2131_v30, 1  ;;  %v2142_v58 = vrot.slane %v2141_v24, 4  ;;  %v1919_v5 = vsel %vm161_vm0, %v6375_v56, 0.0  ;;  %v1696_v20 = vrot.slane %v1695_v23, 2  ;;  %v5010_v36 = vpop.f32.mrf.mxu1 }
 0x292   :  { %v6383_v39 = vadd.f32 %v2149_v46, %v2148_v53  ;;  %v2048_v59 = vmul.f32 %v5171_v44, %v6319_v15  ;;  %5178 = vrcp.f32 %v1911_v34  ;;  %v1929_v31 = vrot.slane %v1928_v60, 2 }
 0x293   :  { %v2139_v63 = vrot.slane %v6377_v4, 1  ;;  %v2143_v47 = vadd.f32 %v2142_v58, %v2141_v24  ;;  %v1920_v33 = vrot.slane %v1919_v5, 4  ;;  %v1697_v26 = vmax.f32 %v1695_v23, %v1696_v20  ;;  %v1570_v46 = vpop.f32.mrf.mxu1 }
 0x294   :  { %v5173_v27 = vpop.eup %5172  ;;  %v6387_v51 = vadd.f32 %v2132_v62, %v2131_v30  ;;  %v2096_v7 = vmul.f32 %v6016_v11, %v2048_v59  ;;  %v1930_v12 = vadd.f32 %v1929_v31, %v1928_v60  ;;  %v6391_v19 = vadd.f32 %v5007_v18, %v6100_v40 }
 0x295   :  { %v2144_v42 = vrot.slane %v2143_v47, 2  ;;  %v2047_v15 = vmul.f32 %v5173_v27, %v6326_v50  ;;  %v1921_v2 = vadd.f32 %v1920_v33, %v1919_v5  ;;  %v1698_v54 = vrot.slane %v1697_v26, 1 }
 0x296   :  { %v2151_v8 = vrot.slane %v6383_v39, 2  ;;  %v1931_v1 = vrot.slane %v1930_v12, 1  ;;  %v1714_v23 = vsel %vm161_vm0, %v6391_v19, -inf  ;;  %v6398_v9 = vadd.f32 %v6100_v40, %v1560_v41 }
 0x297   :  { %v6400_v11 = vadd.f32 %v2144_v42, %v2143_v47  ;;  %v6403_v25 = vsel %vm161_vm0, %v2096_v7, 0.0  ;;  %v2095_v14 = vmul.f32 %v6007_v37, %v2047_v15  ;;  %v1922_v49 = vrot.slane %v1921_v2, 2 }
 0x298   :  { %v1932_v50 = vadd.f32 %v1931_v1, %v1930_v12  ;;  %v1699_v18 = vmax.f32 %v1697_v26, %v1698_v54  ;;  %v1715_v30 = vrot.slane %v1714_v23, 4  ;;  %v1707_v53 = vsel %vm161_vm0, %v6398_v9, -inf }
 0x299   :  { %v6409_v24 = vsel %vm161_vm0, %v2095_v14, 0.0  ;;  %v1923_v34 = vadd.f32 %v1922_v49, %v1921_v2  ;;  %v1708_v60 = vrot.slane %v1707_v53, 4  ;;  %v6412_v44 = vadd.f32 %v5010_v36, %v6100_v40  ;;  %v5013_v49 = vpop.f32.mrf.mxu1 }
 0x29a   :  { %v2163_v62 = vrot.slane %v6403_v25, 4  ;;  %5180 = vrcp.f32 %v1932_v50  ;;  %v1789_v37 = vsub.f32 %v6324_v38, %v1699_v18  ;;  %v1716_v58 = vmax.f32 %v1714_v23, %v1715_v30 }
 0x29b   :  { %v5175_v5 = vpop.eup %5174  ;;  %v1924_v20 = vrot.slane %v1923_v34, 1  ;;  %v1709_v59 = vmax.f32 %v1707_v53, %v1708_v60  ;;  %v1728_v31 = vsel %vm161_vm0, %v6412_v44, -inf  ;;  %v6419_v41 = vadd.f32 %v6100_v40, %v1570_v46 }
 0x29c   :  { %v6421_v47 = vpop.eup %5176  ;;  %v2156_v33 = vrot.slane %v6409_v24, 4  ;;  %v2050_v26 = vmul.f32 %v5175_v5, %v6341_v43  ;;  %v1825_v27 = vmul.f32 1.442695, %v1789_v37  ;;  %v1717_v7 = vrot.slane %v1716_v58, 2 }
 0x29d   :  { %v1925_v12 = vadd.f32 %v1924_v20, %v1923_v34  ;;  %v1940_v38 = vsel %vm161_vm0, %v6421_v47, 0.0  ;;  %v1710_v36 = vrot.slane %v1709_v59, 2  ;;  %v1729_v42 = vrot.slane %v1728_v31, 4 }
 0x29e   :  { %v2098_v15 = vmul.f32 %v6158_v0, %v2050_v26  ;;  %v1941_v2 = vrot.slane %v1940_v38, 4  ;;  %5182 = vpow2.f32 %v1825_v27  ;;  %v1718_v54 = vmax.f32 %v1716_v58, %v1717_v7 }
 0x29f   :  { %v5179_v1 = vpop.eup %5178  ;;  %5184 = vrcp.f32 %v1925_v12  ;;  %v1711_v23 = vmax.f32 %v1709_v59, %v1710_v36  ;;  %v1730_v14 = vmax.f32 %v1728_v31, %v1729_v42  ;;  %v1721_v43 = vsel %vm161_vm0, %v6419_v41, -inf }
 0x2a0   :  { %v2176_v50 = vsel %vm161_vm0, %v2098_v15, 0.0  ;;  %v2049_v18 = vmul.f32 %v5179_v1, %v6347_v21  ;;  %v1942_v30 = vadd.f32 %v1941_v2, %v1940_v38  ;;  %v1719_v53 = vrot.slane %v1718_v54, 1 }
 0x2a1   :  { %v2177_v46 = vrot.slane %v2176_v50, 4  ;;  %v1712_v34 = vrot.slane %v1711_v23, 1  ;;  %v1731_v0 = vrot.slane %v1730_v14, 2  ;;  %v1722_v60 = vrot.slane %v1721_v43, 4 }
 0x2a2   :  { %v2097_v37 = vmul.f32 %v6155_v48, %v2049_v18  ;;  %v1943_v58 = vrot.slane %v1942_v30, 2  ;;  %v1720_v5 = vmax.f32 %v1718_v54, %v1719_v53  ;;  %v6434_v20 = vadd.f32 %v5013_v49, %v6100_v40 }
 0x2a3   :  { %v2178_v59 = vadd.f32 %v2177_v46, %v2176_v50  ;;  %v1713_v31 = vmax.f32 %v1711_v23, %v1712_v34  ;;  %v1732_v26 = vmax.f32 %v1730_v14, %v1731_v0  ;;  %v1723_v27 = vmax.f32 %v1721_v43, %v1722_v60  ;;  %v1580_v23 = vpop.f32.mrf.mxu1 }
 0x2a4   :  { %v2169_v7 = vsel %vm161_vm0, %v2097_v37, 0.0  ;;  %v1944_v21 = vadd.f32 %v1943_v58, %v1942_v30  ;;  %v1792_v12 = vsub.f32 %v6391_v19, %v1720_v5  ;;  %v1742_v38 = vsel %vm161_vm0, %v6434_v20, -inf }
 0x2a5   :  { %v2179_v36 = vrot.slane %v2178_v59, 2  ;;  %v2170_v42 = vrot.slane %v2169_v7, 4  ;;  %v1791_v48 = vsub.f32 %v6398_v9, %v1713_v31  ;;  %v1733_v15 = vrot.slane %v1732_v26, 1  ;;  %v5016_v34 = vpop.f32.mrf.mxu1 }
 0x2a6   :  { %v1945_v2 = vrot.slane %v1944_v21, 1  ;;  %v1831_v54 = vmul.f32 1.442695, %v1792_v12  ;;  %v1724_v1 = vrot.slane %v1723_v27, 2  ;;  %v1743_v49 = vrot.slane %v1742_v38, 4 }
 0x2a7   :  { %v5181_v14 = vpop.eup %5180  ;;  %v6441_v43 = vadd.f32 %v2179_v36, %v2178_v59  ;;  %v2171_v50 = vadd.f32 %v2170_v42, %v2169_v7  ;;  %v1829_v18 = vmul.f32 1.442695, %v1791_v48  ;;  %v1734_v30 = vmax.f32 %v1732_v26, %v1733_v15  ;;  %v1590_v36 = vpop.f32.mrf.mxu1 }
 0x2a8   :  { %v2052_v19 = vmul.f32 %v5181_v14, %v6366_v57  ;;  %v1946_v53 = vadd.f32 %v1945_v2, %v1944_v21  ;;  %5186 = vpow2.f32 %v1831_v54  ;;  %v1725_v46 = vmax.f32 %v1723_v27, %v1724_v1 }
 0x2a9   :  { %v6445_v9 = vadd.f32 %v2156_v33, %v6409_v24  ;;  %v2181_v0 = vrot.slane %v6441_v43, 1  ;;  %5188 = vpow2.f32 %v1829_v18  ;;  %v1794_v60 = vsub.f32 %v6412_v44, %v1734_v30 }
 0x2aa   :  { %v2100_v37 = vmul.f32 %v6198_v45, %v2052_v19  ;;  %5190 = vrcp.f32 %v1946_v53  ;;  %v1726_v58 = vrot.slane %v1725_v46, 1  ;;  %v1744_v5 = vmax.f32 %v1742_v38, %v1743_v49 }
 0x2ab   :  { %v6450_v59 = vpop.eup %5182  ;;  %v2172_v57 = vrot.slane %v2171_v50, 2  ;;  %v1835_v31 = vmul.f32 1.442695, %v1794_v60  ;;  %v6453_v26 = vadd.f32 %v6100_v40, %v1580_v23  ;;  %v6456_v24 = vadd.f32 %v5016_v34, %v6100_v40 }
 0x2ac   :  { %v5185_v33 = vpop.eup %5184  ;;  %v2190_v27 = vsel %vm161_vm0, %v2100_v37, 0.0  ;;  %v1933_v44 = vsel %vm161_vm0, %v6450_v59, 0.0  ;;  %v1727_v45 = vmax.f32 %v1725_v46, %v1726_v58  ;;  %v1745_v7 = vrot.slane %v1744_v5, 2 }
 0x2ad   :  { %v2191_v21 = vrot.slane %v2190_v27, 4  ;;  %v2051_v12 = vmul.f32 %v5185_v33, %v6375_v56  ;;  %v1934_v38 = vrot.slane %v1933_v44, 4  ;;  %5192 = vpow2.f32 %v1835_v31 }
 0x2ae   :  { %v1793_v42 = vsub.f32 %v6419_v41, %v1727_v45  ;;  %v1746_v48 = vmax.f32 %v1744_v5, %v1745_v7  ;;  %v1735_v15 = vsel %vm161_vm0, %v6453_v26, -inf  ;;  %v1756_v2 = vsel %vm161_vm0, %v6456_v24, -inf  ;;  %v5019_v41 = vpop.f32.mrf.mxu1 }
 0x2af   :  { %v6467_v54 = vadd.f32 %v2191_v21, %v2190_v27  ;;  %v2099_v1 = vmul.f32 %v6161_v13, %v2051_v12  ;;  %v1935_v49 = vadd.f32 %v1934_v38, %v1933_v44  ;;  %v1736_v23 = vrot.slane %v1735_v15, 4 }
 0x2b0   :  { %v1833_v14 = vmul.f32 1.442695, %v1793_v42  ;;  %v1747_v56 = vrot.slane %v1746_v48, 1  ;;  %v1757_v18 = vrot.slane %v1756_v2, 4  ;;  %v6471_v30 = vadd.f32 %v6100_v40, %v1590_v36  ;;  %v5326_v40 = vld [vmem:[%s7781_s10] ss:$0 sm:$0xff]  ;;  %v1600_v36 = vpop.f32.mrf.mxu1 }
 0x2b1   :  { %v6473_v19 = vadd.f32 %v2172_v57, %v2171_v50  ;;  %v2183_v53 = vsel %vm161_vm0, %v2099_v1, 0.0  ;;  %v1936_v46 = vrot.slane %v1935_v49, 2  ;;  %v1737_v34 = vmax.f32 %v1735_v15, %v1736_v23 }
 0x2b2   :  { %v2184_v60 = vrot.slane %v2183_v53, 4  ;;  %5194 = vpow2.f32 %v1833_v14  ;;  %v1748_v37 = vmax.f32 %v1746_v48, %v1747_v56  ;;  %v1758_v58 = vmax.f32 %v1756_v2, %v1757_v18 }
 0x2b3   :  { %v1937_v13 = vadd.f32 %v1936_v46, %v1935_v49  ;;  %v1738_v5 = vrot.slane %v1737_v34, 2  ;;  %v1749_v31 = vsel %vm161_vm0, %v6471_v30, -inf  ;;  %v6481_v33 = vadd.f32 %v5326_v40, %v5019_v41 }
 0x2b4   :  { %v2185_v57 = vadd.f32 %v2184_v60, %v2183_v53  ;;  %v1796_v27 = vsub.f32 %v6434_v20, %v1748_v37  ;;  %v1759_v44 = vrot.slane %v1758_v58, 2  ;;  %v1750_v12 = vrot.slane %v1749_v31, 4 }
 0x2b5   :  { %v6485_v45 = vpop.eup %5186  ;;  %v1938_v7 = vrot.slane %v1937_v13, 1  ;;  %v1739_v21 = vmax.f32 %v1737_v34, %v1738_v5  ;;  %v1770_v38 = vsel %vm161_vm0, %v6481_v33, -inf  ;;  %v6497_v53 = vadd.f32 %v5326_v40, %v1600_v36 }
 0x2b6   :  { %v6489_v42 = vpop.eup %5188  ;;  %v2186_v48 = vrot.slane %v2185_v57, 2  ;;  %v1954_v15 = vsel %vm161_vm0, %v6485_v45, 0.0  ;;  %v1839_v2 = vmul.f32 1.442695, %v1796_v27  ;;  %v1760_v1 = vmax.f32 %v1758_v58, %v1759_v44 }
 0x2b7   :  { %v5191_v49 = vpop.eup %5190  ;;  %v1939_v20 = vadd.f32 %v1938_v7, %v1937_v13  ;;  %v1955_v23 = vrot.slane %v1954_v15, 4  ;;  %v1947_v14 = vsel %vm161_vm0, %v6489_v42, 0.0  ;;  %v1740_v56 = vrot.slane %v1739_v21, 1 }
 0x2b8   :  { %v6495_v18 = vadd.f32 %v2186_v48, %v2185_v57  ;;  %v1948_v41 = vrot.slane %v1947_v14, 4  ;;  %5196 = vpow2.f32 %v1839_v2  ;;  %v1761_v60 = vrot.slane %v1760_v1, 1 }
 0x2b9   :  { %5198 = vrcp.f32 %v1939_v20  ;;  %v1956_v46 = vadd.f32 %v1955_v23, %v1954_v15  ;;  %v1741_v34 = vmax.f32 %v1739_v21, %v1740_v56  ;;  %v2054_v58 = vmul.f32 %v5191_v49, %v6421_v47 }
 0x2ba   :  { %v6499_v37 = vpop.eup %5192  ;;  %v1949_v13 = vadd.f32 %v1948_v41, %v1947_v14  ;;  %v1751_v5 = vmax.f32 %v1749_v31, %v1750_v12  ;;  %v1771_v27 = vrot.slane %v1770_v38, 4  ;;  %v1762_v48 = vmax.f32 %v1760_v1, %v1761_v60 }
 0x2bb   :  { %v1957_v44 = vrot.slane %v1956_v46, 2  ;;  %v1968_v57 = vsel %vm161_vm0, %v6499_v37, 0.0  ;;  %v1795_v7 = vsub.f32 %v6453_v26, %v1741_v34  ;;  %v1763_v47 = vsel %vm161_vm0, %v6497_v53, -inf }
 0x2bc   :  { %v1950_v40 = vrot.slane %v1949_v13, 2  ;;  %v1969_v36 = vrot.slane %v1968_v57, 4  ;;  %v1752_v2 = vrot.slane %v1751_v5, 2  ;;  %v1772_v15 = vmax.f32 %v1770_v38, %v1771_v27 }
 0x2bd   :  { %v1958_v21 = vadd.f32 %v1957_v44, %v1956_v46  ;;  %v1837_v20 = vmul.f32 1.442695, %v1795_v7  ;;  %v1798_v23 = vsub.f32 %v6456_v24, %v1762_v48  ;;  %v1764_v1 = vrot.slane %v1763_v47, 4 }
 0x2be   :  { %v1951_v31 = vadd.f32 %v1950_v40, %v1949_v13  ;;  %v1970_v12 = vadd.f32 %v1969_v36, %v1968_v57  ;;  %v1753_v49 = vmax.f32 %v1751_v5, %v1752_v2  ;;  %v1773_v14 = vrot.slane %v1772_v15, 2 }
 0x2bf   :  { %v6508_v56 = vpop.eup %5194  ;;  %v1959_v41 = vrot.slane %v1958_v21, 1  ;;  %5200 = vpow2.f32 %v1837_v20  ;;  %v1843_v26 = vmul.f32 1.442695, %v1798_v23  ;;  %v1765_v7 = vmax.f32 %v1763_v47, %v1764_v1 }
 0x2c0   :  { %v1952_v34 = vrot.slane %v1951_v31, 1  ;;  %v1971_v60 = vrot.slane %v1970_v12, 2  ;;  %v1961_v38 = vsel %vm161_vm0, %v6508_v56, 0.0  ;;  %v1754_v46 = vrot.slane %v1753_v49, 1 }
 0x2c1   :  { %v1960_v24 = vadd.f32 %v1959_v41, %v1958_v21  ;;  %v1962_v27 = vrot.slane %v1961_v38, 4  ;;  %5202 = vpow2.f32 %v1843_v26  ;;  %v1774_v44 = vmax.f32 %v1772_v15, %v1773_v14 }
 0x2c2   :  { %v1953_v13 = vadd.f32 %v1952_v34, %v1951_v31  ;;  %v1972_v57 = vadd.f32 %v1971_v60, %v1970_v12  ;;  %v1755_v5 = vmax.f32 %v1753_v49, %v1754_v46  ;;  %v6513_v48 = vmul.f32 %v6206_v10, %v2054_v58 }
 0x2c3   :  { %5204 = vrcp.f32 %v1960_v24  ;;  %v1963_v40 = vadd.f32 %v1962_v27, %v1961_v38  ;;  %v1775_v36 = vrot.slane %v1774_v44, 1  ;;  %v1766_v23 = vrot.slane %v1765_v7, 2 }
 0x2c4   :  { %5206 = vrcp.f32 %v1953_v13  ;;  %v1973_v2 = vrot.slane %v1972_v57, 1  ;;  %v1797_v20 = vsub.f32 %v6471_v30, %v1755_v5  ;;  %v2146_v15 = vrot.slane %v6400_v11, 1 }
 0x2c5   :  { %v6516_v50 = vpop.eup %5196  ;;  %v1964_v21 = vrot.slane %v1963_v40, 2  ;;  %v1776_v41 = vmax.f32 %v1774_v44, %v1775_v36  ;;  %v2152_v47 = vadd.f32 %v2151_v8, %v6383_v39  ;;  %v1767_v49 = vmax.f32 %v1765_v7, %v1766_v23 }
 0x2c6   :  { %v5199_v10 = vpop.eup %5198  ;;  %v1974_v58 = vadd.f32 %v1973_v2, %v1972_v57  ;;  %v1982_v31 = vsel %vm161_vm0, %v6516_v50, 0.0  ;;  %v1841_v12 = vmul.f32 1.442695, %v1797_v20  ;;  %v2140_v60 = vadd.f32 %v2139_v63, %v6377_v4 }
 0x2c7   :  { %v2053_v30 = vmul.f32 %v5199_v10, %v6450_v59  ;;  %v1965_v14 = vadd.f32 %v1964_v21, %v1963_v40  ;;  %v1983_v26 = vrot.slane %v1982_v31, 4  ;;  %v1800_v1 = vsub.f32 %v6481_v33, %v1776_v41 }
 0x2c8   :  { %5208 = vrcp.f32 %v1974_v58  ;;  %v1768_v34 = vrot.slane %v1767_v49, 1  ;;  %v2147_v39 = vadd.f32 %v2146_v15, %v6400_v11  ;;  %v2153_v59 = vrot.slane %v2152_v47, 1 }
 0x2c9   :  { %v2101_v8 = vmul.f32 %v6201_v22, %v2053_v30  ;;  %v1966_v38 = vrot.slane %v1965_v14, 1  ;;  %v1984_v46 = vadd.f32 %v1983_v26, %v1982_v31  ;;  %5210 = vpow2.f32 %v1841_v12 }
 0x2ca   :  { %v1847_v24 = vmul.f32 1.442695, %v1800_v1  ;;  %v1769_v27 = vmax.f32 %v1767_v49, %v1768_v34  ;;  %v2158_v44 = vrot.slane %v6445_v9, 2  ;;  %v2164_v4 = vadd.f32 %v2163_v62, %v6403_v25 }
 0x2cb   :  { %v2197_v33 = vsel %vm161_vm0, %v2101_v8, 0.0  ;;  %v1967_v13 = vadd.f32 %v1966_v38, %v1965_v14  ;;  %v1985_v57 = vrot.slane %v1984_v46, 2  ;;  %v2154_v25 = vadd.f32 %v2153_v59, %v2152_v47 }
 0x2cc   :  { %v6536_v63 = vpop.eup %5200  ;;  %v2198_v11 = vrot.slane %v2197_v33, 4  ;;  %5212 = vpow2.f32 %v1847_v24  ;;  %v1799_v22 = vsub.f32 %v6497_v53, %v1769_v27  ;;  %v2159_v5 = vadd.f32 %v2158_v44, %v6445_v9 }
 0x2cd   :  { %5214 = vrcp.f32 %v1967_v13  ;;  %v1986_v7 = vadd.f32 %v1985_v57, %v1984_v46  ;;  %v1975_v40 = vsel %vm161_vm0, %v6536_v63, 0.0  ;;  %v2165_v36 = vrot.slane %v2164_v4, 2 }
 0x2ce   :  { %v6542_v2 = vpop.eup %5202  ;;  %v1976_v20 = vrot.slane %v1975_v40, 4  ;;  %v1845_v23 = vmul.f32 1.442695, %v1799_v22  ;;  %v2160_v62 = vrot.slane %v2159_v5, 1  ;;  %v6544_v21 = vadd.f32 %v2198_v11, %v2197_v33 }
 0x2cf   :  { %v1987_v41 = vrot.slane %v1986_v7, 1  ;;  %v1996_v9 = vsel %vm161_vm0, %v6542_v2, 0.0  ;;  %v2166_v53 = vadd.f32 %v2165_v36, %v2164_v4  ;;  %v6550_v31 = vadd.f32 %v6369_v17, %v5509_v61 }
 0x2d0   :  { %v5205_v15 = vpop.eup %5204  ;;  %v1977_v10 = vadd.f32 %v1976_v20, %v1975_v40  ;;  %v1997_v58 = vrot.slane %v1996_v9, 4  ;;  %5216 = vpow2.f32 %v1845_v23  ;;  %v2161_v49 = vadd.f32 %v2160_v62, %v2159_v5 }
 0x2d1   :  { %v5207_v12 = vpop.eup %5206  ;;  %v1988_v47 = vadd.f32 %v1987_v41, %v1986_v7  ;;  %v2167_v30 = vrot.slane %v2166_v53, 1  ;;  %v7836_v14 = vrot.slane %v5509_v61, 1  ;;  %v6558_v1 = vmul.f32 %v5205_v15, %v6485_v45 }
 0x2d2   :  { %v1978_v34 = vrot.slane %v1977_v10, 2  ;;  %v1998_v8 = vadd.f32 %v1997_v58, %v1996_v9  ;;  %v7837_v38 = vrot.slane %v5509_v61, 2  ;;  %v7838_v24 = vrot.slane %v5509_v61, 3 }
 0x2d3   :  { %v6555_v26 = vadd.f32 %v7836_v14, %v6361_v6  ;;  %5218 = vrcp.f32 %v1988_v47  ;;  %v2168_v46 = vadd.f32 %v2167_v30, %v2166_v53  ;;  %v7839_v59 = vrot.slane %v5509_v61, 4 }
 0x2d4   :  { %v6563_v17 = vadd.f32 %v7837_v38, %v6387_v51  ;;  %v6567_v27 = vadd.f32 %v7838_v24, %v2140_v60  ;;  %v6574_v45 = vmul.f32 %v5207_v12, %v6489_v42  ;;  %v1979_v44 = vadd.f32 %v1978_v34, %v1977_v10 }
 0x2d5   :  { %v6571_v6 = vadd.f32 %v7839_v59, %v2147_v39  ;;  %v1999_v33 = vrot.slane %v1998_v8, 2  ;;  %v7840_v13 = vrot.slane %v5509_v61, 5  ;;  %v5209_v51 = vpop.eup %5208  ;;  %v7842_v4 = vrot.slane %v5509_v61, 6 }
 0x2d6   :  { %v7844_v60 = vrot.slane %v5509_v61, 7  ;;  %v2387_v39 = vrot.slane %v6555_v26, 7  ;;  %v2390_v42 = vrot.slane %v6563_v17, 6  ;;  %v6590_v5 = vpop.eup %5210  ;;  %v2058_v7 = vmul.f32 %v5209_v51, %v6499_v37 }
 0x2d7   :  { %v6578_v57 = vadd.f32 %v7840_v13, %v2154_v25  ;;  %v6582_v11 = vadd.f32 %v7842_v4, %v2161_v49  ;;  %v1980_v40 = vrot.slane %v1979_v44, 1  ;;  %v2000_v36 = vadd.f32 %v1999_v33, %v1998_v8 }
 0x2d8   :  { %v6586_v22 = vadd.f32 %v7844_v60, %v2168_v46  ;;  %v2393_v20 = vrot.slane %v6567_v27, 5  ;;  %v1989_v23 = vsel %vm161_vm0, %v6590_v5, 0.0  ;;  %v2389_v61 = vsel %vm2388_vm3, %v2387_v39, %v6550_v31 }
 0x2d9   :  { %7841 = vst [vmem:[#allocation19_spill] sm:$0xff] %v6578_v57  ;;  %7843 = vst [vmem:[#allocation20_spill] sm:$0xff] %v6582_v11  ;;  %v2396_v25 = vrot.slane %v6571_v6, 4  ;;  %v2106_v62 = vmul.f32 %v6242_v28, %v2058_v7  ;;  %v1981_v41 = vadd.f32 %v1980_v40, %v1979_v44  ;;  %v2001_v9 = vrot.slane %v2000_v36, 1  ;;  %v6600_v15 = vpop.eup %5212 }
 0x2da   :  { %7845 = vst [vmem:[#allocation21_spill] sm:$0xff] %v6586_v22  ;;  %v1990_v53 = vrot.slane %v1989_v23, 4  ;;  %v2392_v37 = vsel %vm2391_vm4, %v2390_v42, %v2389_v61  ;;  %v2399_v10 = vrot.slane %v6578_v57, 3  ;;  %v2402_v58 = vrot.slane %v6582_v11, 2  ;;  %v5215_v12 = vpop.eup %5214  ;;  %v4774_v61 = vld [vmem:[%s7773_s3 + $0xb8] sm:$0xff] }
 0x2db   :  { %v2232_v47 = vsel %vm161_vm0, %v2106_v62, 0.0  ;;  %5220 = vrcp.f32 %v1981_v41  ;;  %v2002_v49 = vadd.f32 %v2001_v9, %v2000_v36  ;;  %v2057_v28 = vmul.f32 %v5215_v12, %v6508_v56  ;;  %v4771_v12 = vld [vmem:[%s7773_s3 + $0xa0] sm:$0xff] }
 0x2dc   :  { %v1991_v30 = vadd.f32 %v1990_v53, %v1989_v23  ;;  %v2233_v14 = vrot.slane %v2232_v47, 4  ;;  %v2010_v34 = vsel %vm161_vm0, %v6600_v15, 0.0  ;;  %v2395_v8 = vsel %vm2394_vm5, %v2393_v20, %v2392_v37 }
 0x2dd   :  { %5222 = vrcp.f32 %v2002_v49  ;;  %v2011_v46 = vrot.slane %v2010_v34, 4  ;;  %v2398_v24 = vsel %vm2397_vm6, %v2396_v25, %v2395_v8  ;;  %v6611_v59 = vpop.eup %5216  ;;  %v2105_v33 = vmul.f32 %v6235_v32, %v2057_v28 }
 0x2de   :  { %v1992_v38 = vrot.slane %v1991_v30, 2  ;;  %v2234_v44 = vadd.f32 %v2233_v14, %v2232_v47  ;;  %v2401_v13 = vsel %vm2400_vm7, %v2399_v10, %v2398_v24  ;;  %v2003_v4 = vsel %vm161_vm0, %v6611_v59, 0.0 }
 0x2df   :  { %v2012_v56 = vadd.f32 %v2011_v46, %v2010_v34  ;;  %v2404_v60 = vsel %vm2403_vm8, %v2402_v58, %v2401_v13  ;;  %v2225_v42 = vsel %vm161_vm0, %v2105_v33, 0.0  ;;  %v2004_v7 = vrot.slane %v2003_v4, 4  ;;  %v4765_v33 = vld [vmem:[%s7773_s3 + $0x70] sm:$0xff] }
 0x2e0   :  { %v1993_v51 = vadd.f32 %v1992_v38, %v1991_v30  ;;  %v2235_v39 = vrot.slane %v2234_v44, 2  ;;  %v2405_v40 = vrot.slane %v6586_v22, 1  ;;  %v5219_v36 = vpop.eup %5218  ;;  %v2226_v20 = vrot.slane %v2225_v42, 4 }
 0x2e1   :  { %v2013_v32 = vrot.slane %v2012_v56, 2  ;;  %v2060_v62 = vmul.f32 %v5219_v36, %v6516_v50  ;;  %v2005_v41 = vadd.f32 %v2004_v7, %v2003_v4  ;;  %v2103_v53 = vmul.f32 %v6209_v55, %v6574_v45 }
 0x2e2   :  { %v1994_v23 = vrot.slane %v1993_v51, 1  ;;  %v6623_v25 = vadd.f32 %v2235_v39, %v2234_v44  ;;  %v6627_v9 = vsel %vm2406_vm9, %v2405_v40, %v2404_v60  ;;  %v2227_v37 = vadd.f32 %v2226_v20, %v2225_v42 }
 0x2e3   :  { %v2014_v58 = vadd.f32 %v2013_v32, %v2012_v56  ;;  %4775 = vmatmul.mubr.msk.f32.vlgmr.msra.gmra.mxu1 %vm161_vm0, %v6627_v9  ;;  %v2108_v47 = vmul.f32 %v6248_v3, %v2060_v62  ;;  %v2006_v50 = vrot.slane %v2005_v41, 2  ;;  %v2104_v49 = vmul.f32 %v6212_v52, %v6558_v1  ;;  %v4768_v3 = vld [vmem:[%s7773_s3 + $0x88] sm:$0xff] }
 0x2e4   :  { %v1995_v10 = vadd.f32 %v1994_v23, %v1993_v51  ;;  %2512 = vmatprep.mubr.f32.mxu1 %v7832_v35  ;;  %v2174_v55 = vrot.slane %v6473_v19, 1  ;;  %5021 = vmatpush3.msra.mxu1 %v4774_v61  ;;  %v2237_v45 = vrot.slane %v6623_v25, 1  ;;  %v2228_v30 = vrot.slane %v2227_v37, 2 }
 0x2e5   :  { %v2015_v14 = vrot.slane %v2014_v58, 1  ;;  %5022 = vmatprep.subr.mxu1 %v7832_v35  ;;  %v2246_v28 = vsel %vm161_vm0, %v2108_v47, 0.0  ;;  %v2007_v34 = vadd.f32 %v2006_v50, %v2005_v41  ;;  %v2182_v52 = vadd.f32 %v2181_v0, %v6441_v43 }
 0x2e6   :  { %5224 = vrcp.f32 %v1995_v10  ;;  %v2175_v8 = vadd.f32 %v2174_v55, %v6473_v19  ;;  %5023 = vmatpush3.msra.mxu1 %v4771_v12  ;;  %v2247_v1 = vrot.slane %v2246_v28, 4  ;;  %v2188_v46 = vrot.slane %v6495_v18, 1 }
 0x2e7   :  { %v2016_v38 = vadd.f32 %v2015_v14, %v2014_v58  ;;  %v7846_v24 = vrot.slane %v6467_v54, 2  ;;  %5024 = vmatprep.subr.mxu1 %v7832_v35  ;;  %v6659_v13 = vadd.f32 %v2228_v30, %v2227_v37  ;;  %v2008_v51 = vrot.slane %v2007_v34, 1 }
 0x2e8   :  { %v5221_v19 = vpop.eup %5220  ;;  %v2200_v43 = vrot.slane %v6544_v21, 2  ;;  %v2204_v0 = vsel %vm161_vm0, %v6513_v48, 0.0  ;;  %5025 = vmatpush3.msra.mxu1 %v4768_v3  ;;  %v6667_v56 = vadd.f32 %v2247_v1, %v2246_v28  ;;  %v2211_v48 = vsel %vm161_vm0, %v2103_v53, 0.0  ;;  %v7847_v53 = vld [vmem:[#allocation6_spill] sm:$0xff] }
 0x2e9   :  { %v2194_v44 = vadd.f32 %v7846_v24, %v6467_v54  ;;  %v4787_v54 = vld [vmem:[%s7776_s6 + $0x38] sm:$0xff]  ;;  %v2059_v4 = vmul.f32 %v5221_v19, %v6536_v63  ;;  %5226 = vrcp.f32 %v2016_v38  ;;  %5026 = vmatprep.subr.mxu1 %v7832_v35  ;;  %v2009_v42 = vadd.f32 %v2008_v51, %v2007_v34 }
 0x2ea   :  { %v5223_v39 = vpop.eup %5222  ;;  %v2201_v7 = vadd.f32 %v2200_v43, %v6544_v21  ;;  %v2205_v40 = vrot.slane %v2204_v0, 4  ;;  %5027 = vmatpush3.msra.mxu1 %v4765_v33  ;;  %v2249_v36 = vrot.slane %v6667_v56, 2  ;;  %v2189_v23 = vadd.f32 %v2188_v46, %v6495_v18  ;;  %v7857_v38 = vld [vmem:[#allocation17_spill] sm:$0xff] }
 0x2eb   :  { %v2195_v60 = vrot.slane %v2194_v44, 1  ;;  %v2107_v20 = vmul.f32 %v6245_v29, %v2059_v4  ;;  %3089 = vmatprep.subr.mxu1 %v4787_v54  ;;  %5228 = vrcp.f32 %v2009_v42  ;;  %v2212_v62 = vrot.slane %v2211_v48, 4 }
 0x2ec   :  { %v2202_v63 = vrot.slane %v2201_v7, 1  ;;  %v2206_v61 = vadd.f32 %v2205_v40, %v2204_v0  ;;  %v2062_v21 = vmul.f32 %v5223_v39, %v6542_v2  ;;  %v2218_v37 = vsel %vm161_vm0, %v2104_v49, 0.0 }
 0x2ed   :  { %v2196_v32 = vadd.f32 %v2195_v60, %v2194_v44  ;;  %v2239_v41 = vsel %vm161_vm0, %v2107_v20, 0.0  ;;  %v6680_v10 = vadd.f32 %v2175_v8, %v7847_v53  ;;  %v2213_v47 = vadd.f32 %v2212_v62, %v2211_v48  ;;  %v7858_v20 = vld [vmem:[#allocation16_spill] sm:$0xff] }
 0x2ee   :  { %v2240_v58 = vrot.slane %v2239_v41, 4  ;;  %v2203_v12 = vadd.f32 %v2202_v63, %v2201_v7  ;;  %v2207_v29 = vrot.slane %v2206_v61, 2  ;;  %v2219_v18 = vrot.slane %v2218_v37, 4 }
 0x2ef   :  { %7848 = vst [vmem:[#allocation6_spill] sm:$0xff] %v6680_v10  ;;  %v7849_v50 = vrot.slane %v7847_v53, 1  ;;  %v7851_v30 = vrot.slane %v7847_v53, 2  ;;  %v7853_v2 = vrot.slane %v7847_v53, 3  ;;  %v2214_v34 = vrot.slane %v2213_v47, 2 }
 0x2f0   :  { %v2241_v49 = vadd.f32 %v2240_v58, %v2239_v41  ;;  %v2208_v28 = vadd.f32 %v2207_v29, %v2206_v61  ;;  %v7855_v8 = vrot.slane %v7847_v53, 4  ;;  %v2110_v46 = vmul.f32 %v7857_v38, %v2062_v21 }
 0x2f1   :  { %v6684_v55 = vadd.f32 %v7849_v50, %v2182_v52  ;;  %v6688_v14 = vadd.f32 %v7851_v30, %v2189_v23  ;;  %v6692_v3 = vadd.f32 %v7853_v2, %v2196_v32  ;;  %v2220_v24 = vadd.f32 %v2219_v18, %v2218_v37 }
 0x2f2   :  { %v6696_v1 = vadd.f32 %v7855_v8, %v2203_v12  ;;  %v2242_v19 = vrot.slane %v2241_v49, 2  ;;  %v2209_v51 = vrot.slane %v2208_v28, 1  ;;  %v2215_v43 = vadd.f32 %v2214_v34, %v2213_v47 }
 0x2f3   :  { %7850 = vst [vmem:[#allocation22_spill] sm:$0xff] %v6684_v55  ;;  %7852 = vst [vmem:[#allocation23_spill] sm:$0xff] %v6688_v14  ;;  %v2408_v52 = vrot.slane %v6684_v55, 7  ;;  %v2410_v44 = vrot.slane %v6688_v14, 6  ;;  %v5225_v33 = vpop.eup %5224  ;;  %v2221_v4 = vrot.slane %v2220_v24, 2  ;;  %v2412_v39 = vrot.slane %v6692_v3, 5 }
 0x2f4   :  { %7854 = vst [vmem:[#allocation24_spill] sm:$0xff] %v6692_v3  ;;  %7856 = vst [vmem:[#allocation25_spill] sm:$0xff] %v6696_v1  ;;  %v2414_v0 = vrot.slane %v6696_v1, 4  ;;  %v2061_v54 = vmul.f32 %v5225_v33, %v6590_v5  ;;  %v2243_v42 = vadd.f32 %v2242_v19, %v2241_v49  ;;  %v2210_v7 = vadd.f32 %v2209_v51, %v2208_v28 }
 0x2f5   :  { %v2409_v60 = vsel %vm2388_vm3, %v2408_v52, %v6680_v10  ;;  %v2216_v40 = vrot.slane %v2215_v43, 1  ;;  %v2222_v32 = vadd.f32 %v2221_v4, %v2220_v24  ;;  %v2230_v61 = vrot.slane %v6659_v13, 1 }
 0x2f6   :  { %v2411_v48 = vsel %vm2391_vm4, %v2410_v44, %v2409_v60  ;;  %v2109_v23 = vmul.f32 %v7858_v20, %v2061_v54  ;;  %v5227_v62 = vpop.eup %5226  ;;  %v7859_v41 = vrot.slane %v7847_v53, 5  ;;  %v2238_v58 = vadd.f32 %v2237_v45, %v6623_v25 }
 0x2f7   :  { %v2413_v63 = vsel %vm2394_vm5, %v2412_v39, %v2411_v48  ;;  %v2217_v5 = vadd.f32 %v2216_v40, %v2215_v43  ;;  %v2064_v29 = vmul.f32 %v5227_v62, %v6600_v15  ;;  %v2223_v47 = vrot.slane %v2222_v32, 1  ;;  %v7865_v43 = vld [vmem:[#allocation18_spill] sm:$0xff]  ;;  %v7866_v39 = vld [vmem:[#allocation7_spill] sm:$0xff] }
 0x2f8   :  { %v6712_v21 = vadd.f32 %v7859_v41, %v2210_v7  ;;  %v2415_v37 = vsel %vm2397_vm6, %v2414_v0, %v2413_v63  ;;  %v2253_v12 = vsel %vm161_vm0, %v2109_v23, 0.0  ;;  %v2244_v18 = vrot.slane %v2243_v42, 1  ;;  %v5229_v34 = vpop.eup %5228 }
 0x2f9   :  { %v2254_v50 = vrot.slane %v2253_v12, 4  ;;  %v7861_v30 = vrot.slane %v7847_v53, 6  ;;  %v2250_v28 = vadd.f32 %v2249_v36, %v6667_v56  ;;  %v2224_v8 = vadd.f32 %v2223_v47, %v2222_v32 }
 0x2fa   :  { %7860 = vst [vmem:[#allocation17_spill] sm:$0xff] %v6712_v21  ;;  %v2416_v49 = vrot.slane %v6712_v21, 3  ;;  %v2112_v38 = vmul.f32 %v6359_v16, %v2064_v29  ;;  %v2245_v25 = vadd.f32 %v2244_v18, %v2243_v42  ;;  %v2260_v45 = vsel %vm161_vm0, %v2110_v46, 0.0 }
 0x2fb   :  { %v6722_v2 = vadd.f32 %v7861_v30, %v2217_v5  ;;  %v2255_v24 = vadd.f32 %v2254_v50, %v2253_v12  ;;  %v2063_v15 = vmul.f32 %v5229_v34, %v6611_v59  ;;  %v7863_v33 = vrot.slane %v7847_v53, 7 }
 0x2fc   :  { %v2417_v52 = vsel %vm2400_vm7, %v2416_v49, %v2415_v37  ;;  %v2251_v51 = vrot.slane %v2250_v28, 1  ;;  %v2261_v56 = vrot.slane %v2260_v45, 4  ;;  %v2274_v36 = vsel %vm161_vm0, %v2112_v38, 0.0 }
 0x2fd   :  { %7862 = vst [vmem:[#allocation16_spill] sm:$0xff] %v6722_v2  ;;  %v2418_v44 = vrot.slane %v6722_v2, 2  ;;  %v6733_v19 = vadd.f32 %v7863_v33, %v2224_v8  ;;  %v2111_v16 = vmul.f32 %v7865_v43, %v2063_v15  ;;  %v2256_v46 = vrot.slane %v2255_v24, 2 }
 0x2fe   :  { %v2275_v54 = vrot.slane %v2274_v36, 4  ;;  %v2231_v4 = vadd.f32 %v2230_v61, %v6659_v13  ;;  %v2262_v60 = vadd.f32 %v2261_v56, %v2260_v45  ;;  %v2296_v42 = vrot.slane %v7866_v39, 2 }
 0x2ff   :  { %7864 = vst [vmem:[#allocation26_spill] sm:$0xff] %v6733_v19  ;;  %v2419_v0 = vsel %vm2403_vm8, %v2418_v44, %v2417_v52  ;;  %v2420_v59 = vrot.slane %v6733_v19, 1  ;;  %v2257_v53 = vadd.f32 %v2256_v46, %v2255_v24  ;;  %v2267_v7 = vsel %vm161_vm0, %v2111_v16, 0.0 }
 0x300   :  { %v2276_v40 = vadd.f32 %v2275_v54, %v2274_v36  ;;  %v7867_v48 = vrot.slane %v7866_v39, 1  ;;  %v2263_v32 = vrot.slane %v2262_v60, 2  ;;  %v2268_v63 = vrot.slane %v2267_v7, 4 }
 0x301   :  { %v6747_v23 = vsel %vm2406_vm9, %v2420_v59, %v2419_v0  ;;  %v6749_v62 = vadd.f32 %v2296_v42, %v2245_v25  ;;  %v2252_v13 = vadd.f32 %v2251_v51, %v2250_v28  ;;  %v2258_v61 = vrot.slane %v2257_v53, 1  ;;  %v7877_v42 = vld [vmem:[#allocation3_spill] sm:$0xff] }
 0x302   :  { %v6744_v20 = vadd.f32 %v7867_v48, %v2238_v58  ;;  %4776 = vmatmul.mubr.msk.f32.gmra.mxu1 %vm161_vm0, %v6747_v23  ;;  %v2277_v5 = vrot.slane %v2276_v40, 2  ;;  %v2264_v41 = vadd.f32 %v2263_v32, %v2262_v60  ;;  %v2269_v37 = vadd.f32 %v2268_v63, %v2267_v7  ;;  %v7876_v60 = vld [vmem:[#allocation5_spill] sm:$0xff] }
 0x303   :  { %7869 = vst [vmem:[#allocation7_spill] sm:$0xff] %v6749_v62  ;;  %2518 = vmatprep.mubr.f32.mxu1 %v7832_v35  ;;  %v2297_v58 = vrot.slane %v7866_v39, 3  ;;  %v2298_v12 = vrot.slane %v7866_v39, 4  ;;  %v2259_v29 = vadd.f32 %v2258_v61, %v2257_v53  ;;  %v6757_v18 = vadd.f32 %v2231_v4, %v7866_v39 }
 0x304   :  { %7868 = vst [vmem:[#allocation18_spill] sm:$0xff] %v6744_v20  ;;  %v2278_v47 = vadd.f32 %v2277_v5, %v2276_v40  ;;  %v2422_v50 = vrot.slane %v6744_v20, 7  ;;  %v2265_v30 = vrot.slane %v2264_v41, 1  ;;  %v2270_v49 = vrot.slane %v2269_v37, 2  ;;  %v4786_v5 = vld [vmem:[%s7776_s6 + $0x30] sm:$0xff] }
 0x305   :  { %7870 = vst [vmem:[#allocation27_spill] sm:$0xff] %v6757_v18  ;;  %v2424_v28 = vrot.slane %v6749_v62, 6  ;;  %v6761_v8 = vadd.f32 %v2297_v58, %v2252_v13  ;;  %v6763_v38 = vadd.f32 %v2298_v12, %v2259_v29  ;;  %v2299_v15 = vrot.slane %v7866_v39, 5  ;;  %v4785_v12 = vld [vmem:[%s7776_s6 + $0x28] sm:$0xff]  ;;  %v4784_v29 = vld [vmem:[%s7776_s6 + $0x20] sm:$0xff] }
 0x306   :  { %v2279_v34 = vrot.slane %v2278_v47, 1  ;;  %v2266_v25 = vadd.f32 %v2265_v30, %v2264_v41  ;;  %v2271_v45 = vadd.f32 %v2270_v49, %v2269_v37  ;;  %v2423_v52 = vsel %vm2388_vm3, %v2422_v50, %v6757_v18  ;;  %v7878_v41 = vld [vmem:[#allocation2_spill] sm:$0xff] }
 0x307   :  { %7871 = vst [vmem:[#allocation28_spill] sm:$0xff] %v6761_v8  ;;  %7872 = vst [vmem:[#allocation29_spill] sm:$0xff] %v6763_v38  ;;  %v2425_v33 = vsel %vm2391_vm4, %v2424_v28, %v2423_v52  ;;  %v2428_v51 = vrot.slane %v6763_v38, 4  ;;  %v2301_v56 = vrot.slane %v7866_v39, 7  ;;  %v2426_v43 = vrot.slane %v6761_v8, 5 }
 0x308   :  { %v2280_v24 = vadd.f32 %v2279_v34, %v2278_v47  ;;  %v2272_v44 = vrot.slane %v2271_v45, 1  ;;  %v6771_v36 = vadd.f32 %v2299_v15, %v2266_v25  ;;  %v2300_v0 = vrot.slane %v7866_v39, 6  ;;  %v6820_v28 = vld [vmem:[%s7777_s5 + $0x1] ss:$0 sm:$0xff] }
 0x309   :  { %v2427_v54 = vsel %vm2394_vm5, %v2426_v43, %v2425_v33  ;;  %v2644_v53 = vrot.slane %v7877_v42, %v7876_v60  ;;  %v2637_v47 = vcombine.high %v7877_v42, %v7877_v42 }
 0x30a   :  { %7873 = vst [vmem:[#allocation30_spill] sm:$0xff] %v6771_v36  ;;  %v2273_v16 = vadd.f32 %v2272_v44, %v2271_v45  ;;  %v6775_v46 = vadd.f32 %v2301_v56, %v2280_v24  ;;  %v2429_v4 = vsel %vm2397_vm6, %v2428_v51, %v2427_v54  ;;  %v2430_v7 = vrot.slane %v6771_v36, 3 }
 0x30b   :  { %v2660_v63 = vrot.slane %v2644_v53, %v7876_v60  ;;  %v2652_v13 = vcombine.high %v2644_v53, %v2644_v53 }
 0x30c   :  { %7874 = vst [vmem:[#allocation31_spill] sm:$0xff] %v6775_v46  ;;  %v6778_v59 = vadd.f32 %v2300_v0, %v2273_v16  ;;  %v2431_v48 = vsel %vm2400_vm7, %v2430_v7, %v2429_v4  ;;  %v2434_v32 = vrot.slane %v6775_v46, 1 }
 0x30d   :  { %v2787_v37 = vrot.slane %v2660_v63, %v7878_v41  ;;  %v2674_v58 = vrot.slane %v2652_v13, %v7876_v60  ;;  %v2682_v49 = vcombine.high %v2660_v63, %v2660_v63 }
 0x30e   :  { %7875 = vst [vmem:[#allocation32_spill] sm:$0xff] %v6778_v59  ;;  %v2432_v40 = vrot.slane %v6778_v59, 2 }
 0x30f   :  { %v2904_v50 = vsub.f32 %v2787_v37, %v7877_v42  ;;  %v2791_v30 = vrot.slane %v2674_v58, %v7878_v41  ;;  %v2795_v45 = vrot.slane %v2682_v49, %v7878_v41  ;;  %v2684_v24 = vcombine.high %v2674_v58, %v2674_v58 }
 0x310   :  { %v2433_v39 = vsel %vm2403_vm8, %v2432_v40, %v2431_v48 }
 0x311   :  { %v2435_v61 = vsel %vm2406_vm9, %v2434_v32, %v2433_v39  ;;  %v2936_v34 = vadd.f32 %v6820_v28, %v2904_v50  ;;  %v2905_v25 = vsub.f32 %v2791_v30, %v7877_v42  ;;  %v2906_v33 = vsub.f32 %v2795_v45, %v7877_v42  ;;  %v7879_v39 = vld [vmem:[#allocation4_spill] sm:$0xff] }
 0x312   :  { %4777 = vmatmul.mubr.msk.f32.gmra.mxu1 %vm161_vm0, %v2435_v61  ;;  %v2799_v51 = vrot.slane %v2684_v24, %v7878_v41  ;;  %v2693_v63 = vrot.slane %v7879_v39, %v7876_v60 }
 0x313   :  { %5028 = vmatprep.mubr.msk.f32.mxu1 %vm5336_vm1, %v7832_v35  ;;  %v2960_v52 = vmax.f32 %v2936_v34, 0.0  ;;  %v2937_v44 = vadd.f32 %v6820_v28, %v2905_v25  ;;  %v2938_v16 = vadd.f32 %v6820_v28, %v2906_v33 }
 0x314   :  { %v2907_v0 = vsub.f32 %v2799_v51, %v7877_v42  ;;  %v2709_v58 = vrot.slane %v2693_v63, %v7876_v60 }
 0x315   :  { %v2961_v43 = vmax.f32 %v2937_v44, 0.0  ;;  %v2962_v53 = vmax.f32 %v2938_v16, 0.0 }
 0x316   :  { %5029 = vmatmul.mubr.msk.f32.vlgmr.msra.gmra.mxu1 %vm161_vm0, %v6627_v9  ;;  %v2651_v9 = vrot.slane %v2637_v47, %v7876_v60  ;;  %v2939_v7 = vadd.f32 %v6820_v28, %v2907_v0  ;;  %v2819_v49 = vrot.slane %v2709_v58, %v7878_v41  ;;  %v2731_v33 = vcombine.high %v2709_v58, %v2709_v58  ;;  %v4830_v58 = vld [vmem:[%s7778_s9 + $0xf0] sm:$0xff] }
 0x317   :  { %3090 = vmatpush1.msra.mxu1 %v4786_v5  ;;  %5031 = vmatprep.mubr.msk.f32.mxu1 %vm5336_vm1, %v7832_v35 }
 0x318   :  { %3091 = vmatprep.subr.mxu1 %v4785_v12  ;;  %v2653_v15 = vcombine.high %v2651_v9, %v2651_v9  ;;  %v2963_v13 = vmax.f32 %v2939_v7, 0.0  ;;  %v2701_v12 = vcombine.high %v2693_v63, %v2693_v63  ;;  %v2912_v24 = vsub.f32 %v2819_v49, %v7879_v39  ;;  %v4829_v49 = vld [vmem:[%s7778_s9 + $0xe8] sm:$0xff] }
 0x319   :  { %3092 = vmatpush1.msra.mxu1 %v4784_v29  ;;  %v2827_v16 = vrot.slane %v2731_v33, %v7878_v41 }
 0x31a   :  { %5032 = vmatmul.mubr.msk.f32.gmra.mxu1 %vm161_vm0, %v6747_v23  ;;  %v2667_v23 = vrot.slane %v2651_v9, %v7876_v60  ;;  %v2681_v54 = vrot.slane %v2653_v15, %v7876_v60  ;;  %v2723_v45 = vrot.slane %v2701_v12, %v7876_v60 }
 0x31b   :  { %5034 = vmatprep.mubr.msk.f32.mxu1 %vm5336_vm1, %v7832_v35  ;;  %v2914_v7 = vsub.f32 %v2827_v16, %v7879_v39  ;;  %v4826_v16 = vld [vmem:[%s7778_s9 + $0xd0] sm:$0xff] }
 0x31c   :  { %v2803_v56 = vrot.slane %v2667_v23, %v7878_v41  ;;  %v2683_v4 = vcombine.high %v2667_v23, %v2667_v23  ;;  %v2807_v48 = vrot.slane %v2681_v54, %v7878_v41  ;;  %v2685_v37 = vcombine.high %v2681_v54, %v2681_v54 }
 0x31d   :  { %v2686_v23 = vcombine.high %v7879_v39, %v7879_v39  ;;  %v2823_v44 = vrot.slane %v2723_v45, %v7878_v41  ;;  %v2733_v0 = vcombine.high %v2723_v45, %v2723_v45 }
 0x31e   :  { %5035 = vmatmul.mubr.msk.f32.gmra.mxu1 %vm161_vm0, %v2435_v61  ;;  %v2908_v40 = vsub.f32 %v2803_v56, %v7877_v42  ;;  %v2811_v32 = vrot.slane %v2683_v4, %v7878_v41  ;;  %v2909_v5 = vsub.f32 %v2807_v48, %v7877_v42  ;;  %v2815_v30 = vrot.slane %v2685_v37, %v7878_v41  ;;  %v4831_v37 = vld [vmem:[%s7778_s9 + $0xf8] sm:$0xff] }
 0x31f   :  { %3125 = vmatprep.mubr.f32.mxu1 %v7832_v35  ;;  %v2700_v51 = vrot.slane %v2686_v23, %v7876_v60  ;;  %5037 = vmatprep.subr.mxu0 %v4831_v37 }
 0x320   :  { %v2940_v61 = vadd.f32 %v6820_v28, %v2908_v40  ;;  %v2941_v47 = vadd.f32 %v6820_v28, %v2909_v5  ;;  %v2910_v50 = vsub.f32 %v2811_v32, %v7877_v42  ;;  %v2911_v25 = vsub.f32 %v2815_v30, %v7877_v42  ;;  %5038 = vmatpush3.msra.mxu0 %v4831_v37  ;;  %v7882_v37 = vld [vmem:[#allocation10_spill] sm:$0xff] }
 0x321   :  { %v2944_v42 = vadd.f32 %v6820_v28, %v2912_v24  ;;  %v2716_v4 = vrot.slane %v2700_v51, %v7876_v60  ;;  %v2831_v40 = vrot.slane %v2733_v0, %v7878_v41  ;;  %v2702_v48 = vcombine.high %v2700_v51, %v2700_v51  ;;  %5039 = vmatprep.subr.mxu0 %v4830_v58 }
 0x322   :  { %4788 = vmatmul.mubr.msk.f32.vlgmr.msra.gmra.mxu1 %vm715_vm2, %v2960_v52  ;;  %v2964_v29 = vmax.f32 %v2940_v61, 0.0  ;;  %v2965_v9 = vmax.f32 %v2941_v47, 0.0  ;;  %v2942_v34 = vadd.f32 %v6820_v28, %v2910_v50  ;;  %v2943_v52 = vadd.f32 %v6820_v28, %v2911_v25  ;;  %5040 = vmatpush3.msra.mxu0 %v4830_v58 }
 0x323   :  { %3131 = vmatprep.mubr.f32.mxu1 %v7832_v35  ;;  %v2968_v54 = vmax.f32 %v2944_v42, 0.0  ;;  %v2835_v32 = vrot.slane %v2716_v4, %v7878_v41  ;;  %v2915_v61 = vsub.f32 %v2831_v40, %v7879_v39  ;;  %v2730_v5 = vrot.slane %v2702_v48, %v7876_v60  ;;  %5041 = vmatprep.subr.mxu0 %v4829_v49  ;;  %v7880_v40 = vld [vmem:[#allocation8_spill] sm:$0xff] }
 0x324   :  { %v2966_v15 = vmax.f32 %v2942_v34, 0.0  ;;  %v2967_v56 = vmax.f32 %v2943_v52, 0.0  ;;  %v2732_v12 = vcombine.high %v2716_v4, %v2716_v4  ;;  %5042 = vmatpush3.msra.mxu0 %v4829_v49  ;;  %v4825_v4 = vld [vmem:[%s7778_s9 + $0xc8] sm:$0xff]  ;;  %v2976_v48 = vmax.f32 %v7880_v40, 0.0  ;;  %v7884_v49 = vld [vmem:[#allocation12_spill] sm:$0xff] }
 0x325   :  { %v2947_v47 = vadd.f32 %v6820_v28, %v2915_v61  ;;  %v2916_v50 = vsub.f32 %v2835_v32, %v7879_v39  ;;  %v2839_v30 = vrot.slane %v2730_v5, %v7878_v41  ;;  %v2734_v23 = vcombine.high %v2730_v5, %v2730_v5  ;;  %v4821_v32 = vld [vmem:[%s7778_s9 + $0xa8] sm:$0xff]  ;;  %v4820_v61 = vld [vmem:[%s7778_s9 + $0xa0] sm:$0xff]  ;;  %v4819_v5 = vld [vmem:[%s7778_s9 + $0x98] sm:$0xff] }
 0x326   :  { %4789 = vmatmul.mubr.msk.f32.gmra.mxu1 %vm715_vm2, %v2961_v43  ;;  %v2913_v43 = vsub.f32 %v2823_v44, %v7879_v39  ;;  %v2843_v34 = vrot.slane %v2732_v12, %v7878_v41  ;;  %v2978_v58 = vmax.f32 %v7882_v37, 0.0  ;;  %v4818_v12 = vld [vmem:[%s7778_s9 + $0x90] sm:$0xff] }
 0x327   :  { %3137 = vmatprep.mubr.f32.mxu1 %v7832_v35  ;;  %v2971_v25 = vmax.f32 %v2947_v47, 0.0  ;;  %v2948_v45 = vadd.f32 %v6820_v28, %v2916_v50  ;;  %v2917_v24 = vsub.f32 %v2839_v30, %v7879_v39  ;;  %v2847_v42 = vrot.slane %v2734_v23, %v7878_v41  ;;  %v7883_v47 = vld [vmem:[#allocation11_spill] sm:$0xff]  ;;  %v4816_v30 = vld [vmem:[%s7778_s9 + $0x80] sm:$0xff] }
 0x328   :  { %v2918_v33 = vsub.f32 %v2843_v34, %v7879_v39  ;;  %v2979_v50 = vmax.f32 %v7883_v47, 0.0  ;;  %v7885_v34 = vld [vmem:[#allocation14_spill] sm:$0xff]  ;;  %v7887_v23 = vld [vmem:[#allocation15_spill] sm:$0xff] }
 0x329   :  { %v2972_v52 = vmax.f32 %v2948_v45, 0.0  ;;  %v2949_v44 = vadd.f32 %v6820_v28, %v2917_v24  ;;  %v7886_v45 = vld [vmem:[#allocation13_spill] sm:$0xff] }
 0x32a   :  { %4790 = vmatmul.mubr.msk.f32.gmra.mxu1 %vm715_vm2, %v2962_v53  ;;  %v2945_v53 = vadd.f32 %v6820_v28, %v2913_v43  ;;  %v2919_v43 = vsub.f32 %v2847_v42, %v7879_v39  ;;  %v4824_v39 = vld [vmem:[%s7778_s9 + $0xc0] sm:$0xff]  ;;  %v2982_v24 = vmax.f32 %v7886_v45, 0.0 }
 0x32b   :  { %3143 = vmatprep.mubr.f32.mxu1 %v7832_v35  ;;  %v2973_v51 = vmax.f32 %v2949_v44, 0.0 }
 0x32c   :  { %v2969_v63 = vmax.f32 %v2945_v53, 0.0 }
 0x32e   :  { %4791 = vmatmul.mubr.msk.f32.gmra.mxu1 %vm715_vm2, %v2963_v13  ;;  %v2946_v13 = vadd.f32 %v6820_v28, %v2914_v7  ;;  %v4822_v7 = vld [vmem:[%s7778_s9 + $0xb0] sm:$0xff] }
 0x32f   :  { %3149 = vmatprep.mubr.f32.mxu1 %v7832_v35 }
 0x332   :  { %4792 = vmatmul.mubr.msk.f32.gmra.mxu1 %vm715_vm2, %v2964_v29  ;;  %v2970_v29 = vmax.f32 %v2946_v13, 0.0 }
 0x333   :  { %3155 = vmatprep.mubr.f32.mxu1 %v7832_v35 }
 0x336   :  { %4793 = vmatmul.mubr.msk.f32.gmra.mxu1 %vm715_vm2, %v2965_v9  ;;  %v4828_v9 = vld [vmem:[%s7778_s9 + $0xe0] sm:$0xff] }
 0x337   :  { %3161 = vmatprep.mubr.f32.mxu1 %v7832_v35  ;;  %5043 = vmatprep.subr.mxu0 %v4828_v9 }
 0x338   :  { %5044 = vmatpush3.msra.mxu0 %v4828_v9  ;;  %v2980_v9 = vmax.f32 %v7884_v49, 0.0 }
 0x33a   :  { %4794 = vmatmul.mubr.msk.f32.gmra.mxu1 %vm715_vm2, %v2966_v15  ;;  %v4827_v15 = vld [vmem:[%s7778_s9 + $0xd8] sm:$0xff] }
 0x33b   :  { %3167 = vmatprep.mubr.f32.mxu1 %v7832_v35  ;;  %5045 = vmatprep.subr.mxu0 %v4827_v15 }
 0x33c   :  { %5046 = vmatpush3.msra.mxu0 %v4827_v15  ;;  %v2983_v15 = vmax.f32 %v7887_v23, 0.0 }
 0x33d   :  { %5047 = vmatprep.subr.mxu0 %v4826_v16 }
 0x33e   :  { %4795 = vmatmul.mubr.msk.f32.gmra.mxu1 %vm715_vm2, %v2967_v56  ;;  %v2950_v56 = vadd.f32 %v6820_v28, %v2918_v33  ;;  %5048 = vmatpush3.msra.mxu0 %v4826_v16 }
 0x33f   :  { %3173 = vmatprep.mubr.f32.mxu1 %v7832_v35  ;;  %5049 = vmatprep.subr.mxu0 %v4825_v4 }
 0x340   :  { %v2974_v0 = vmax.f32 %v2950_v56, 0.0  ;;  %5050 = vmatpush3.msra.mxu0 %v4825_v4 }
 0x341   :  { %5051 = vmatprep.subr.mxu0 %v4824_v39 }
 0x342   :  { %4796 = vmatmul.mubr.msk.f32.gmra.mxu1 %vm715_vm2, %v2968_v54  ;;  %v2951_v54 = vadd.f32 %v6820_v28, %v2919_v43  ;;  %v4823_v28 = vld [vmem:[%s7778_s9 + $0xb8] sm:$0xff]  ;;  %5052 = vmatpush3.msra.mxu0 %v4824_v39 }
 0x343   :  { %3179 = vmatprep.mubr.f32.mxu1 %v7832_v35  ;;  %5053 = vmatprep.subr.mxu0 %v4823_v28 }
 0x344   :  { %v2975_v53 = vmax.f32 %v2951_v54, 0.0  ;;  %5054 = vmatpush3.msra.mxu0 %v4823_v28 }
 0x345   :  { %5055 = vmatprep.subr.mxu0 %v4822_v7 }
 0x346   :  { %4797 = vmatmul.mubr.msk.f32.gmra.mxu1 %vm715_vm2, %v2969_v63  ;;  %5056 = vmatpush3.msra.mxu0 %v4822_v7  ;;  %v7881_v63 = vld [vmem:[#allocation9_spill] sm:$0xff] }
 0x347   :  { %3185 = vmatprep.mubr.f32.mxu1 %v7832_v35  ;;  %5057 = vmatprep.subr.mxu0 %v4821_v32  ;;  %v2977_v13 = vmax.f32 %v7881_v63, 0.0 }
 0x348   :  { %5058 = vmatpush3.msra.mxu0 %v4821_v32 }
 0x349   :  { %5059 = vmatprep.subr.mxu0 %v4820_v61 }
 0x34a   :  { %4798 = vmatmul.mubr.msk.f32.gmra.mxu1 %vm715_vm2, %v2970_v29  ;;  %5060 = vmatpush3.msra.mxu0 %v4820_v61  ;;  %v4817_v29 = vld [vmem:[%s7778_s9 + $0x88] sm:$0xff] }
 0x34b   :  { %3191 = vmatprep.mubr.f32.mxu1 %v7832_v35  ;;  %5061 = vmatprep.subr.mxu0 %v4819_v5 }
 0x34c   :  { %5062 = vmatpush3.msra.mxu0 %v4819_v5 }
 0x34d   :  { %5063 = vmatprep.subr.mxu0 %v4818_v12 }
 0x34e   :  { %4799 = vmatmul.mubr.msk.f32.gmra.mxu1 %vm715_vm2, %v2971_v25  ;;  %5064 = vmatpush3.msra.mxu0 %v4818_v12  ;;  %v2981_v25 = vmax.f32 %v7885_v34, 0.0 }
 0x34f   :  { %3197 = vmatprep.mubr.f32.mxu1 %v7832_v35  ;;  %5065 = vmatprep.subr.mxu0 %v4817_v29 }
 0x350   :  { %5066 = vmatpush3.msra.mxu0 %v4817_v29 }
 0x351   :  { %5067 = vmatprep.subr.mxu0 %v4816_v30 }
 0x352   :  { %4800 = vmatmul.mubr.msk.f32.gmra.mxu1 %vm715_vm2, %v2972_v52  ;;  %5068 = vmatpush3.msra.mxu0 %v4816_v30 }
 0x353   :  { %3203 = vmatprep.mubr.f32.mxu1 %v7832_v35  ;;  %5105 = vmatprep.subr.mxu0 %v7832_v35 }
 0x356   :  { %4801 = vmatmul.mubr.msk.f32.gmra.mxu1 %vm715_vm2, %v2973_v51 }
 0x357   :  { %3209 = vmatprep.mubr.f32.mxu1 %v7832_v35 }
 0x35a   :  { %4802 = vmatmul.mubr.msk.f32.gmra.mxu1 %vm715_vm2, %v2974_v0 }
 0x35b   :  { %3215 = vmatprep.mubr.f32.mxu1 %v7832_v35 }
 0x35e   :  { %4803 = vmatmul.mubr.msk.f32.gmra.mxu1 %vm715_vm2, %v2975_v53 }
 0x35f   :  { %3221 = vmatprep.mubr.f32.mxu1 %v7832_v35 }
 0x362   :  { %4804 = vmatmul.mubr.msk.f32.gmra.mxu1 %vm715_vm2, %v2976_v48 }
 0x363   :  { %3227 = vmatprep.mubr.f32.mxu1 %v7832_v35 }
 0x366   :  { %4805 = vmatmul.mubr.msk.f32.gmra.mxu1 %vm715_vm2, %v2977_v13 }
 0x367   :  { %3233 = vmatprep.mubr.f32.mxu1 %v7832_v35 }
 0x36a   :  { %4806 = vmatmul.mubr.msk.f32.gmra.mxu1 %vm715_vm2, %v2978_v58 }
 0x36b   :  { %3239 = vmatprep.mubr.f32.mxu1 %v7832_v35 }
 0x36e   :  { %4807 = vmatmul.mubr.msk.f32.gmra.mxu1 %vm715_vm2, %v2979_v50 }
 0x36f   :  { %3245 = vmatprep.mubr.f32.mxu1 %v7832_v35 }
 0x372   :  { %4808 = vmatmul.mubr.msk.f32.gmra.mxu1 %vm715_vm2, %v2980_v9 }
 0x373   :  { %3251 = vmatprep.mubr.f32.mxu1 %v7832_v35 }
 0x376   :  { %4809 = vmatmul.mubr.msk.f32.gmra.mxu1 %vm715_vm2, %v2981_v25 }
 0x377   :  { %3257 = vmatprep.mubr.f32.mxu1 %v7832_v35 }
 0x37a   :  { %4810 = vmatmul.mubr.msk.f32.gmra.mxu1 %vm715_vm2, %v2982_v24 }
 0x37b   :  { %3263 = vmatprep.mubr.f32.mxu1 %v7832_v35 }
 0x37e   :  { %4811 = vmatmul.mubr.msk.f32.gmra.mxu1 %vm715_vm2, %v2983_v15 }
 0x3a3   :  { %v2508_v52 = vpop.f32.mrf.mxu1 }
 0x3a4   :  { %v3312_v16 = vrot.slane %v2508_v52, %v7876_v60 }
 0x3a5   :  { %v6984_v44 = vpop.f32.mrf.mxu1 }
 0x3a6   :  { %v3320_v32 = vcombine.high %v3312_v16, %v3312_v16  ;;  %v3328_v63 = vrot.slane %v3312_v16, %v7876_v60 }
 0x3c2   :  { %v6986_v33 = vpop.f32.mrf.mxu1 }
 0x3c4   :  { %v6988_v42 = vpop.f32.mrf.mxu1 }
 0x3d2   :  { %v2520_v51 = vpop.f32.mrf.mxu1 }
 0x3d3   :  { %v3403_v56 = vcombine.high %v2520_v51, %v2520_v51  ;;  %v3410_v43 = vrot.slane %v2520_v51, %v7876_v60  ;;  %v3342_v51 = vrot.slane %v3320_v32, %v7876_v60 }
 0x3d4   :  { %v6992_v0 = vpop.f32.mrf.mxu1 }
 0x3d5   :  { %v3417_v54 = vrot.slane %v3403_v56, %v7876_v60  ;;  %v3418_v4 = vcombine.high %v3410_v43, %v3410_v43  ;;  %v3426_v39 = vrot.slane %v3410_v43, %v7876_v60  ;;  %v3455_v56 = vrot.slane %v3328_v63, %v7878_v41 }
 0x3d6   :  { %v6996_v53 = vpop.f32.mrf.mxu1 }
 0x3d7   :  { %v3419_v28 = vcombine.high %v3417_v54, %v3417_v54  ;;  %v3433_v7 = vrot.slane %v3417_v54, %v7876_v60  ;;  %v3440_v40 = vrot.slane %v3418_v4, %v7876_v60  ;;  %v3448_v48 = vcombine.high %v3426_v39, %v3426_v39 }
 0x3d8   :  { %v5030_v13 = vpop.f32.mrf.mxu1  ;;  %v3519_v61 = vrot.slane %v3426_v39, %v7878_v41  ;;  %v3572_v32 = vsub.f32 %v3455_v56, %v6984_v44 }
 0x3d9   :  { %v3523_v5 = vrot.slane %v3440_v40, %v7878_v41  ;;  %v7004_v37 = vrot.slane %v3448_v48, %v7878_v41  ;;  %v3450_v58 = vcombine.high %v3440_v40, %v3440_v40  ;;  %v3535_v12 = vrot.slane %v3433_v7, %v7878_v41 }
 0x3da   :  { %v7007_v29 = vpop.f32.mrf.mxu1  ;;  %v7010_v47 = vsub.f32 %v3519_v61, %v6992_v0  ;;  %v3447_v50 = vrot.slane %v3419_v28, %v7876_v60  ;;  %v3449_v30 = vcombine.high %v3433_v7, %v3433_v7  ;;  %v3305_v28 = vcombine.high %v2508_v52, %v2508_v52 }
 0x3db   :  { %v7014_v49 = vsub.f32 %v3523_v5, %v6992_v0  ;;  %v7019_v34 = vrot.slane %v3450_v58, %v7878_v41  ;;  %v7022_v25 = vsub.f32 %v3535_v12, %v6992_v0  ;;  %v3350_v7 = vcombine.high %v3328_v63, %v3328_v63  ;;  %v7049_v5 = vld [vmem:[%s7780_s8 + $0x1] ss:$0 sm:$0xff] }
 0x3dc   :  { %v5033_v45 = vpop.f32.mrf.mxu1  ;;  %v3539_v24 = vrot.slane %v3447_v50, %v7878_v41  ;;  %v7026_v23 = vrot.slane %v3449_v30, %v7878_v41  ;;  %v3451_v15 = vcombine.high %v3447_v50, %v3447_v50  ;;  %v3459_v13 = vrot.slane %v3342_v51, %v7878_v41  ;;  %v7054_v58 = vld [vmem:[%s7779_s7 + $0x1] ss:$0 sm:$0xff] }
 0x3dd   :  { %v3319_v63 = vrot.slane %v3305_v28, %v7876_v60  ;;  %v3463_v50 = vrot.slane %v3350_v7, %v7878_v41 }
 0x3de   :  { %v7032_v16 = vpop.f32.mrf.mxu1  ;;  %v7035_v54 = vsub.f32 %v3539_v24, %v6992_v0  ;;  %v7040_v39 = vrot.slane %v3451_v15, %v7878_v41  ;;  %v3573_v24 = vsub.f32 %v3459_v13, %v6984_v44  ;;  %v3352_v15 = vcombine.high %v3342_v51, %v3342_v51 }
 0x3df   :  { %7888 = vst [vmem:[#allocation5_spill] sm:$0xff] %v7032_v16  ;;  %v3321_v43 = vcombine.high %v3319_v63, %v3319_v63 }
 0x3e0   :  { %v5036_v40 = vpop.f32.mrf.mxu1  ;;  %v3467_v13 = vrot.slane %v3352_v15, %v7878_v41 }
 0x3e2   :  { %v3127_v61 = vpop.f32.mrf.mxu1 }
 0x3e3   :  { %v3596_v52 = vadd.f32 %v3572_v32, %v3127_v61  ;;  %v3335_v32 = vrot.slane %v3319_v63, %v7876_v60 }
 0x3e4   :  { %v3129_v12 = vpop.f32.mrf.mxu1 }
 0x3e5   :  { %v3628_v30 = vadd.f32 %v7049_v5, %v3596_v52  ;;  %v3278_v45 = vadd.f32 %v7054_v58, %v3129_v12  ;;  %v3574_v52 = vsub.f32 %v3463_v50, %v6984_v44  ;;  %v3349_v50 = vrot.slane %v3321_v43, %v7876_v60 }
 0x3e6   :  { %v3133_v56 = vpop.f32.mrf.mxu1 }
 0x3e7   :  { %v3652_v40 = vmax.f32 %v3628_v30, 0.0  ;;  %v7062_v48 = vadd.f32 %v3278_v45, %v6996_v53  ;;  %v3597_v4 = vadd.f32 %v3573_v24, %v3133_v56  ;;  %v3471_v56 = vrot.slane %v3335_v32, %v7878_v41 }
 0x3e8   :  { %v3135_v28 = vpop.f32.mrf.mxu1 }
 0x3e9   :  { %v3629_v61 = vadd.f32 %v7049_v5, %v3597_v4  ;;  %v3279_v7 = vadd.f32 %v7054_v58, %v3135_v28  ;;  %5069 = vmatprep.mubr.f32.mxu0 %v3652_v40  ;;  %v3575_v40 = vsub.f32 %v3467_v13, %v6984_v44 }
 0x3ea   :  { %v3139_v51 = vpop.f32.mrf.mxu1 }
 0x3eb   :  { %v3653_v12 = vmax.f32 %v3629_v61, 0.0  ;;  %v7070_v30 = vadd.f32 %v3279_v7, %v6996_v53  ;;  %v3598_v45 = vadd.f32 %v3574_v52, %v3139_v51  ;;  %v3351_v52 = vcombine.high %v3335_v32, %v3335_v32 }
 0x3ec   :  { %v3141_v24 = vpop.f32.mrf.mxu1  ;;  %v3361_v32 = vrot.slane %v6986_v33, %v7876_v60 }
 0x3ed   :  { %v3630_v63 = vadd.f32 %v7049_v5, %v3598_v45  ;;  %v3280_v4 = vadd.f32 %v7054_v58, %v3141_v24  ;;  %5070 = vmatmul.mubr.f32.vlgmr.msra.gmra.mxu0 %v3653_v12  ;;  %v3576_v45 = vsub.f32 %v3471_v56, %v6984_v44  ;;  %v3475_v12 = vrot.slane %v3349_v50, %v7878_v41 }
 0x3ee   :  { %v3145_v28 = vpop.f32.mrf.mxu1  ;;  %v3369_v46 = vcombine.high %v3361_v32, %v3361_v32  ;;  %v3377_v38 = vrot.slane %v3361_v32, %v7876_v60 }
 0x3ef   :  { %v3654_v15 = vmax.f32 %v3630_v63, 0.0  ;;  %v7078_v61 = vadd.f32 %v3280_v4, %v6996_v53  ;;  %v3599_v7 = vadd.f32 %v3575_v40, %v3145_v28  ;;  %v3479_v40 = vrot.slane %v3351_v52, %v7878_v41 }
 0x3f0   :  { %v3147_v9 = vpop.f32.mrf.mxu1  ;;  %v3353_v28 = vcombine.high %v3349_v50, %v3349_v50  ;;  %v3577_v56 = vsub.f32 %v3475_v12, %v6984_v44 }
 0x3f1   :  { %v3631_v51 = vadd.f32 %v7049_v5, %v3599_v7  ;;  %v3281_v59 = vadd.f32 %v7054_v58, %v3147_v9  ;;  %5072 = vmatprep.mubr.f32.mxu0 %v3654_v15  ;;  %v3578_v52 = vsub.f32 %v3479_v40, %v6984_v44  ;;  %v3391_v40 = vrot.slane %v3369_v46, %v7876_v60 }
 0x3f2   :  { %v3151_v13 = vpop.f32.mrf.mxu1  ;;  %v3483_v50 = vrot.slane %v3353_v28, %v7878_v41 }
 0x3f3   :  { %v3655_v24 = vmax.f32 %v3631_v51, 0.0  ;;  %v7085_v43 = vadd.f32 %v3281_v59, %v6996_v53  ;;  %v3600_v63 = vadd.f32 %v3576_v45, %v3151_v13 }
 0x3f4   :  { %v3153_v4 = vpop.f32.mrf.mxu1 }
 0x3f5   :  { %v3632_v9 = vadd.f32 %v7049_v5, %v3600_v63  ;;  %v3282_v15 = vadd.f32 %v7054_v58, %v3153_v4  ;;  %5073 = vmatmul.mubr.f32.gmra.mxu0 %v3655_v24 }
 0x3f6   :  { %v3157_v7 = vpop.f32.mrf.mxu1 }
 0x3f7   :  { %v3656_v51 = vmax.f32 %v3632_v9, 0.0  ;;  %v7094_v59 = vadd.f32 %v3282_v15, %v6996_v53  ;;  %v3601_v45 = vadd.f32 %v3577_v56, %v3157_v7  ;;  %v3579_v7 = vsub.f32 %v3483_v50, %v6984_v44 }
 0x3f8   :  { %v3159_v13 = vpop.f32.mrf.mxu1 }
 0x3f9   :  { %v3633_v63 = vadd.f32 %v7049_v5, %v3601_v45  ;;  %v3283_v24 = vadd.f32 %v7054_v58, %v3159_v13  ;;  %5075 = vmatprep.mubr.f32.mxu0 %v3656_v51  ;;  %v3487_v45 = vrot.slane %v3377_v38, %v7878_v41 }
 0x3fa   :  { %v3163_v12 = vpop.f32.mrf.mxu1 }
 0x3fb   :  { %v3657_v4 = vmax.f32 %v3633_v63, 0.0  ;;  %v7102_v9 = vadd.f32 %v3283_v24, %v6996_v53  ;;  %v3602_v15 = vadd.f32 %v3578_v52, %v3163_v12  ;;  %v3354_v52 = vcombine.high %v6986_v33, %v6986_v33 }
 0x3fc   :  { %v3165_v56 = vpop.f32.mrf.mxu1  ;;  %v3399_v12 = vcombine.high %v3377_v38, %v3377_v38 }
 0x3fd   :  { %v3634_v28 = vadd.f32 %v7049_v5, %v3602_v15  ;;  %v3284_v32 = vadd.f32 %v7054_v58, %v3165_v56  ;;  %5076 = vmatmul.mubr.f32.gmra.mxu0 %v3657_v4  ;;  %v3580_v4 = vsub.f32 %v3487_v45, %v6988_v42  ;;  %v3491_v15 = vrot.slane %v3391_v40, %v7878_v41 }
 0x3fe   :  { %v3169_v13 = vpop.f32.mrf.mxu1  ;;  %v3401_v45 = vcombine.high %v3391_v40, %v3391_v40 }
 0x3ff   :  { %v3658_v51 = vmax.f32 %v3634_v28, 0.0  ;;  %v7110_v63 = vadd.f32 %v3284_v32, %v6996_v53  ;;  %v3603_v24 = vadd.f32 %v3579_v7, %v3169_v13  ;;  %v3368_v13 = vrot.slane %v3354_v52, %v7876_v60 }
 0x400   :  { %v3171_v44 = vpop.f32.mrf.mxu1 }
 0x401   :  { %v3635_v46 = vadd.f32 %v7049_v5, %v3603_v24  ;;  %v3285_v50 = vadd.f32 %v7054_v58, %v3171_v44  ;;  %5078 = vmatprep.mubr.f32.mxu0 %v3658_v51  ;;  %v3581_v24 = vsub.f32 %v3491_v15, %v6988_v42  ;;  %v3495_v51 = vrot.slane %v3399_v12, %v7878_v41 }
 0x402   :  { %v3175_v56 = vpop.f32.mrf.mxu1 }
 0x403   :  { %v3659_v28 = vmax.f32 %v3635_v46, 0.0  ;;  %v7119_v32 = vadd.f32 %v3285_v50, %v6996_v53  ;;  %v3604_v7 = vadd.f32 %v3580_v4, %v3175_v56  ;;  %v3370_v46 = vcombine.high %v3368_v13, %v3368_v13 }
 0x404   :  { %v7122_v33 = vpop.f32.mrf.mxu1  ;;  %v3384_v53 = vrot.slane %v3368_v13, %v7876_v60  ;;  %v3582_v50 = vsub.f32 %v3495_v51, %v6988_v42  ;;  %v3499_v4 = vrot.slane %v3401_v45, %v7878_v41 }
 0x405   :  { %v3636_v38 = vadd.f32 %v7049_v5, %v3604_v7  ;;  %5079 = vmatmul.mubr.f32.gmra.mxu0 %v3659_v28  ;;  %v3398_v13 = vrot.slane %v3370_v46, %v7876_v60 }
 0x406   :  { %v3181_v44 = vpop.f32.mrf.mxu1  ;;  %v3583_v7 = vsub.f32 %v3499_v4, %v6988_v42 }
 0x407   :  { %v3660_v36 = vmax.f32 %v3636_v38, 0.0  ;;  %v3605_v62 = vadd.f32 %v3581_v24, %v3181_v44  ;;  %v3503_v38 = vrot.slane %v3384_v53, %v7878_v41 }
 0x408   :  { %v7127_v8 = vpop.f32.mrf.mxu1 }
 0x409   :  { %v3637_v52 = vadd.f32 %v7049_v5, %v3605_v62  ;;  %5081 = vmatprep.mubr.f32.mxu0 %v3660_v36  ;;  %v3584_v44 = vsub.f32 %v3503_v38, %v6988_v42 }
 0x40a   :  { %v3187_v56 = vpop.f32.mrf.mxu1 }
 0x40b   :  { %v3661_v15 = vmax.f32 %v3637_v52, 0.0  ;;  %v3606_v28 = vadd.f32 %v3582_v50, %v3187_v56  ;;  %v3507_v52 = vrot.slane %v3398_v13, %v7878_v41  ;;  %v3400_v50 = vcombine.high %v3384_v53, %v3384_v53 }
 0x40c   :  { %v7133_v12 = vpop.f32.mrf.mxu1 }
 0x40d   :  { %v3638_v40 = vadd.f32 %v7049_v5, %v3606_v28  ;;  %5082 = vmatmul.mubr.f32.gmra.mxu0 %v3661_v15  ;;  %v3585_v46 = vsub.f32 %v3507_v52, %v6988_v42 }
 0x40e   :  { %v3193_v62 = vpop.f32.mrf.mxu1 }
 0x40f   :  { %v3662_v36 = vmax.f32 %v3638_v40, 0.0  ;;  %v3607_v24 = vadd.f32 %v3583_v7, %v3193_v62  ;;  %v3511_v40 = vrot.slane %v3400_v50, %v7878_v41  ;;  %v3402_v7 = vcombine.high %v3398_v13, %v3398_v13 }
 0x410   :  { %v7139_v51 = vpop.f32.mrf.mxu1 }
 0x411   :  { %v3639_v45 = vadd.f32 %v7049_v5, %v3607_v24  ;;  %5084 = vmatprep.mubr.f32.mxu0 %v3662_v36 }
 0x412   :  { %v3199_v56 = vpop.f32.mrf.mxu1 }
 0x413   :  { %v3663_v15 = vmax.f32 %v3639_v45, 0.0  ;;  %v3608_v4 = vadd.f32 %v3584_v44, %v3199_v56  ;;  %v3586_v45 = vsub.f32 %v3511_v40, %v6988_v42  ;;  %v3515_v44 = vrot.slane %v3402_v7, %v7878_v41 }
 0x414   :  { %v7144_v28 = vpop.f32.mrf.mxu1 }
 0x415   :  { %v3640_v60 = vadd.f32 %v7049_v5, %v3608_v4  ;;  %5085 = vmatmul.mubr.f32.gmra.mxu0 %v3663_v15  ;;  %v3587_v13 = vsub.f32 %v3515_v44, %v6988_v42 }
 0x416   :  { %v3205_v62 = vpop.f32.mrf.mxu1 }
 0x417   :  { %v3664_v36 = vmax.f32 %v3640_v60, 0.0  ;;  %v3609_v24 = vadd.f32 %v3585_v46, %v3205_v62 }
 0x418   :  { %v7149_v38 = vpop.f32.mrf.mxu1 }
 0x419   :  { %v3641_v53 = vadd.f32 %v7049_v5, %v3609_v24  ;;  %5087 = vmatprep.mubr.f32.mxu0 %v3664_v36 }
 0x41a   :  { %v3211_v56 = vpop.f32.mrf.mxu1 }
 0x41b   :  { %v3665_v4 = vmax.f32 %v3641_v53, 0.0  ;;  %v3610_v15 = vadd.f32 %v3586_v45, %v3211_v56 }
 0x41c   :  { %v7154_v18 = vpop.f32.mrf.mxu1 }
 0x41d   :  { %v3642_v52 = vadd.f32 %v7049_v5, %v3610_v15  ;;  %5088 = vmatmul.mubr.f32.gmra.mxu0 %v3665_v4 }
 0x41e   :  { %v3217_v50 = vpop.f32.mrf.mxu1 }
 0x41f   :  { %v3666_v60 = vmax.f32 %v3642_v52, 0.0  ;;  %v3611_v46 = vadd.f32 %v3587_v13, %v3217_v50  ;;  %v7889_v13 = vsub.f32 %v7004_v37, %v6992_v0 }
 0x420   :  { %v7158_v62 = vpop.f32.mrf.mxu1 }
 0x421   :  { %v3643_v36 = vadd.f32 %v7049_v5, %v3611_v46  ;;  %5090 = vmatprep.mubr.f32.mxu0 %v3666_v60 }
 0x422   :  { %v3223_v40 = vpop.f32.mrf.mxu1 }
 0x423   :  { %v3667_v41 = vmax.f32 %v3643_v36, 0.0  ;;  %v3612_v7 = vadd.f32 %v7010_v47, %v3223_v40 }
 0x424   :  { %v7162_v24 = vpop.f32.mrf.mxu1 }
 0x425   :  { %v3644_v53 = vadd.f32 %v7049_v5, %v3612_v7  ;;  %5091 = vmatmul.mubr.f32.gmra.mxu0 %v3667_v41 }
 0x426   :  { %v3229_v45 = vpop.f32.mrf.mxu1 }
 0x427   :  { %v3668_v56 = vmax.f32 %v3644_v53, 0.0  ;;  %v3613_v42 = vadd.f32 %v7014_v49, %v3229_v45  ;;  %v7890_v49 = vsub.f32 %v7019_v34, %v6992_v0 }
 0x428   :  { %v7166_v44 = vpop.f32.mrf.mxu1 }
 0x429   :  { %v3645_v4 = vadd.f32 %v7049_v5, %v3613_v42  ;;  %5093 = vmatprep.mubr.f32.mxu0 %v3668_v56 }
 0x42a   :  { %v3235_v15 = vpop.f32.mrf.mxu1 }
 0x42b   :  { %v3669_v52 = vmax.f32 %v3645_v4, 0.0  ;;  %v3614_v47 = vadd.f32 %v7889_v13, %v3235_v15 }
 0x42c   :  { %v7172_v50 = vpop.f32.mrf.mxu1 }
 0x42d   :  { %v3646_v60 = vadd.f32 %v7049_v5, %v3614_v47  ;;  %5094 = vmatmul.mubr.f32.gmra.mxu0 %v3669_v52 }
 0x42e   :  { %v3241_v46 = vpop.f32.mrf.mxu1 }
 0x42f   :  { %v3670_v36 = vmax.f32 %v3646_v60, 0.0  ;;  %v3615_v40 = vadd.f32 %v7890_v49, %v3241_v46  ;;  %v7891_v46 = vsub.f32 %v7026_v23, %v6992_v0  ;;  %v7204_v23 = vld [vmem:[%s7781_s10 + $0x1] ss:$0 sm:$0xff] }
 0x430   :  { %v7178_v41 = vpop.f32.mrf.mxu1 }
 0x431   :  { %v3647_v7 = vadd.f32 %v7049_v5, %v3615_v40  ;;  %5096 = vmatprep.mubr.f32.mxu0 %v3670_v36 }
 0x432   :  { %v3247_v53 = vpop.f32.mrf.mxu1 }
 0x433   :  { %v3671_v45 = vmax.f32 %v3647_v7, 0.0  ;;  %v3616_v37 = vadd.f32 %v7022_v25, %v3247_v53 }
 0x434   :  { %v7182_v56 = vpop.f32.mrf.mxu1 }
 0x435   :  { %v3648_v42 = vadd.f32 %v7049_v5, %v3616_v37  ;;  %5097 = vmatmul.mubr.f32.gmra.mxu0 %v3671_v45 }
 0x436   :  { %v3253_v4 = vpop.f32.mrf.mxu1 }
 0x437   :  { %v3672_v15 = vmax.f32 %v3648_v42, 0.0  ;;  %v3617_v52 = vadd.f32 %v7035_v54, %v3253_v4  ;;  %v7893_v54 = vsub.f32 %v7040_v39, %v6992_v0 }
 0x438   :  { %v7186_v34 = vpop.f32.mrf.mxu1 }
 0x439   :  { %v3649_v13 = vadd.f32 %v7049_v5, %v3617_v52  ;;  %5099 = vmatprep.mubr.f32.mxu0 %v3672_v15 }
 0x43a   :  { %v3259_v47 = vpop.f32.mrf.mxu1 }
 0x43b   :  { %v3673_v60 = vmax.f32 %v3649_v13, 0.0  ;;  %v3618_v25 = vadd.f32 %v7891_v46, %v3259_v47 }
 0x43c   :  { %v7192_v36 = vpop.f32.mrf.mxu1 }
 0x43d   :  { %7892 = vst [vmem:[#allocation3_spill] sm:$0xff] %v7192_v36  ;;  %v3650_v49 = vadd.f32 %v7049_v5, %v3618_v25  ;;  %5100 = vmatmul.mubr.f32.gmra.mxu0 %v3673_v60 }
 0x43e   :  { %v3265_v40 = vpop.f32.mrf.mxu1 }
 0x43f   :  { %v3674_v7 = vmax.f32 %v3650_v49, 0.0  ;;  %v3619_v53 = vadd.f32 %v7893_v54, %v3265_v40 }
 0x441   :  { %v3651_v45 = vadd.f32 %v7049_v5, %v3619_v53  ;;  %5102 = vmatprep.mubr.f32.mxu0 %v3674_v7  ;;  %v3286_v53 = vadd.f32 %v7054_v58, %v7122_v33 }
 0x443   :  { %v3675_v37 = vmax.f32 %v3651_v45, 0.0  ;;  %v3287_v45 = vadd.f32 %v7054_v58, %v7127_v8  ;;  %v7222_v33 = vadd.f32 %v3286_v53, %v7007_v29 }
 0x445   :  { %5103 = vmatmul.mubr.f32.gmra.mxu0 %v3675_v37  ;;  %v7225_v8 = vadd.f32 %v3287_v45, %v7007_v29 }
 0x446   :  { %5113 = vmatprep.mubr.msk.f32.mxu0 %vm5336_vm1, %v7832_v35 }
 0x4ad   :  { %v5071_v42 = vpop.f32.mrf.mxu0 }
 0x4ae   :  { %v3773_v4 = vadd.f32 %v5071_v42, %v7204_v23 }
 0x4af   :  { %v3767_v15 = vpop.f32.mrf.mxu0 }
 0x4b0   :  { %v3893_v0 = vsel %vm161_vm0, %v3773_v4, -inf  ;;  %v3768_v39 = vadd.f32 %v7204_v23, %v3767_v15 }
 0x4b1   :  { %v3894_v5 = vrot.slane %v3893_v0, 4 }
 0x4b2   :  { %v3886_v52 = vsel %vm161_vm0, %v3768_v39, -inf }
 0x4b3   :  { %v3895_v13 = vmax.f32 %v3893_v0, %v3894_v5  ;;  %v3887_v47 = vrot.slane %v3886_v52, 4 }
 0x4b5   :  { %v3896_v60 = vrot.slane %v3895_v13, 2  ;;  %v3888_v46 = vmax.f32 %v3886_v52, %v3887_v47  ;;  %v5074_v25 = vpop.f32.mrf.mxu0 }
 0x4b6   :  { %v3783_v49 = vadd.f32 %v5074_v25, %v7204_v23 }
 0x4b7   :  { %v3897_v40 = vmax.f32 %v3895_v13, %v3896_v60  ;;  %v3889_v7 = vrot.slane %v3888_v46, 2  ;;  %v3777_v54 = vpop.f32.mrf.mxu0 }
 0x4b8   :  { %v3907_v37 = vsel %vm161_vm0, %v3783_v49, -inf  ;;  %v7217_v42 = vadd.f32 %v7204_v23, %v3777_v54 }
 0x4b9   :  { %v3898_v15 = vrot.slane %v3897_v40, 1  ;;  %v3890_v0 = vmax.f32 %v3888_v46, %v3889_v7  ;;  %v3908_v5 = vrot.slane %v3907_v37, 4  ;;  %v3288_v46 = vadd.f32 %v7054_v58, %v7133_v12 }
 0x4ba   :  { %v3900_v52 = vsel %vm161_vm0, %v7217_v42, -inf  ;;  %v3290_v7 = vadd.f32 %v7054_v58, %v7144_v28  ;;  %v3292_v12 = vadd.f32 %v7054_v58, %v7154_v18 }
 0x4bb   :  { %v3899_v13 = vmax.f32 %v3897_v40, %v3898_v15  ;;  %v3891_v47 = vrot.slane %v3890_v0, 1  ;;  %v3909_v60 = vmax.f32 %v3907_v37, %v3908_v5  ;;  %v3901_v25 = vrot.slane %v3900_v52, 4 }
 0x4bc   :  { %v3289_v40 = vadd.f32 %v7054_v58, %v7139_v51  ;;  %v3291_v5 = vadd.f32 %v7054_v58, %v7149_v38 }
 0x4bd   :  { %v4055_v36 = vsub.f32 %v3773_v4, %v3899_v13  ;;  %v3892_v20 = vmax.f32 %v3890_v0, %v3891_v47  ;;  %v3910_v54 = vrot.slane %v3909_v60, 2  ;;  %v3902_v19 = vmax.f32 %v3900_v52, %v3901_v25  ;;  %v5077_v2 = vpop.f32.mrf.mxu0 }
 0x4be   :  { %v7234_v53 = vadd.f32 %v5077_v2, %v7204_v23  ;;  %v7254_v25 = vadd.f32 %v3290_v7, %v7007_v29  ;;  %v3295_v7 = vadd.f32 %v7054_v58, %v7166_v44 }
 0x4bf   :  { %v4080_v37 = vmul.f32 1.442695, %v4055_v36  ;;  %v4054_v45 = vsub.f32 %v3768_v39, %v3892_v20  ;;  %v3911_v15 = vmax.f32 %v3909_v60, %v3910_v54  ;;  %v3903_v4 = vrot.slane %v3902_v19, 2  ;;  %v3787_v0 = vpop.f32.mrf.mxu0 }
 0x4c0   :  { %v3921_v51 = vsel %vm161_vm0, %v7234_v53, -inf  ;;  %v7243_v52 = vadd.f32 %v7204_v23, %v3787_v0  ;;  %v7246_v20 = vadd.f32 %v3288_v46, %v7007_v29  ;;  %v7249_v39 = vadd.f32 %v3289_v40, %v7007_v29 }
 0x4c1   :  { %5230 = vpow2.f32 %v4080_v37  ;;  %v4078_v2 = vmul.f32 1.442695, %v4054_v45  ;;  %v3912_v28 = vrot.slane %v3911_v15, 1  ;;  %v3904_v36 = vmax.f32 %v3902_v19, %v3903_v4 }
 0x4c2   :  { %v3922_v38 = vrot.slane %v3921_v51, 4  ;;  %v3914_v18 = vsel %vm161_vm0, %v7243_v52, -inf  ;;  %v7257_v54 = vadd.f32 %v3291_v5, %v7007_v29  ;;  %v7260_v19 = vadd.f32 %v3292_v12, %v7007_v29 }
 0x4c3   :  { %5232 = vpow2.f32 %v4078_v2  ;;  %v3913_v13 = vmax.f32 %v3911_v15, %v3912_v28  ;;  %v3905_v47 = vrot.slane %v3904_v36, 1  ;;  %v3915_v60 = vrot.slane %v3914_v18, 4 }
 0x4c4   :  { %v3923_v46 = vmax.f32 %v3921_v51, %v3922_v38  ;;  %v3293_v40 = vadd.f32 %v7054_v58, %v7158_v62  ;;  %v3294_v15 = vadd.f32 %v7054_v58, %v7162_v24  ;;  %v3296_v12 = vadd.f32 %v7054_v58, %v7172_v50 }
 0x4c5   :  { %v4057_v37 = vsub.f32 %v3783_v49, %v3913_v13  ;;  %v3906_v45 = vmax.f32 %v3904_v36, %v3905_v47  ;;  %v3916_v4 = vmax.f32 %v3914_v18, %v3915_v60  ;;  %v5080_v0 = vpop.f32.mrf.mxu0  ;;  %v3297_v36 = vadd.f32 %v7054_v58, %v7178_v41 }
 0x4c6   :  { %v3924_v2 = vrot.slane %v3923_v46, 2  ;;  %v7269_v5 = vadd.f32 %v5080_v0, %v7204_v23  ;;  %v7282_v50 = vadd.f32 %v3293_v40, %v7007_v29  ;;  %v7289_v0 = vadd.f32 %v3294_v15, %v7032_v16 }
 0x4c7   :  { %v4084_v51 = vmul.f32 1.442695, %v4057_v37  ;;  %v4056_v62 = vsub.f32 %v7217_v42, %v3906_v45  ;;  %v3917_v49 = vrot.slane %v3916_v4, 2  ;;  %v3797_v28 = vpop.f32.mrf.mxu0  ;;  %v3298_v42 = vadd.f32 %v7054_v58, %v7182_v56 }
 0x4c8   :  { %v3925_v38 = vmax.f32 %v3923_v46, %v3924_v2  ;;  %v3935_v24 = vsel %vm161_vm0, %v7269_v5, -inf  ;;  %v7279_v44 = vadd.f32 %v7204_v23, %v3797_v28  ;;  %v7295_v29 = vadd.f32 %v3296_v12, %v7032_v16 }
 0x4c9   :  { %5234 = vpow2.f32 %v4084_v51  ;;  %v4082_v18 = vmul.f32 1.442695, %v4056_v62  ;;  %v3918_v13 = vmax.f32 %v3916_v4, %v3917_v49  ;;  %v3936_v47 = vrot.slane %v3935_v24, 4 }
 0x4ca   :  { %v3926_v60 = vrot.slane %v3925_v38, 1  ;;  %v3928_v41 = vsel %vm161_vm0, %v7279_v44, -inf  ;;  %v7292_v4 = vadd.f32 %v3295_v7, %v7032_v16  ;;  %7894 = vst [vmem:[#allocation2_spill] sm:$0xff] %v7295_v29  ;;  %v7298_v56 = vadd.f32 %v3297_v36, %v7032_v16 }
 0x4cb   :  { %5236 = vpow2.f32 %v4082_v18  ;;  %v3919_v46 = vrot.slane %v3918_v13, 1  ;;  %v3937_v37 = vmax.f32 %v3935_v24, %v3936_v47  ;;  %v3929_v45 = vrot.slane %v3928_v41, 4 }
 0x4cc   :  { %v3927_v40 = vmax.f32 %v3925_v38, %v3926_v60  ;;  %7895 = vst [vmem:[#allocation4_spill] sm:$0xff] %v7298_v56  ;;  %v7303_v24 = vadd.f32 %v3298_v42, %v7032_v16  ;;  %v3299_v15 = vadd.f32 %v7054_v58, %v7186_v34 }
 0x4cd   :  { %v3920_v2 = vmax.f32 %v3918_v13, %v3919_v46  ;;  %v3938_v51 = vrot.slane %v3937_v37, 2  ;;  %v3930_v62 = vmax.f32 %v3928_v41, %v3929_v45  ;;  %v5083_v49 = vpop.f32.mrf.mxu0 }
 0x4ce   :  { %v7300_v28 = vpop.eup %5230  ;;  %7896 = vst [vmem:[#allocation8_spill] sm:$0xff] %v7303_v24  ;;  %v4059_v7 = vsub.f32 %v7234_v53, %v3927_v40  ;;  %v7309_v12 = vadd.f32 %v5083_v49, %v7204_v23  ;;  %v7326_v14 = vadd.f32 %v3299_v15, %v7032_v16 }
 0x4cf   :  { %v4133_v36 = vsel %vm161_vm0, %v7300_v28, 0.0  ;;  %v4058_v38 = vsub.f32 %v7243_v52, %v3920_v2  ;;  %v3939_v18 = vmax.f32 %v3937_v37, %v3938_v51  ;;  %v3931_v13 = vrot.slane %v3930_v62, 2  ;;  %v3807_v47 = vpop.f32.mrf.mxu0  ;;  %v3267_v52 = vpop.f32.mrf.mxu1 }
 0x4d0   :  { %v7314_v60 = vpop.eup %5232  ;;  %v4134_v42 = vrot.slane %v4133_v36, 4  ;;  %v4088_v41 = vmul.f32 1.442695, %v4059_v7  ;;  %v3949_v34 = vsel %vm161_vm0, %v7309_v12, -inf  ;;  %v7319_v53 = vadd.f32 %v7204_v23, %v3807_v47  ;;  %7897 = vst [vmem:[#allocation9_spill] sm:$0xff] %v7326_v14 }
 0x4d1   :  { %v4126_v46 = vsel %vm161_vm0, %v7314_v60, 0.0  ;;  %v4086_v45 = vmul.f32 1.442695, %v4058_v38  ;;  %v3940_v40 = vrot.slane %v3939_v18, 1  ;;  %v3932_v49 = vmax.f32 %v3930_v62, %v3931_v13 }
 0x4d2   :  { %v4135_v37 = vadd.f32 %v4134_v42, %v4133_v36  ;;  %v4127_v2 = vrot.slane %v4126_v46, 4  ;;  %5238 = vpow2.f32 %v4088_v41  ;;  %v3950_v51 = vrot.slane %v3949_v34, 4 }
 0x4d3   :  { %5240 = vpow2.f32 %v4086_v45  ;;  %v3941_v24 = vmax.f32 %v3939_v18, %v3940_v40  ;;  %v3933_v7 = vrot.slane %v3932_v49, 1  ;;  %v3942_v29 = vsel %vm161_vm0, %v7319_v53, -inf }
 0x4d4   :  { %v4136_v21 = vrot.slane %v4135_v37, 2  ;;  %v4128_v47 = vadd.f32 %v4127_v2, %v4126_v46  ;;  %v3951_v1 = vmax.f32 %v3949_v34, %v3950_v51  ;;  %v3943_v3 = vrot.slane %v3942_v29, 4 }
 0x4d5   :  { %v7329_v62 = vadd.f32 %v7054_v58, %v3267_v52  ;;  %v4061_v36 = vsub.f32 %v7269_v5, %v3941_v24  ;;  %v3934_v38 = vmax.f32 %v3932_v49, %v3933_v7  ;;  %v5086_v13 = vpop.f32.mrf.mxu0 }
 0x4d6   :  { %v7332_v42 = vpop.eup %5234  ;;  %v4137_v18 = vadd.f32 %v4136_v21, %v4135_v37  ;;  %v4129_v41 = vrot.slane %v4128_v47, 2  ;;  %v3952_v45 = vrot.slane %v3951_v1, 2  ;;  %v3944_v40 = vmax.f32 %v3942_v29, %v3943_v3 }
 0x4d7   :  { %7898 = vst [vmem:[#allocation10_spill] sm:$0xff] %v7329_v62  ;;  %v4147_v34 = vsel %vm161_vm0, %v7332_v42, 0.0  ;;  %v4092_v46 = vmul.f32 1.442695, %v4061_v36  ;;  %v4060_v15 = vsub.f32 %v7279_v44, %v3934_v38  ;;  %v7338_v2 = vadd.f32 %v5086_v13, %v7204_v23  ;;  %v3817_v44 = vpop.f32.mrf.mxu0 }
 0x4d8   :  { %v7340_v58 = vpop.eup %5236  ;;  %v4138_v5 = vrot.slane %v4137_v18, 1  ;;  %v4130_v24 = vadd.f32 %v4129_v41, %v4128_v47  ;;  %v4148_v49 = vrot.slane %v4147_v34, 4  ;;  %v3953_v52 = vmax.f32 %v3951_v1, %v3952_v45 }
 0x4d9   :  { %v4140_v21 = vsel %vm161_vm0, %v7340_v58, 0.0  ;;  %5242 = vpow2.f32 %v4092_v46  ;;  %v4090_v3 = vmul.f32 1.442695, %v4060_v15  ;;  %v3945_v29 = vrot.slane %v3944_v40, 2 }
 0x4da   :  { %v4139_v37 = vadd.f32 %v4138_v5, %v4137_v18  ;;  %v4131_v51 = vrot.slane %v4130_v24, 1  ;;  %v4149_v7 = vadd.f32 %v4148_v49, %v4147_v34  ;;  %v4141_v36 = vrot.slane %v4140_v21, 4 }
 0x4db   :  { %5244 = vpow2.f32 %v4090_v3  ;;  %v3954_v38 = vrot.slane %v3953_v52, 1  ;;  %v3946_v13 = vmax.f32 %v3944_v40, %v3945_v29  ;;  %v3963_v62 = vsel %vm161_vm0, %v7338_v2, -inf }
 0x4dc   :  { %5246 = vrcp.f32 %v4139_v37  ;;  %v4132_v47 = vadd.f32 %v4131_v51, %v4130_v24  ;;  %v4150_v1 = vrot.slane %v4149_v7, 2  ;;  %v4142_v41 = vadd.f32 %v4141_v36, %v4140_v21 }
 0x4dd   :  { %v3955_v45 = vmax.f32 %v3953_v52, %v3954_v38  ;;  %v3947_v16 = vrot.slane %v3946_v13, 1  ;;  %v3964_v46 = vrot.slane %v3963_v62, 4  ;;  %v7347_v15 = vadd.f32 %v7204_v23, %v3817_v44  ;;  %v5089_v18 = vpop.f32.mrf.mxu0 }
 0x4de   :  { %5248 = vrcp.f32 %v4132_v47  ;;  %v4151_v34 = vadd.f32 %v4150_v1, %v4149_v7  ;;  %v4143_v5 = vrot.slane %v4142_v41, 2  ;;  %v7350_v49 = vadd.f32 %v5089_v18, %v7204_v23 }
 0x4df   :  { %v7352_v40 = vpop.eup %5238  ;;  %v4063_v3 = vsub.f32 %v7309_v12, %v3955_v45  ;;  %v3948_v24 = vmax.f32 %v3946_v13, %v3947_v16  ;;  %v3965_v29 = vmax.f32 %v3963_v62, %v3964_v46  ;;  %v3956_v52 = vsel %vm161_vm0, %v7347_v15, -inf  ;;  %v3827_v55 = vpop.f32.mrf.mxu0 }
 0x4e0   :  { %v7357_v21 = vpop.eup %5240  ;;  %v4152_v37 = vrot.slane %v4151_v34, 1  ;;  %v4144_v51 = vadd.f32 %v4143_v5, %v4142_v41  ;;  %v4161_v7 = vsel %vm161_vm0, %v7352_v40, 0.0  ;;  %v3957_v36 = vrot.slane %v3956_v52, 4 }
 0x4e1   :  { %v4162_v44 = vrot.slane %v4161_v7, 4  ;;  %v4154_v38 = vsel %vm161_vm0, %v7357_v21, 0.0  ;;  %v4096_v47 = vmul.f32 1.442695, %v4063_v3  ;;  %v4062_v12 = vsub.f32 %v7319_v53, %v3948_v24 }
 0x4e2   :  { %v4153_v16 = vadd.f32 %v4152_v37, %v4151_v34  ;;  %v4145_v62 = vrot.slane %v4144_v51, 1  ;;  %v4155_v13 = vrot.slane %v4154_v38, 4  ;;  %v3966_v1 = vrot.slane %v3965_v29, 2 }
 0x4e3   :  { %v4163_v45 = vadd.f32 %v4162_v44, %v4161_v7  ;;  %5250 = vpow2.f32 %v4096_v47  ;;  %v4094_v46 = vmul.f32 1.442695, %v4062_v12  ;;  %v3958_v18 = vmax.f32 %v3956_v52, %v3957_v36 }
 0x4e4   :  { %5252 = vrcp.f32 %v4153_v16  ;;  %v4146_v41 = vadd.f32 %v4145_v62, %v4144_v51  ;;  %v4156_v5 = vadd.f32 %v4155_v13, %v4154_v38  ;;  %v3967_v14 = vmax.f32 %v3965_v29, %v3966_v1 }
 0x4e5   :  { %v4164_v10 = vrot.slane %v4163_v45, 2  ;;  %5254 = vpow2.f32 %v4094_v46  ;;  %v3959_v22 = vrot.slane %v3958_v18, 2  ;;  %v3977_v3 = vsel %vm161_vm0, %v7350_v49, -inf }
 0x4e6   :  { %v7366_v53 = vpop.eup %5242  ;;  %5256 = vrcp.f32 %v4146_v41  ;;  %v4157_v34 = vrot.slane %v4156_v5, 2  ;;  %v3968_v24 = vrot.slane %v3967_v14, 1  ;;  %v3978_v37 = vrot.slane %v3977_v3, 4 }
 0x4e7   :  { %v4165_v7 = vadd.f32 %v4164_v10, %v4163_v45  ;;  %v4175_v52 = vsel %vm161_vm0, %v7366_v53, 0.0  ;;  %v3960_v51 = vmax.f32 %v3958_v18, %v3959_v22  ;;  %v7371_v29 = vadd.f32 %v7204_v23, %v3827_v55 }
 0x4e8   :  { %v7373_v36 = vpop.eup %5244  ;;  %v4158_v44 = vadd.f32 %v4157_v34, %v4156_v5  ;;  %v4176_v38 = vrot.slane %v4175_v52, 4  ;;  %v3969_v47 = vmax.f32 %v3967_v14, %v3968_v24  ;;  %v3979_v12 = vmax.f32 %v3977_v3, %v3978_v37 }
 0x4e9   :  { %v5247_v16 = vpop.eup %5246  ;;  %v4166_v62 = vrot.slane %v4165_v7, 1  ;;  %v4168_v13 = vsel %vm161_vm0, %v7373_v36, 0.0  ;;  %v3961_v1 = vrot.slane %v3960_v51, 1  ;;  %v7379_v10 = vsel %vm161_vm0, %v7371_v29, -inf }
 0x4ea   :  { %v4319_v22 = vmul.f32 %v5247_v16, %v7300_v28  ;;  %v4159_v55 = vrot.slane %v4158_v44, 1  ;;  %v4177_v45 = vadd.f32 %v4176_v38, %v4175_v52  ;;  %v4169_v46 = vrot.slane %v4168_v13, 4 }
 0x4eb   :  { %v5249_v18 = vpop.eup %5248  ;;  %v4167_v41 = vadd.f32 %v4166_v62, %v4165_v7  ;;  %v4065_v14 = vsub.f32 %v7338_v2, %v3969_v47  ;;  %v3962_v5 = vmax.f32 %v3960_v51, %v3961_v1  ;;  %v3980_v3 = vrot.slane %v3979_v12, 2 }
 0x4ec   :  { %v4367_v34 = vmul.f32 %v7070_v30, %v4319_v22  ;;  %v4318_v24 = vmul.f32 %v5249_v18, %v7314_v60  ;;  %v4160_v37 = vadd.f32 %v4159_v55, %v4158_v44  ;;  %v4178_v56 = vrot.slane %v4177_v45, 2 }
 0x4ed   :  { %5258 = vrcp.f32 %v4167_v41  ;;  %v4170_v11 = vadd.f32 %v4169_v46, %v4168_v13  ;;  %v4100_v57 = vmul.f32 1.442695, %v4065_v14  ;;  %v4064_v28 = vsub.f32 %v7347_v15, %v3962_v5 }
 0x4ee   :  { %v4397_v52 = vsel %vm161_vm0, %v4367_v34, 0.0  ;;  %v4366_v38 = vmul.f32 %v7062_v48, %v4318_v24  ;;  %5260 = vrcp.f32 %v4160_v37  ;;  %v4179_v7 = vadd.f32 %v4178_v56, %v4177_v45 }
 0x4ef   :  { %v4398_v2 = vrot.slane %v4397_v52, 4  ;;  %v4171_v51 = vrot.slane %v4170_v11, 2  ;;  %5262 = vpow2.f32 %v4100_v57  ;;  %v4098_v47 = vmul.f32 1.442695, %v4064_v28 }
 0x4f0   :  { %v7388_v30 = vpop.eup %5250  ;;  %v4390_v60 = vsel %vm161_vm0, %v4366_v38, 0.0  ;;  %v4180_v44 = vrot.slane %v4179_v7, 1  ;;  %v3981_v16 = vmax.f32 %v3979_v12, %v3980_v3  ;;  %v3971_v62 = vrot.slane %v7379_v10, 4 }
 0x4f1   :  { %v5253_v13 = vpop.eup %5252  ;;  %v4399_v15 = vadd.f32 %v4398_v2, %v4397_v52  ;;  %v4391_v1 = vrot.slane %v4390_v60, 4  ;;  %v4172_v22 = vadd.f32 %v4171_v51, %v4170_v11  ;;  %v4189_v48 = vsel %vm161_vm0, %v7388_v30, 0.0 }
 0x4f2   :  { %v7394_v56 = vpop.eup %5254  ;;  %v4321_v57 = vmul.f32 %v5253_v13, %v7332_v42  ;;  %v4181_v55 = vadd.f32 %v4180_v44, %v4179_v7  ;;  %v4190_v45 = vrot.slane %v4189_v48, 4  ;;  %5264 = vpow2.f32 %v4098_v47 }
 0x4f3   :  { %v5257_v46 = vpop.eup %5256  ;;  %v4400_v18 = vrot.slane %v4399_v15, 2  ;;  %v4392_v41 = vadd.f32 %v4391_v1, %v4390_v60  ;;  %v4173_v12 = vrot.slane %v4172_v22, 1  ;;  %v4182_v14 = vsel %vm161_vm0, %v7394_v56, 0.0 }
 0x4f4   :  { %v4369_v5 = vmul.f32 %v7085_v43, %v4321_v57  ;;  %v4320_v11 = vmul.f32 %v5257_v46, %v7340_v58  ;;  %5266 = vrcp.f32 %v4181_v55  ;;  %v4191_v3 = vadd.f32 %v4190_v45, %v4189_v48  ;;  %v5092_v58 = vpop.f32.mrf.mxu0 }
 0x4f5   :  { %v7401_v34 = vadd.f32 %v4400_v18, %v4399_v15  ;;  %v4393_v24 = vrot.slane %v4392_v41, 2  ;;  %v4174_v42 = vadd.f32 %v4173_v12, %v4172_v22  ;;  %v4183_v37 = vrot.slane %v4182_v14, 4 }
 0x4f6   :  { %v4411_v28 = vsel %vm161_vm0, %v4369_v5, 0.0  ;;  %v4368_v52 = vmul.f32 %v7078_v61, %v4320_v11  ;;  %v4192_v38 = vrot.slane %v4191_v3, 2  ;;  %v3982_v7 = vrot.slane %v3981_v16, 1 }
 0x4f7   :  { %v4402_v2 = vrot.slane %v7401_v34, 1  ;;  %v7406_v51 = vadd.f32 %v4393_v24, %v4392_v41  ;;  %v4412_v43 = vrot.slane %v4411_v28, 4  ;;  %5268 = vrcp.f32 %v4174_v42 }
 0x4f8   :  { %v4404_v47 = vsel %vm161_vm0, %v4368_v52, 0.0  ;;  %v4193_v60 = vadd.f32 %v4192_v38, %v4191_v3  ;;  %v4184_v44 = vadd.f32 %v4183_v37, %v4182_v14  ;;  %v3983_v13 = vmax.f32 %v3981_v16, %v3982_v7 }
 0x4f9   :  { %v4395_v15 = vrot.slane %v7406_v51, 1  ;;  %v4413_v1 = vadd.f32 %v4412_v43, %v4411_v28  ;;  %v4405_v22 = vrot.slane %v4404_v47, 4  ;;  %v3972_v61 = vmax.f32 %v7379_v10, %v3971_v62  ;;  %v4630_v28 = vld [vmem:[%s7782_s11 + $0x10] sm:$0xff] }
 0x4fa   :  { %v5259_v48 = vpop.eup %5258  ;;  %v4194_v57 = vrot.slane %v4193_v60, 1  ;;  %v4185_v55 = vrot.slane %v4184_v44, 2  ;;  %v4067_v45 = vsub.f32 %v7350_v49, %v3983_v13  ;;  %v7413_v46 = vadd.f32 %v5092_v58, %v7204_v23 }
 0x4fb   :  { %v5261_v18 = vpop.eup %5260  ;;  %v4414_v41 = vrot.slane %v4413_v1, 2  ;;  %v4406_v12 = vadd.f32 %v4405_v22, %v4404_v47  ;;  %v4323_v14 = vmul.f32 %v5259_v48, %v7352_v40  ;;  %v3973_v16 = vrot.slane %v3972_v61, 2  ;;  %v4631_v40 = vld [vmem:[%s7782_s11 + $0x18] sm:$0xff]  ;;  %v4629_v47 = vld [vmem:[%s7782_s11 + $0x8] sm:$0xff] }
 0x4fc   :  { %v7416_v5 = vpop.eup %5262  ;;  %v4322_v11 = vmul.f32 %v5261_v18, %v7357_v21  ;;  %v4195_v3 = vadd.f32 %v4194_v57, %v4193_v60  ;;  %v4186_v10 = vadd.f32 %v4185_v55, %v4184_v44  ;;  %v4104_v62 = vmul.f32 1.442695, %v4067_v45  ;;  %5106 = vmatpush3.msra.mxu0 %v4631_v40  ;;  %v4628_v45 = vld [vmem:[%s7782_s11] sm:$0xff] }
 0x4fd   :  { %v7419_v24 = vadd.f32 %v4414_v41, %v4413_v1  ;;  %v4407_v42 = vrot.slane %v4406_v12, 2  ;;  %v4371_v49 = vmul.f32 %v7102_v9, %v4323_v14  ;;  %v4203_v37 = vsel %vm161_vm0, %v7416_v5, 0.0  ;;  %5107 = vmatprep.subr.mxu0 %v7832_v35 }
 0x4fe   :  { %v4370_v21 = vmul.f32 %v7094_v59, %v4322_v11  ;;  %5270 = vrcp.f32 %v4195_v3  ;;  %v4187_v52 = vrot.slane %v4186_v10, 1  ;;  %v4204_v38 = vrot.slane %v4203_v37, 4  ;;  %5108 = vmatpush3.msra.mxu0 %v4630_v28 }
 0x4ff   :  { %v7431_v7 = vpop.eup %5264  ;;  %v4416_v9 = vrot.slane %v7419_v24, 1  ;;  %v7434_v43 = vadd.f32 %v4407_v42, %v4406_v12  ;;  %v4425_v58 = vsel %vm161_vm0, %v4371_v49, 0.0  ;;  %5272 = vpow2.f32 %v4104_v62  ;;  %5109 = vmatprep.subr.mxu0 %v7832_v35 }
 0x500   :  { %v4426_v59 = vrot.slane %v4425_v58, 4  ;;  %v4418_v60 = vsel %vm161_vm0, %v4370_v21, 0.0  ;;  %v4188_v44 = vadd.f32 %v4187_v52, %v4186_v10  ;;  %v4205_v13 = vadd.f32 %v4204_v38, %v4203_v37  ;;  %5110 = vmatpush3.msra.mxu0 %v4629_v47  ;;  %v3837_v37 = vpop.f32.mrf.mxu0 }
 0x501   :  { %v5267_v1 = vpop.eup %5266  ;;  %v4409_v22 = vrot.slane %v7434_v43, 1  ;;  %v4419_v48 = vrot.slane %v4418_v60, 4  ;;  %v4196_v57 = vsel %vm161_vm0, %v7431_v7, 0.0  ;;  %v3974_v55 = vmax.f32 %v3972_v61, %v3973_v16  ;;  %5111 = vmatprep.subr.mxu0 %v7832_v35 }
 0x502   :  { %v4427_v18 = vadd.f32 %v4426_v59, %v4425_v58  ;;  %v4325_v41 = vmul.f32 %v5267_v1, %v7366_v53  ;;  %5274 = vrcp.f32 %v4188_v44  ;;  %v4206_v12 = vrot.slane %v4205_v13, 2  ;;  %5112 = vmatpush3.msra.mxu0 %v4628_v45  ;;  %v5095_v35 = vpop.f32.mrf.mxu0 }
 0x503   :  { %v4420_v14 = vadd.f32 %v4419_v48, %v4418_v60  ;;  %v4197_v11 = vrot.slane %v4196_v57, 4  ;;  %v3975_v3 = vrot.slane %v3974_v55, 1  ;;  %v3991_v10 = vsel %vm161_vm0, %v7413_v46, -inf }
 0x504   :  { %v5269_v61 = vpop.eup %5268  ;;  %v4428_v16 = vrot.slane %v4427_v18, 2  ;;  %v4373_v62 = vmul.f32 %v7119_v32, %v4325_v41  ;;  %v4207_v42 = vadd.f32 %v4206_v12, %v4205_v13  ;;  %v3992_v49 = vrot.slane %v3991_v10, 4 }
 0x505   :  { %v4421_v53 = vrot.slane %v4420_v14, 2  ;;  %v4324_v40 = vmul.f32 %v5269_v61, %v7373_v36  ;;  %v4198_v28 = vadd.f32 %v4197_v11, %v4196_v57  ;;  %v3976_v21 = vmax.f32 %v3974_v55, %v3975_v3 }
 0x506   :  { %v7455_v52 = vadd.f32 %v4428_v16, %v4427_v18  ;;  %v4439_v38 = vsel %vm161_vm0, %v4373_v62, 0.0  ;;  %v4208_v58 = vrot.slane %v4207_v42, 1  ;;  %v3993_v47 = vmax.f32 %v3991_v10, %v3992_v49  ;;  %v3847_v49 = vpop.f32.mrf.mxu0 }
 0x507   :  { %v7458_v59 = vadd.f32 %v4421_v53, %v4420_v14  ;;  %v4440_v60 = vrot.slane %v4439_v38, 4  ;;  %v4372_v32 = vmul.f32 %v7110_v63, %v4324_v40  ;;  %v4199_v44 = vrot.slane %v4198_v28, 2 }
 0x508   :  { %v4209_v13 = vadd.f32 %v4208_v58, %v4207_v42  ;;  %v4066_v1 = vsub.f32 %v7371_v29, %v3976_v21  ;;  %v3994_v48 = vrot.slane %v3993_v47, 2  ;;  %v7463_v36 = vadd.f32 %v7204_v23, %v3837_v37 }
 0x509   :  { %v7465_v57 = vadd.f32 %v4440_v60, %v4439_v38  ;;  %v4432_v55 = vsel %vm161_vm0, %v4372_v32, 0.0  ;;  %v4200_v45 = vadd.f32 %v4199_v44, %v4198_v28  ;;  %v7469_v18 = vadd.f32 %v5095_v35, %v7204_v23  ;;  %v5098_v44 = vpop.f32.mrf.mxu0 }
 0x50a   :  { %v4433_v41 = vrot.slane %v4432_v55, 4  ;;  %5276 = vrcp.f32 %v4209_v13  ;;  %v4102_v12 = vmul.f32 1.442695, %v4066_v1  ;;  %v3995_v63 = vmax.f32 %v3993_v47, %v3994_v48 }
 0x50b   :  { %v5271_v14 = vpop.eup %5270  ;;  %v4201_v29 = vrot.slane %v4200_v45, 1  ;;  %v3984_v3 = vsel %vm161_vm0, %v7463_v36, -inf  ;;  %v4005_v10 = vsel %vm161_vm0, %v7469_v18, -inf }
 0x50c   :  { %v7476_v61 = vpop.eup %5272  ;;  %v7478_v16 = vadd.f32 %v4433_v41, %v4432_v55  ;;  %v4327_v62 = vmul.f32 %v5271_v14, %v7388_v30  ;;  %5278 = vpow2.f32 %v4102_v12  ;;  %v3996_v42 = vrot.slane %v3995_v63, 1 }
 0x50d   :  { %v4202_v37 = vadd.f32 %v4201_v29, %v4200_v45  ;;  %v4217_v53 = vsel %vm161_vm0, %v7476_v61, 0.0  ;;  %v3985_v40 = vrot.slane %v3984_v3, 4  ;;  %v4006_v28 = vrot.slane %v4005_v10, 4 }
 0x50e   :  { %v4375_v38 = vmul.f32 %v7225_v8, %v4327_v62  ;;  %v4218_v58 = vrot.slane %v4217_v53, 4  ;;  %v3997_v47 = vmax.f32 %v3995_v63, %v3996_v42  ;;  %v7486_v30 = vadd.f32 %v7204_v23, %v3847_v49 }
 0x50f   :  { %v5275_v35 = vpop.eup %5274  ;;  %5280 = vrcp.f32 %v4202_v37  ;;  %v3986_v60 = vmax.f32 %v3984_v3, %v3985_v40  ;;  %v4007_v32 = vmax.f32 %v4005_v10, %v4006_v28  ;;  %v7495_v49 = vadd.f32 %v5098_v44, %v7204_v23 }
 0x510   :  { %v4453_v13 = vsel %vm161_vm0, %v4375_v38, 0.0  ;;  %v4326_v1 = vmul.f32 %v5275_v35, %v7394_v56  ;;  %v4219_v48 = vadd.f32 %v4218_v58, %v4217_v53  ;;  %v4069_v55 = vsub.f32 %v7413_v46, %v3997_v47  ;;  %v3857_v56 = vpop.f32.mrf.mxu0 }
 0x511   :  { %v4454_v45 = vrot.slane %v4453_v13, 4  ;;  %v3987_v41 = vrot.slane %v3986_v60, 2  ;;  %v4008_v8 = vrot.slane %v4007_v32, 2  ;;  %v3998_v12 = vsel %vm161_vm0, %v7486_v30, -inf }
 0x512   :  { %v4374_v63 = vmul.f32 %v7222_v33, %v4326_v1  ;;  %v4220_v14 = vrot.slane %v4219_v48, 2  ;;  %v4108_v29 = vmul.f32 1.442695, %v4069_v55  ;;  %v3999_v3 = vrot.slane %v3998_v12, 4 }
 0x513   :  { %v4455_v10 = vadd.f32 %v4454_v45, %v4453_v13  ;;  %v3988_v62 = vmax.f32 %v3986_v60, %v3987_v41  ;;  %v4009_v42 = vmax.f32 %v4007_v32, %v4008_v8  ;;  %v4019_v35 = vsel %vm161_vm0, %v7495_v49, -inf }
 0x514   :  { %v4446_v46 = vsel %vm161_vm0, %v4374_v63, 0.0  ;;  %v4221_v37 = vadd.f32 %v4220_v14, %v4219_v48  ;;  %5282 = vpow2.f32 %v4108_v29  ;;  %v4000_v53 = vmax.f32 %v3998_v12, %v3999_v3 }
 0x515   :  { %v4456_v40 = vrot.slane %v4455_v10, 2  ;;  %v4447_v28 = vrot.slane %v4446_v46, 4  ;;  %v3989_v38 = vrot.slane %v3988_v62, 1  ;;  %v4010_v58 = vrot.slane %v4009_v42, 1 }
 0x516   :  { %v4222_v33 = vrot.slane %v4221_v37, 1  ;;  %v4001_v47 = vrot.slane %v4000_v53, 2  ;;  %v7501_v60 = vadd.f32 %v7204_v23, %v3857_v56  ;;  %v4020_v8 = vrot.slane %v4019_v35, 4 }
 0x517   :  { %v5277_v32 = vpop.eup %5276  ;;  %v4457_v44 = vadd.f32 %v4456_v40, %v4455_v10  ;;  %v4448_v13 = vadd.f32 %v4447_v28, %v4446_v46  ;;  %v3990_v1 = vmax.f32 %v3988_v62, %v3989_v38  ;;  %v4011_v55 = vmax.f32 %v4009_v42, %v4010_v58 }
 0x518   :  { %v4329_v48 = vmul.f32 %v5277_v32, %v7416_v5  ;;  %v4223_v45 = vadd.f32 %v4222_v33, %v4221_v37  ;;  %v4002_v41 = vmax.f32 %v4000_v53, %v4001_v47  ;;  %v5101_v47 = vpop.f32.mrf.mxu0 }
 0x519   :  { %v7504_v12 = vpop.eup %5278  ;;  %v4458_v63 = vrot.slane %v4457_v44, 1  ;;  %v4449_v14 = vrot.slane %v4448_v13, 2  ;;  %v4068_v29 = vsub.f32 %v7463_v36, %v3990_v1  ;;  %v4071_v3 = vsub.f32 %v7469_v18, %v4011_v55 }
 0x51a   :  { %v4377_v56 = vmul.f32 %v7249_v39, %v4329_v48  ;;  %5284 = vrcp.f32 %v4223_v45  ;;  %v4210_v10 = vsel %vm161_vm0, %v7504_v12, 0.0  ;;  %v4003_v62 = vrot.slane %v4002_v41, 1 }
 0x51b   :  { %v7511_v42 = vadd.f32 %v4458_v63, %v4457_v44  ;;  %v4450_v5 = vadd.f32 %v4449_v14, %v4448_v13  ;;  %v4211_v46 = vrot.slane %v4210_v10, 4  ;;  %v4106_v37 = vmul.f32 1.442695, %v4068_v29 }
 0x51c   :  { %v5281_v53 = vpop.eup %5280  ;;  %v4467_v40 = vsel %vm161_vm0, %v4377_v56, 0.0  ;;  %v4112_v28 = vmul.f32 1.442695, %v4071_v3  ;;  %v4004_v38 = vmax.f32 %v4002_v41, %v4003_v62  ;;  %v4021_v36 = vmax.f32 %v4019_v35, %v4020_v8  ;;  %v3867_v3 = vpop.f32.mrf.mxu0 }
 0x51d   :  { %v4451_v58 = vrot.slane %v4450_v5, 1  ;;  %v4468_v18 = vrot.slane %v4467_v40, 4  ;;  %v4328_v39 = vmul.f32 %v5281_v53, %v7431_v7  ;;  %v4212_v33 = vadd.f32 %v4211_v46, %v4210_v10 }
 0x51e   :  { %5286 = vpow2.f32 %v4106_v37  ;;  %v4070_v32 = vsub.f32 %v7486_v30, %v4004_v38  ;;  %v4022_v44 = vrot.slane %v4021_v36, 2  ;;  %v4012_v13 = vsel %vm161_vm0, %v7501_v60, -inf }
 0x51f   :  { %v7518_v1 = vadd.f32 %v4451_v58, %v4450_v5  ;;  %v4469_v55 = vadd.f32 %v4468_v18, %v4467_v40  ;;  %v4376_v48 = vmul.f32 %v7246_v20, %v4328_v39  ;;  %v4213_v45 = vrot.slane %v4212_v33, 2 }
 0x520   :  { %5288 = vpow2.f32 %v4112_v28  ;;  %v4110_v35 = vmul.f32 1.442695, %v4070_v32  ;;  %v4023_v41 = vmax.f32 %v4021_v36, %v4022_v44  ;;  %v4013_v8 = vrot.slane %v4012_v13, 4 }
 0x521   :  { %v7521_v7 = vpop.eup %5282  ;;  %v4470_v63 = vrot.slane %v4469_v55, 2  ;;  %v4460_v14 = vsel %vm161_vm0, %v4376_v48, 0.0  ;;  %v4214_v30 = vadd.f32 %v4213_v45, %v4212_v33  ;;  %v7525_v29 = vadd.f32 %v5101_v47, %v7204_v23 }
 0x522   :  { %v4461_v56 = vrot.slane %v4460_v14, 4  ;;  %v4231_v10 = vsel %vm161_vm0, %v7521_v7, 0.0  ;;  %5290 = vpow2.f32 %v4110_v35  ;;  %v4024_v20 = vrot.slane %v4023_v41, 1 }
 0x523   :  { %v4471_v62 = vadd.f32 %v4470_v63, %v4469_v55  ;;  %v4215_v5 = vrot.slane %v4214_v30, 1  ;;  %v4232_v46 = vrot.slane %v4231_v10, 4  ;;  %v4014_v37 = vmax.f32 %v4012_v13, %v4013_v8  ;;  %v5104_v13 = vpop.f32.mrf.mxu0 }
 0x524   :  { %v4462_v53 = vadd.f32 %v4461_v56, %v4460_v14  ;;  %v4025_v40 = vmax.f32 %v4023_v41, %v4024_v20  ;;  %v4033_v28 = vsel %vm161_vm0, %v7525_v29, -inf  ;;  %v7532_v38 = vadd.f32 %v7204_v23, %v3867_v3 }
 0x525   :  { %v4472_v36 = vrot.slane %v4471_v62, 1  ;;  %v4216_v58 = vadd.f32 %v4215_v5, %v4214_v30  ;;  %v4233_v18 = vadd.f32 %v4232_v46, %v4231_v10  ;;  %v4015_v39 = vrot.slane %v4014_v37, 2 }
 0x526   :  { %v4463_v33 = vrot.slane %v4462_v53, 2  ;;  %v4073_v47 = vsub.f32 %v7495_v49, %v4025_v40  ;;  %v4034_v32 = vrot.slane %v4033_v28, 4  ;;  %v4026_v44 = vsel %vm161_vm0, %v7532_v38, -inf  ;;  %v5328_v49 = vld [vmem:[%s7781_s10 + $0x1] ss:$0 sm:$0xff] }
 0x527   :  { %v5285_v55 = vpop.eup %5284  ;;  %v7537_v48 = vadd.f32 %v4472_v36, %v4471_v62  ;;  %5292 = vrcp.f32 %v4216_v58  ;;  %v4234_v45 = vrot.slane %v4233_v18, 2  ;;  %v4016_v35 = vmax.f32 %v4014_v37, %v4015_v39 }
 0x528   :  { %v4464_v23 = vadd.f32 %v4463_v33, %v4462_v53  ;;  %v4331_v41 = vmul.f32 %v5285_v55, %v7476_v61  ;;  %v4116_v8 = vmul.f32 1.442695, %v4073_v47  ;;  %v4035_v63 = vmax.f32 %v4033_v28, %v4034_v32 }
 0x529   :  { %v4235_v14 = vadd.f32 %v4234_v45, %v4233_v18  ;;  %v4017_v30 = vrot.slane %v4016_v35, 1  ;;  %v4027_v3 = vrot.slane %v4026_v44, 4  ;;  %v7543_v56 = vadd.f32 %v5328_v49, %v5104_v13 }
 0x52a   :  { %v4465_v10 = vrot.slane %v4464_v23, 1  ;;  %v4379_v20 = vmul.f32 %v7257_v54, %v4331_v41  ;;  %5294 = vpow2.f32 %v4116_v8  ;;  %v4036_v62 = vrot.slane %v4035_v63, 2 }
 0x52b   :  { %v7546_v5 = vpop.eup %5286  ;;  %v4236_v46 = vrot.slane %v4235_v14, 1  ;;  %v4018_v61 = vmax.f32 %v4016_v35, %v4017_v30  ;;  %v4028_v37 = vmax.f32 %v4026_v44, %v4027_v3  ;;  %v4047_v53 = vsel %vm161_vm0, %v7543_v56, -inf }
 0x52c   :  { %v7550_v40 = vadd.f32 %v4465_v10, %v4464_v23  ;;  %v4481_v28 = vsel %vm161_vm0, %v4379_v20, 0.0  ;;  %v4224_v36 = vsel %vm161_vm0, %v7546_v5, 0.0  ;;  %v4037_v58 = vmax.f32 %v4035_v63, %v4036_v62  ;;  %v3877_v62 = vpop.f32.mrf.mxu0 }
 0x52d   :  { %v7555_v18 = vpop.eup %5288  ;;  %v4482_v54 = vrot.slane %v4481_v28, 4  ;;  %v4237_v39 = vadd.f32 %v4236_v46, %v4235_v14  ;;  %v4225_v33 = vrot.slane %v4224_v36, 4  ;;  %v4072_v47 = vsub.f32 %v7501_v60, %v4018_v61 }
 0x52e   :  { %v4245_v32 = vsel %vm161_vm0, %v7555_v18, 0.0  ;;  %v4038_v44 = vrot.slane %v4037_v58, 1  ;;  %v4029_v13 = vrot.slane %v4028_v37, 2  ;;  %v4048_v55 = vrot.slane %v4047_v53, 4 }
 0x52f   :  { %v7560_v45 = vpop.eup %5290  ;;  %v4483_v35 = vadd.f32 %v4482_v54, %v4481_v28  ;;  %5296 = vrcp.f32 %v4237_v39  ;;  %v4226_v23 = vadd.f32 %v4225_v33, %v4224_v36  ;;  %v4246_v41 = vrot.slane %v4245_v32, 4 }
 0x530   :  { %v4238_v8 = vsel %vm161_vm0, %v7560_v45, 0.0  ;;  %v4114_v63 = vmul.f32 1.442695, %v4072_v47  ;;  %v4039_v14 = vmax.f32 %v4037_v58, %v4038_v44  ;;  %v4030_v30 = vmax.f32 %v4028_v37, %v4029_v13 }
 0x531   :  { %v4484_v3 = vrot.slane %v4483_v35, 2  ;;  %v4227_v60 = vrot.slane %v4226_v23, 2  ;;  %v4247_v10 = vadd.f32 %v4246_v41, %v4245_v32  ;;  %v4239_v20 = vrot.slane %v4238_v8, 4 }
 0x532   :  { %5298 = vpow2.f32 %v4114_v63  ;;  %v4075_v46 = vsub.f32 %v7525_v29, %v4039_v14  ;;  %v4031_v61 = vrot.slane %v4030_v30, 1  ;;  %v4049_v11 = vmax.f32 %v4047_v53, %v4048_v55 }
 0x533   :  { %v7565_v28 = vadd.f32 %v4484_v3, %v4483_v35  ;;  %v4228_v36 = vadd.f32 %v4227_v60, %v4226_v23  ;;  %v4248_v54 = vrot.slane %v4247_v10, 2  ;;  %v4240_v39 = vadd.f32 %v4239_v20, %v4238_v8 }
 0x534   :  { %v5293_v33 = vpop.eup %5292  ;;  %v4120_v21 = vmul.f32 1.442695, %v4075_v46  ;;  %v4032_v47 = vmax.f32 %v4030_v30, %v4031_v61  ;;  %v4050_v58 = vrot.slane %v4049_v11, 2  ;;  %v7567_v37 = vadd.f32 %v5328_v49, %v3877_v62 }
 0x535   :  { %v4486_v32 = vrot.slane %v7565_v28, 1  ;;  %v4330_v44 = vmul.f32 %v5293_v33, %v7504_v12  ;;  %v4229_v13 = vrot.slane %v4228_v36, 1  ;;  %v4249_v41 = vadd.f32 %v4248_v54, %v4247_v10 }
 0x536   :  { %v4241_v29 = vrot.slane %v4240_v39, 2  ;;  %5300 = vpow2.f32 %v4120_v21  ;;  %v4074_v53 = vsub.f32 %v7532_v38, %v4032_v47  ;;  %v4051_v55 = vmax.f32 %v4049_v11, %v4050_v58 }
 0x537   :  { %v7572_v35 = vpop.eup %5294  ;;  %v4378_v23 = vmul.f32 %v7254_v25, %v4330_v44  ;;  %v4230_v8 = vadd.f32 %v4229_v13, %v4228_v36  ;;  %v4250_v63 = vrot.slane %v4249_v41, 1  ;;  %v4040_v49 = vsel %vm161_vm0, %v7567_v37, -inf }
 0x538   :  { %v4242_v14 = vadd.f32 %v4241_v29, %v4240_v39  ;;  %v4259_v12 = vsel %vm161_vm0, %v7572_v35, 0.0  ;;  %v4118_v30 = vmul.f32 1.442695, %v4074_v53  ;;  %v4052_v3 = vrot.slane %v4051_v55, 1 }
 0x539   :  { %v4474_v21 = vsel %vm161_vm0, %v4378_v23, 0.0  ;;  %5302 = vrcp.f32 %v4230_v8  ;;  %v4251_v38 = vadd.f32 %v4250_v63, %v4249_v41  ;;  %v4260_v11 = vrot.slane %v4259_v12, 4 }
 0x53a   :  { %v4475_v60 = vrot.slane %v4474_v21, 4  ;;  %v4243_v10 = vrot.slane %v4242_v14, 1  ;;  %5304 = vpow2.f32 %v4118_v30  ;;  %v4053_v25 = vmax.f32 %v4051_v55, %v4052_v3 }
 0x53b   :  { %5306 = vrcp.f32 %v4251_v38  ;;  %v4261_v20 = vadd.f32 %v4260_v11, %v4259_v12  ;;  %v4041_v62 = vrot.slane %v4040_v49, 4  ;;  %v7583_v46 = vadd.f32 %v4395_v15, %v7406_v51 }
 0x53c   :  { %v5297_v61 = vpop.eup %5296  ;;  %v4476_v36 = vadd.f32 %v4475_v60, %v4474_v21  ;;  %v4244_v54 = vadd.f32 %v4243_v10, %v4242_v14  ;;  %v4077_v39 = vsub.f32 %v7543_v56, %v4053_v25  ;;  %v7589_v33 = vadd.f32 %v4402_v2, %v7401_v34 }
 0x53d   :  { %v4333_v47 = vmul.f32 %v5297_v61, %v7521_v7  ;;  %v4262_v58 = vrot.slane %v4261_v20, 2  ;;  %v4042_v44 = vmax.f32 %v4040_v49, %v4041_v62  ;;  %v7595_v13 = vadd.f32 %v4409_v22, %v7434_v43 }
 0x53e   :  { %v4477_v51 = vrot.slane %v4476_v36, 2  ;;  %5308 = vrcp.f32 %v4244_v54  ;;  %v4124_v15 = vmul.f32 1.442695, %v4077_v39  ;;  %v7600_v56 = vadd.f32 %v4416_v9, %v7419_v24 }
 0x53f   :  { %v7602_v41 = vpop.eup %5298  ;;  %v4381_v34 = vmul.f32 %v7282_v50, %v4333_v47  ;;  %v4263_v2 = vadd.f32 %v4262_v58, %v4261_v20  ;;  %v4043_v7 = vrot.slane %v4042_v44, 2  ;;  %v4423_v29 = vrot.slane %v7458_v59, 1 }
 0x540   :  { %v4478_v53 = vadd.f32 %v4477_v51, %v4476_v36  ;;  %v4252_v43 = vsel %vm161_vm0, %v7602_v41, 0.0  ;;  %5310 = vpow2.f32 %v4124_v15  ;;  %v4430_v22 = vrot.slane %v7455_v52, 1 }
 0x541   :  { %v4495_v55 = vsel %vm161_vm0, %v4381_v34, 0.0  ;;  %v4264_v23 = vrot.slane %v4263_v2, 1  ;;  %v4253_v24 = vrot.slane %v4252_v43, 4  ;;  %v4044_v9 = vmax.f32 %v4042_v44, %v4043_v7 }
 0x542   :  { %v4479_v8 = vrot.slane %v4478_v53, 1  ;;  %v4496_v63 = vrot.slane %v4495_v55, 4  ;;  %v7611_v50 = vadd.f32 %v4423_v29, %v7458_v59  ;;  %v7614_v49 = vadd.f32 %v4430_v22, %v7455_v52 }
 0x543   :  { %v7616_v14 = vpop.eup %5300  ;;  %v4265_v12 = vadd.f32 %v4264_v23, %v4263_v2  ;;  %v4254_v30 = vadd.f32 %v4253_v24, %v4252_v43  ;;  %v4045_v3 = vrot.slane %v4044_v9, 1  ;;  %v7899_v21 = vrot.slane %v7478_v16, 2 }
 0x544   :  { %v4497_v11 = vadd.f32 %v4496_v63, %v4495_v55  ;;  %v4273_v60 = vsel %vm161_vm0, %v7616_v14, 0.0  ;;  %v7900_v59 = vrot.slane %v7465_v57, 2  ;;  %v7626_v25 = vadd.f32 %v4479_v8, %v4478_v53 }
 0x545   :  { %v4436_v38 = vadd.f32 %v7899_v21, %v7478_v16  ;;  %5312 = vrcp.f32 %v4265_v12  ;;  %v4255_v52 = vrot.slane %v4254_v30, 2  ;;  %v4274_v20 = vrot.slane %v4273_v60, 4 }
 0x546   :  { %v4443_v10 = vadd.f32 %v7900_v59, %v7465_v57  ;;  %v4046_v62 = vmax.f32 %v4044_v9, %v4045_v3  ;;  %v5303_v61 = vpop.eup %5302  ;;  %v4498_v36 = vrot.slane %v4497_v11, 2  ;;  %v7631_v16 = vadd.f32 %v4486_v32, %v7565_v28 }
 0x547   :  { %v4437_v54 = vrot.slane %v4436_v38, 1  ;;  %v7633_v47 = vpop.eup %5304  ;;  %v4332_v58 = vmul.f32 %v5303_v61, %v7546_v5  ;;  %v4256_v57 = vadd.f32 %v4255_v52, %v4254_v30  ;;  %v4275_v44 = vadd.f32 %v4274_v20, %v4273_v60 }
 0x548   :  { %v4444_v39 = vrot.slane %v4443_v10, 1  ;;  %v4076_v51 = vsub.f32 %v7567_v37, %v4046_v62  ;;  %v5307_v15 = vpop.eup %5306  ;;  %v4499_v34 = vadd.f32 %v4498_v36, %v4497_v11  ;;  %v4266_v2 = vsel %vm161_vm0, %v7633_v47, 0.0 }
 0x549   :  { %v4438_v7 = vadd.f32 %v4437_v54, %v4436_v38  ;;  %v4380_v53 = vmul.f32 %v7260_v19, %v4332_v58  ;;  %v4335_v28 = vmul.f32 %v5307_v15, %v7555_v18  ;;  %v4257_v32 = vrot.slane %v4256_v57, 1 }
 0x54a   :  { %v4445_v29 = vadd.f32 %v4444_v39, %v4443_v10  ;;  %v4276_v43 = vrot.slane %v4275_v44, 2  ;;  %v4267_v22 = vrot.slane %v4266_v2, 4  ;;  %v4122_v55 = vmul.f32 1.442695, %v4076_v51  ;;  %v7901_v51 = vld [vmem:[#allocation19_spill] sm:$0xff] }
 0x54b   :  { %v4500_v5 = vrot.slane %v4499_v34, 1  ;;  %v7643_v23 = vadd.f32 %v7583_v46, %v6550_v31  ;;  %v5309_v37 = vpop.eup %5308  ;;  %v4488_v24 = vsel %vm161_vm0, %v4380_v53, 0.0  ;;  %v4383_v9 = vmul.f32 %v7292_v4, %v4335_v28  ;;  %v7902_v28 = vld [vmem:[#allocation20_spill] sm:$0xff] }
 0x54c   :  { %v4258_v8 = vadd.f32 %v4257_v32, %v4256_v57  ;;  %v4277_v63 = vadd.f32 %v4276_v43, %v4275_v44  ;;  %v4489_v12 = vrot.slane %v4488_v24, 4  ;;  %v4334_v19 = vmul.f32 %v5309_v37, %v7560_v45  ;;  %v7903_v32 = vld [vmem:[#allocation4_spill] sm:$0xff]  ;;  %v7905_v37 = vld [vmem:[#allocation6_spill] sm:$0xff] }
 0x54d   :  { %v4268_v18 = vadd.f32 %v4267_v22, %v4266_v2  ;;  %5314 = vpow2.f32 %v4122_v55  ;;  %v7648_v30 = vpop.eup %5310  ;;  %v4509_v3 = vsel %vm161_vm0, %v4383_v9, 0.0  ;;  %v4501_v31 = vadd.f32 %v4500_v5, %v4499_v34  ;;  %v7904_v55 = vld [vmem:[#allocation21_spill] sm:$0xff] }
 0x54e   :  { %5316 = vrcp.f32 %v4258_v8  ;;  %v4278_v21 = vrot.slane %v4277_v63, 1  ;;  %v4490_v46 = vadd.f32 %v4489_v12, %v4488_v24  ;;  %v4510_v38 = vrot.slane %v4509_v3, 4  ;;  %v7906_v8 = vld [vmem:[#allocation22_spill] sm:$0xff] }
 0x54f   :  { %v4382_v11 = vmul.f32 %v7289_v0, %v4334_v19  ;;  %v4269_v60 = vrot.slane %v4268_v18, 2  ;;  %v4287_v59 = vsel %vm161_vm0, %v7648_v30, 0.0  ;;  %v4559_v45 = vadd.f32 %v7589_v33, %v6555_v26  ;;  %v7907_v19 = vld [vmem:[#allocation23_spill] sm:$0xff] }
 0x550   :  { %v4279_v4 = vadd.f32 %v4278_v21, %v4277_v63  ;;  %v7658_v10 = vadd.f32 %v7595_v13, %v6563_v17  ;;  %v4491_v52 = vrot.slane %v4490_v46, 2  ;;  %v4511_v20 = vadd.f32 %v4510_v38, %v4509_v3  ;;  %v7908_v3 = vld [vmem:[#allocation24_spill] sm:$0xff]  ;;  %v7909_v38 = vld [vmem:[#allocation25_spill] sm:$0xff] }
 0x551   :  { %v4502_v62 = vsel %vm161_vm0, %v4382_v11, 0.0  ;;  %v4270_v61 = vadd.f32 %v4269_v60, %v4268_v18  ;;  %v4288_v0 = vrot.slane %v4287_v59, 4  ;;  %v4561_v54 = vadd.f32 %v7600_v56, %v6567_v27  ;;  %v7910_v60 = vld [vmem:[#allocation17_spill] sm:$0xff] }
 0x552   :  { %v4503_v36 = vrot.slane %v4502_v62, 4  ;;  %5318 = vrcp.f32 %v4279_v4  ;;  %v5313_v39 = vpop.eup %5312  ;;  %v4492_v58 = vadd.f32 %v4491_v52, %v4490_v46  ;;  %v4512_v57 = vrot.slane %v4511_v20, 2  ;;  %v7911_v52 = vld [vmem:[#allocation16_spill] sm:$0xff] }
 0x553   :  { %v4271_v26 = vrot.slane %v4270_v61, 1  ;;  %v4562_v17 = vadd.f32 %v7611_v50, %v6571_v6  ;;  %v4337_v13 = vmul.f32 %v5313_v39, %v7572_v35  ;;  %v4289_v44 = vadd.f32 %v4288_v0, %v4287_v59 }
 0x554   :  { %v4504_v33 = vadd.f32 %v4503_v36, %v4502_v62  ;;  %v4563_v15 = vadd.f32 %v7614_v49, %v7901_v51  ;;  %v4513_v34 = vadd.f32 %v4512_v57, %v4511_v20  ;;  %v4493_v53 = vrot.slane %v4492_v58, 1 }
 0x555   :  { %v4272_v2 = vadd.f32 %v4271_v26, %v4270_v61  ;;  %v4564_v27 = vadd.f32 %v4438_v7, %v7902_v28  ;;  %v4385_v43 = vmul.f32 %v7903_v32, %v4337_v13  ;;  %v4290_v22 = vrot.slane %v4289_v44, 2 }
 0x556   :  { %v4505_v56 = vrot.slane %v4504_v33, 2  ;;  %v4565_v5 = vadd.f32 %v4445_v29, %v7904_v55  ;;  %v4494_v6 = vadd.f32 %v4493_v53, %v4492_v58  ;;  %v4514_v50 = vrot.slane %v4513_v34, 1  ;;  %v7913_v58 = vld [vmem:[#allocation18_spill] sm:$0xff] }
 0x557   :  { %5320 = vrcp.f32 %v4272_v2  ;;  %v4566_v35 = vadd.f32 %v7518_v1, %v7905_v37  ;;  %v4523_v49 = vsel %vm161_vm0, %v4385_v43, 0.0  ;;  %v4291_v9 = vadd.f32 %v4290_v22, %v4289_v44 }
 0x558   :  { %v4506_v24 = vadd.f32 %v4505_v56, %v4504_v33  ;;  %v4567_v63 = vadd.f32 %v7511_v42, %v7906_v8  ;;  %v4524_v7 = vrot.slane %v4523_v49, 4  ;;  %v4515_v12 = vadd.f32 %v4514_v50, %v4513_v34  ;;  %v7914_v33 = vld [vmem:[#allocation2_spill] sm:$0xff]  ;;  %v7916_v50 = vld [vmem:[#allocation9_spill] sm:$0xff] }
 0x559   :  { %v4568_v18 = vadd.f32 %v7550_v40, %v7907_v19  ;;  %v7680_v29 = vadd.f32 %v7537_v48, %v7908_v3  ;;  %v4292_v46 = vrot.slane %v4291_v9, 1  ;;  %v4570_v11 = vadd.f32 %v7626_v25, %v7909_v38  ;;  %v7912_v48 = vld [vmem:[#allocation26_spill] sm:$0xff]  ;;  %v7917_v38 = vld [vmem:[#allocation28_spill] sm:$0xff] }
 0x55a   :  { %v7682_v21 = vpop.eup %5314  ;;  %v4507_v1 = vrot.slane %v4506_v24, 1  ;;  %v7688_v4 = vadd.f32 %v7631_v16, %v7910_v60  ;;  %v4525_v59 = vadd.f32 %v4524_v7, %v4523_v49  ;;  %v7693_v20 = vadd.f32 %v4494_v6, %v7911_v52 }
 0x55b   :  { %v5317_v42 = vpop.eup %5316  ;;  %v4280_v40 = vsel %vm161_vm0, %v7682_v21, 0.0  ;;  %v7696_v62 = vadd.f32 %v4501_v31, %v7912_v48  ;;  %v4293_v36 = vadd.f32 %v4292_v46, %v4291_v9  ;;  %v7700_v16 = vadd.f32 %v4515_v12, %v7913_v58  ;;  %v7915_v31 = vld [vmem:[#allocation27_spill] sm:$0xff]  ;;  %v7918_v48 = vld [vmem:[#allocation8_spill] sm:$0xff] }
 0x55c   :  { %v4336_v61 = vmul.f32 %v5317_v42, %v7602_v41  ;;  %v4281_v0 = vrot.slane %v4280_v40, 4  ;;  %v4508_v25 = vadd.f32 %v4507_v1, %v4506_v24  ;;  %v4526_v39 = vrot.slane %v4525_v59, 2 }
 0x55d   :  { %v4583_v57 = vsel %vm4582_vm10, %v7643_v23, -inf  ;;  %v4584_v26 = vsel %vm4582_vm10, %v4559_v45, -inf  ;;  %5322 = vrcp.f32 %v4293_v36  ;;  %v4585_v2 = vsel %vm4582_vm10, %v7658_v10, -inf }
 0x55e   :  { %v4384_v13 = vmul.f32 %v7914_v33, %v4336_v61  ;;  %v4282_v44 = vadd.f32 %v4281_v0, %v4280_v40  ;;  %v7707_v51 = vadd.f32 %v4508_v25, %v7915_v31  ;;  %v4527_v34 = vadd.f32 %v4526_v39, %v4525_v59 }
 0x55f   :  { %v5319_v41 = vpop.eup %5318  ;;  %v4587_v53 = vsel %vm4582_vm10, %v4561_v54, -inf  ;;  %v4589_v28 = vsel %vm4582_vm10, %v4562_v17, -inf  ;;  %v4586_v32 = vmax.f32 %v4583_v57, %v4585_v2  ;;  %v4591_v6 = vsel %vm4582_vm10, %v4563_v15, -inf }
 0x560   :  { %v4516_v23 = vsel %vm161_vm0, %v4384_v13, 0.0  ;;  %v4339_v45 = vmul.f32 %v5319_v41, %v7616_v14  ;;  %v4283_v56 = vrot.slane %v4282_v44, 2  ;;  %v4528_v22 = vrot.slane %v4527_v34, 1 }
 0x561   :  { %v4517_v43 = vrot.slane %v4516_v23, 4  ;;  %v4588_v55 = vmax.f32 %v4584_v26, %v4587_v53  ;;  %v4590_v49 = vmax.f32 %v4586_v32, %v4589_v28  ;;  %v4593_v10 = vsel %vm4582_vm10, %v4564_v27, -inf }
 0x562   :  { %v4387_v37 = vmul.f32 %v7916_v50, %v4339_v45  ;;  %v4284_v24 = vadd.f32 %v4283_v56, %v4282_v44  ;;  %v4529_v9 = vadd.f32 %v4528_v22, %v4527_v34  ;;  %v4595_v8 = vsel %vm4582_vm10, %v4565_v5, -inf  ;;  %v7920_v34 = vld [vmem:[#allocation10_spill] sm:$0xff]  ;;  %v7921_v56 = vld [vmem:[#allocation7_spill] sm:$0xff] }
 0x563   :  { %v4518_v54 = vadd.f32 %v4517_v43, %v4516_v23  ;;  %v4592_v17 = vmax.f32 %v4588_v55, %v4591_v6  ;;  %v4594_v19 = vmax.f32 %v4590_v49, %v4593_v10  ;;  %v4598_v3 = vsel %vm4582_vm10, %v4566_v35, -inf }
 0x564   :  { %v5321_v7 = vpop.eup %5320  ;;  %v4537_v14 = vsel %vm161_vm0, %v4387_v37, 0.0  ;;  %v4285_v12 = vrot.slane %v4284_v24, 1  ;;  %v4577_v60 = vadd.f32 %v4529_v9, %v7917_v38  ;;  %v4599_v59 = vsel %vm4582_vm10, %v4567_v63, -inf  ;;  %v7922_v9 = vld [vmem:[#allocation30_spill] sm:$0xff] }
 0x565   :  { %v4519_v46 = vrot.slane %v4518_v54, 2  ;;  %v4538_v15 = vrot.slane %v4537_v14, 4  ;;  %v4338_v1 = vmul.f32 %v5321_v7, %v7633_v47  ;;  %v4596_v27 = vmax.f32 %v4592_v17, %v4595_v8  ;;  %v5329_v8 = vld [vmem:[%s7779_s7 + $0x1] ss:$0 sm:$0xff] }
 0x566   :  { %v4286_v42 = vadd.f32 %v4285_v12, %v4284_v24  ;;  %v4600_v40 = vsel %vm4582_vm10, %v4568_v18, -inf  ;;  %v4602_v35 = vsel %vm4582_vm10, %v7680_v29, -inf  ;;  %v4604_v47 = vsel %vm4582_vm10, %v4570_v11, -inf  ;;  %v7919_v11 = vld [vmem:[#allocation5_spill] sm:$0xff] }
 0x567   :  { %v4520_v5 = vadd.f32 %v4519_v46, %v4518_v54  ;;  %v4539_v52 = vadd.f32 %v4538_v15, %v4537_v14  ;;  %v4386_v61 = vmul.f32 %v7918_v48, %v4338_v1  ;;  %v4601_v36 = vmax.f32 %v4598_v3, %v4600_v40 }
 0x568   :  { %5324 = vrcp.f32 %v4286_v42  ;;  %v4597_v0 = vmax.f32 %v4594_v19, %v4596_v27  ;;  %v4603_v57 = vmax.f32 %v4599_v59, %v4602_v35  ;;  %v4606_v18 = vsel %vm4582_vm10, %v7688_v4, -inf  ;;  %v7924_v27 = vld [vmem:[#allocation29_spill] sm:$0xff] }
 0x569   :  { %v4540_v25 = vrot.slane %v4539_v52, 2  ;;  %v4530_v39 = vsel %vm161_vm0, %v4386_v61, 0.0  ;;  %v4521_v58 = vrot.slane %v4520_v5, 1  ;;  %v4605_v26 = vmax.f32 %v4601_v36, %v4604_v47 }
 0x56a   :  { %v4531_v63 = vrot.slane %v4530_v39, 4  ;;  %v4608_v33 = vsel %vm4582_vm10, %v7693_v20, -inf  ;;  %v5323_v13 = vpop.eup %5322  ;;  %v4607_v41 = vmax.f32 %v4603_v57, %v4606_v18  ;;  %v4610_v29 = vsel %vm4582_vm10, %v7696_v62, -inf  ;;  %v7925_v57 = vld [vmem:[#allocation31_spill] sm:$0xff] }
 0x56b   :  { %v4522_v44 = vadd.f32 %v4521_v58, %v4520_v5  ;;  %v4541_v31 = vadd.f32 %v4540_v25, %v4539_v52  ;;  %v4365_v2 = vadd.f32 %v7920_v34, %v7919_v11  ;;  %v4341_v28 = vmul.f32 %v5323_v13, %v7648_v30  ;;  %v4834_v34 = vld [vmem:[%s7783_s12] ss:$0 sm:$0xff] }
 0x56c   :  { %v4532_v53 = vadd.f32 %v4531_v63, %v4530_v39  ;;  %v4609_v23 = vmax.f32 %v4605_v26, %v4608_v33  ;;  %v4611_v32 = vmax.f32 %v4607_v41, %v4610_v29  ;;  %v4613_v20 = vsel %vm4582_vm10, %v7707_v51, -inf }
 0x56d   :  { %v4542_v45 = vrot.slane %v4541_v31, 1  ;;  %v4576_v4 = vadd.f32 %v4522_v44, %v7921_v56  ;;  %v4389_v22 = vmul.f32 %v4365_v2, %v4341_v28  ;;  %v4614_v55 = vsel %vm4582_vm10, %v7700_v16, -inf  ;;  %v7923_v16 = vld [vmem:[#allocation3_spill] sm:$0xff] }
 0x56e   :  { %v4533_v43 = vrot.slane %v4532_v53, 2  ;;  %v4617_v62 = vsel %vm4582_vm10, %v4577_v60, -inf  ;;  %v4612_v50 = vmax.f32 %v4609_v23, %v4611_v32  ;;  %v3300_v7 = vadd.f32 %v5329_v8, %v7923_v16 }
 0x56f   :  { %v4543_v6 = vadd.f32 %v4542_v45, %v4541_v31  ;;  %v4615_v37 = vsel %vm4582_vm10, %v4576_v4, -inf  ;;  %v4618_v30 = vmax.f32 %v4614_v55, %v4617_v62  ;;  %v4551_v24 = vsel %vm161_vm0, %v4389_v22, 0.0 }
 0x570   :  { %v4534_v49 = vadd.f32 %v4533_v43, %v4532_v53  ;;  %v4616_v10 = vmax.f32 %v4613_v20, %v4615_v37  ;;  %v4552_v54 = vrot.slane %v4551_v24, 4  ;;  %v4642_v51 = vrot.slane %v4612_v50, 7 }
 0x571   :  { %v4579_v17 = vadd.f32 %v4543_v6, %v7922_v9  ;;  %v4364_v60 = vadd.f32 %v3300_v7, %v7919_v11 }
 0x572   :  { %v4535_v14 = vrot.slane %v4534_v49, 1  ;;  %v4553_v12 = vadd.f32 %v4552_v54, %v4551_v24  ;;  %v4643_v3 = vsel %vm2388_vm3, %v4642_v51, %v4597_v0 }
 0x573   :  { %v4621_v19 = vsel %vm4582_vm10, %v4579_v17, -inf }
 0x574   :  { %v4536_v46 = vadd.f32 %v4535_v14, %v4534_v49  ;;  %v4622_v15 = vmax.f32 %v4618_v30, %v4621_v19  ;;  %v4554_v38 = vrot.slane %v4553_v12, 2 }
 0x575   :  { %v5325_v1 = vpop.eup %5324 }
 0x576   :  { %v4340_v42 = vmul.f32 %v5325_v1, %v7682_v21  ;;  %v4578_v59 = vadd.f32 %v4536_v46, %v7924_v27  ;;  %v4555_v40 = vadd.f32 %v4554_v38, %v4553_v12  ;;  %v7926_v21 = vld [vmem:[#allocation32_spill] sm:$0xff] }
 0x578   :  { %v4388_v5 = vmul.f32 %v4364_v60, %v4340_v42  ;;  %v4619_v52 = vsel %vm4582_vm10, %v4578_v59, -inf  ;;  %v4556_v35 = vrot.slane %v4555_v40, 1 }
 0x579   :  { %v4620_v48 = vmax.f32 %v4616_v10, %v4619_v52 }
 0x57a   :  { %v4544_v61 = vsel %vm161_vm0, %v4388_v5, 0.0  ;;  %v4557_v25 = vadd.f32 %v4556_v35, %v4555_v40 }
 0x57b   :  { %v4545_v36 = vrot.slane %v4544_v61, 4 }
 0x57c   :  { %v4581_v63 = vadd.f32 %v4557_v25, %v7925_v57 }
 0x57d   :  { %v4546_v0 = vadd.f32 %v4545_v36, %v4544_v61 }
 0x57e   :  { %v4625_v33 = vsel %vm4582_vm10, %v4581_v63, -inf }
 0x57f   :  { %v4547_v47 = vrot.slane %v4546_v0, 2  ;;  %v4626_v31 = vmax.f32 %v4622_v15, %v4625_v33 }
 0x581   :  { %v4548_v39 = vadd.f32 %v4547_v47, %v4546_v0 }
 0x583   :  { %v4549_v58 = vrot.slane %v4548_v39, 1 }
 0x585   :  { %v4550_v26 = vadd.f32 %v4549_v58, %v4548_v39 }
 0x587   :  { %v4580_v18 = vadd.f32 %v4550_v26, %v7926_v21 }
 0x589   :  { %v4623_v13 = vsel %vm4582_vm10, %v4580_v18, -inf }
 0x58a   :  { %v4624_v44 = vmax.f32 %v4620_v48, %v4623_v13 }
 0x58c   :  { %v4627_v41 = vmax.f32 %v4624_v44, %v4626_v31 }
 0x58e   :  { %v4644_v29 = vrot.slane %v4627_v41, 6 }
 0x590   :  { %v4645_v11 = vsel %vm2391_vm4, %v4644_v29, %v4643_v3 }
 0x591   :  { %5114 = vmatmul.mubr.msk.f32.vlgmr.msra.gmra.mxu0 %vm161_vm0, %v4645_v11 }
 0x651   :  { %v4714_v2 = vpop.f32.mrf.mxu0 }
 0x652   :  { %v4715_v53 = vadd.f32 %v4834_v34, %v4714_v2 }
 0x653   :  { %v5115_v28 = vpop.f32.mrf.mxu0 }
 0x654   :  { %4719 = vst.msk [vmem:[%s7784_s13] sm:$0x7] %vm4718_vm11, %v4715_v53 }

</bundles_post_ra>
